<compile_context>
chip_gen: v6e
topology: v6e:2x2x1
jax: 0.10.0
libtpu: 0.0.40
codegen_flags: <defaults>
</compile_context>

<pallas_src>
import functools
import math

import jax
import jax.numpy as jnp
from jax.experimental import pallas as pl
from jax.experimental.pallas import tpu as pltpu


def _round_up(x, m):
    return (x + m - 1) // m * m


def _cdiv(a, b):
    return (a + b - 1) // b


def actor_critic_kernel(
    x_ref,                     # [bm, S]   f32
    w1_ref, b1_ref,            # fused layer 1: [S, 2048] bf16, [1, 2048] f32
    wa2_ref, ba2_ref,          # actor layer 2: [1024, 512] bf16, [1, 512] f32
    wc2_ref, bc2_ref,          # critic layer 2: [1024, 512] bf16, [1, 512] f32
    wh_ref, bh_ref,            # fused block-diag head: [1024, out_w] bf16, [1, out_w] f32
    out_ref,                   # packed [bm, out_w] f32: [mean(A) | value(1) | 0-pad]
    *,
    action_dim,
):
    f32 = jnp.float32
    bf16 = jnp.bfloat16

    # ---- fused layer 1 (shared LHS for actor & critic); bf16 cast fused into tanh ----
    x = x_ref[...].astype(bf16)                                  # [bm, S]
    h1 = jnp.tanh(
        jnp.dot(x, w1_ref[...], preferred_element_type=f32) + b1_ref[...]
    ).astype(bf16)                                               # [bm, 2048] bf16
    H1 = wa2_ref.shape[0]                                        # 1024
    ha1 = h1[:, :H1]                                             # actor branch (bf16)
    hc1 = h1[:, H1:]                                             # critic branch (bf16)

    # ---- layer 2 (bf16 in, f32 accumulate, bf16 out) ----
    ha2 = jnp.tanh(
        jnp.dot(ha1, wa2_ref[...], preferred_element_type=f32) + ba2_ref[...]
    ).astype(bf16)                                               # [bm, 512] bf16
    hc2 = jnp.tanh(
        jnp.dot(hc1, wc2_ref[...], preferred_element_type=f32) + bc2_ref[...]
    ).astype(bf16)                                               # [bm, 512] bf16

    # ---- fused block-diagonal head: one lane-dense dot -> packed [mean | value | 0] ----
    h2 = jnp.concatenate([ha2, hc2], axis=-1)                    # [bm, 1024] bf16
    z = jnp.dot(h2, wh_ref[...], preferred_element_type=f32) + bh_ref[...]   # [bm, out_w]

    # tanh only on the mean lanes (< action_dim); value lane passes through; pad lanes stay 0.
    lane = jax.lax.broadcasted_iota(jnp.int32, z.shape, 1)
    out_ref[...] = jnp.where(lane < action_dim, jnp.tanh(z), z)


def prepare_params(p):
    """One-time weight preparation (fusion, bf16 casts, block-diag head packing).

    Do this ONCE per parameter update, not per forward call.
    """
    S = p["wa1"].shape[0]
    H1 = p["wa1"].shape[1]            # 1024
    H2 = p["wa2"].shape[1]            # 512
    A = p["wa3"].shape[1]
    out_w = _round_up(A + 1, 128)     # lane-dense packed output width

    # Fused layer 1: actor || critic share the same LHS -> one [S, 2*H1] weight.
    w1 = jnp.concatenate([p["wa1"], p["wc1"]], axis=1).astype(jnp.bfloat16)
    b1 = jnp.concatenate([p["ba1"], p["bc1"]], axis=1).astype(jnp.float32)

    wa2 = p["wa2"].astype(jnp.bfloat16)
    wc2 = p["wc2"].astype(jnp.bfloat16)

    # Block-diagonal fused head: [ha | hc] @ wh -> [mean | value | 0-pad] in one dot.
    wh = jnp.zeros((2 * H2, out_w), jnp.float32)
    wh = wh.at[:H2, :A].set(p["wa3"]).at[H2:, A:A + 1].set(p["wc3"])
    wh = wh.astype(jnp.bfloat16)
    bh = jnp.zeros((1, out_w), jnp.float32)
    bh = bh.at[:, :A].set(p["ba3"]).at[:, A:A + 1].set(p["bc3"])

    return dict(
        w1=w1, b1=b1, wa2=wa2, ba2=p["ba2"], wc2=wc2, bc2=p["bc2"],
        wh=wh, bh=bh, log_std=p["log_std"],
        state_dim=int(S), hidden1=int(H1), action_dim=int(A), out_w=int(out_w),
    )


def _choose_bm(B, block_b):
    """Batch tile: minimal single step for small batches; 256-aligned tiles with
    >=2 grid steps for large batches (so v7x can use both TensorCores)."""
    Bp8 = _round_up(max(B, 8), 8)
    if Bp8 <= 256:
        return Bp8
    n_steps = max(2, _cdiv(Bp8, block_b))
    return _round_up(_cdiv(Bp8, n_steps), 256)


def _packed_call(state_p, weights, *, bm, out_w, action_dim, vmem_limit_bytes):
    Bp, S = state_p.shape

    def run(buffered_weights):
        def resident(a):
            # Full-array block, same block every grid step (weights stay in VMEM).
            if buffered_weights:
                return pl.BlockSpec(a.shape, lambda i: (0, 0),
                                    pipeline_mode=pl.Buffered(1))
            return pl.BlockSpec(a.shape, lambda i: (0, 0))

        in_specs = [pl.BlockSpec((bm, S), lambda i: (i, 0))] + [
            resident(a) for a in weights
        ]
        out_specs = pl.BlockSpec((bm, out_w), lambda i: (i, 0))

        return pl.pallas_call(
            functools.partial(actor_critic_kernel, action_dim=action_dim),
            out_shape=jax.ShapeDtypeStruct((Bp, out_w), jnp.float32),
            grid=(Bp // bm,),
            in_specs=in_specs,
            out_specs=out_specs,
            compiler_params=pltpu.CompilerParams(
                dimension_semantics=("parallel",),
                vmem_limit_bytes=vmem_limit_bytes,
            ),
        )(state_p, *weights)

    try:
        return run(True)
    except Exception:
        # Fallback if this JAX build rejects single-buffered resident blocks.
        return run(False)


def actor_critic_forward(state, prep, block_b=1024, vmem_limit_bytes=48 << 20):
    """state: [B, state_dim] f32. prep: output of prepare_params().
    Returns (action_mean, action_std, value), all f32."""
    B, S = state.shape
    assert S == prep["state_dim"]
    A = prep["action_dim"]
    out_w = prep["out_w"]

    bm = _choose_bm(B, block_b)
    Bp = _round_up(max(B, 8), bm)
    if Bp != B:
        state_p = jnp.zeros((Bp, S), state.dtype).at[:B].set(state)
    else:
        state_p = state

    weights = (prep["w1"], prep["b1"], prep["wa2"], prep["ba2"],
               prep["wc2"], prep["bc2"], prep["wh"], prep["bh"])

    packed = _packed_call(state_p, weights, bm=bm, out_w=out_w,
                          action_dim=A, vmem_limit_bytes=vmem_limit_bytes)

    mean = packed[:B, :A]
    value = packed[:B, A:A + 1]
    # std does not depend on x: compute once outside the kernel.
    std = jnp.broadcast_to(jnp.exp(prep["log_std"]), (B, A)).astype(mean.dtype)
    return mean, std, value


def init_params(key, state_dim, action_dim, action_std_init):
    """Deterministic synthetic init (PyTorch-like uniform fan-in scaling)."""
    keys = jax.random.split(key, 12)

    def linear(kw, kb, fan_in, fan_out):
        bound = 1.0 / math.sqrt(fan_in)
        w = jax.random.uniform(kw, (fan_in, fan_out), jnp.float32, -bound, bound)
        b = jax.random.uniform(kb, (1, fan_out), jnp.float32, -bound, bound)
        return w, b

    wa1, ba1 = linear(keys[0], keys[1], state_dim, 1024)
    wa2, ba2 = linear(keys[2], keys[3], 1024, 512)
    wa3, ba3 = linear(keys[4], keys[5], 512, action_dim)
    wc1, bc1 = linear(keys[6], keys[7], state_dim, 1024)
    wc2, bc2 = linear(keys[8], keys[9], 1024, 512)
    wc3, bc3 = linear(keys[10], keys[11], 512, 1)
    log_std = jnp.full((1, action_dim), math.log(action_std_init), jnp.float32)

    return dict(
        wa1=wa1, ba1=ba1, wa2=wa2, ba2=ba2, wa3=wa3, ba3=ba3,
        wc1=wc1, bc1=bc1, wc2=wc2, bc2=bc2, wc3=wc3, bc3=bc3,
        log_std=log_std,
    )


def reference_forward(state, p):
    """Pure-JAX reference using the same bf16 weight/activation quantization as
    the kernel (bf16 matmul inputs, f32 accumulation)."""
    bf = lambda a: a.astype(jnp.bfloat16).astype(jnp.float32)
    hi = jax.lax.Precision.HIGHEST
    x = bf(state)

    ha = jnp.tanh(jnp.dot(x, bf(p["wa1"]), precision=hi) + p["ba1"])
    ha = jnp.tanh(jnp.dot(bf(ha), bf(p["wa2"]), precision=hi) + p["ba2"])
    mean = jnp.tanh(jnp.dot(bf(ha), bf(p["wa3"]), precision=hi) + p["ba3"])
    std = jnp.exp(jnp.broadcast_to(p["log_std"], mean.shape))

    hc = jnp.tanh(jnp.dot(x, bf(p["wc1"]), precision=hi) + p["bc1"])
    hc = jnp.tanh(jnp.dot(bf(hc), bf(p["wc2"]), precision=hi) + p["bc2"])
    value = jnp.dot(bf(hc), bf(p["wc3"]), precision=hi) + p["bc3"]
    return mean, std, value


if __name__ == "__main__":
    B = 2
    STATE_DIM = 32
    ACTION_DIM = 8
    ACTION_STD_INIT = 0.5

    key = jax.random.PRNGKey(0)
    k_params, k_state = jax.random.split(key)

    params = init_params(k_params, STATE_DIM, ACTION_DIM, ACTION_STD_INIT)
    prep = prepare_params(params)          # one-time weight fusion / bf16 casts
    state = jax.random.normal(k_state, (B, STATE_DIM), jnp.float32)

    mean, std, value = actor_critic_forward(state, prep)
    jax.block_until_ready((mean, std, value))

    assert mean.shape == (B, ACTION_DIM)
    assert std.shape == (B, ACTION_DIM)
    assert value.shape == (B, 1)

    ref_mean, ref_std, ref_value = reference_forward(state, params)
    # bf16 weights/activations are a deliberate precision trade; compare against the
    # identically-quantized reference so differences are accumulation-order only.
    assert jnp.allclose(mean, ref_mean, atol=2e-3, rtol=2e-2)
    assert jnp.allclose(std, ref_std, atol=1e-5, rtol=1e-5)
    assert jnp.allclose(value, ref_value, atol=2e-3, rtol=2e-2)

    print("KERNEL_OK")
</pallas_src>

<mosaic_0001>
module attributes {stable_mosaic.version = 11 : i64} {
  func.func @actor_critic_kernel(%arg0: i32, %arg1: memref<8x32xf32, #tpu.memory_space<vmem>>, %arg2: memref<32x2048xbf16, #tpu.memory_space<vmem>>, %arg3: memref<1x2048xf32, #tpu.memory_space<vmem>>, %arg4: memref<1024x512xbf16, #tpu.memory_space<vmem>>, %arg5: memref<1x512xf32, #tpu.memory_space<vmem>>, %arg6: memref<1024x512xbf16, #tpu.memory_space<vmem>>, %arg7: memref<1x512xf32, #tpu.memory_space<vmem>>, %arg8: memref<1024x128xbf16, #tpu.memory_space<vmem>>, %arg9: memref<1x128xf32, #tpu.memory_space<vmem>>, %arg10: memref<8x128xf32, #tpu.memory_space<vmem>>) attributes {dimension_semantics = [#tpu.dimension_semantics<parallel>], iteration_bounds = array<i64: 1>, scalar_prefetch = 0 : i64, scratch_operands = 0 : i64, tpu.core_type = #tpu.core_type<tc>, window_params = [{transform_indices = @transform_0, window_bounds = array<i64: 8, 32>}, {pipeline_mode = #tpu.pipeline_mode<synchronous>, transform_indices = @transform_1, window_bounds = array<i64: 32, 2048>}, {pipeline_mode = #tpu.pipeline_mode<synchronous>, transform_indices = @transform_2, window_bounds = array<i64: 1, 2048>}, {pipeline_mode = #tpu.pipeline_mode<synchronous>, transform_indices = @transform_3, window_bounds = array<i64: 1024, 512>}, {pipeline_mode = #tpu.pipeline_mode<synchronous>, transform_indices = @transform_4, window_bounds = array<i64: 1, 512>}, {pipeline_mode = #tpu.pipeline_mode<synchronous>, transform_indices = @transform_5, window_bounds = array<i64: 1024, 512>}, {pipeline_mode = #tpu.pipeline_mode<synchronous>, transform_indices = @transform_6, window_bounds = array<i64: 1, 512>}, {pipeline_mode = #tpu.pipeline_mode<synchronous>, transform_indices = @transform_7, window_bounds = array<i64: 1024, 128>}, {pipeline_mode = #tpu.pipeline_mode<synchronous>, transform_indices = @transform_8, window_bounds = array<i64: 1, 128>}, {transform_indices = @transform_9, window_bounds = array<i64: 8, 128>}]} {
    %c0 = arith.constant 0 : index
    %c0_0 = arith.constant 0 : index
    %0 = vector.load %arg1[%c0, %c0_0] : memref<8x32xf32, #tpu.memory_space<vmem>>, vector<8x32xf32>
    %1 = arith.truncf %0 : vector<8x32xf32> to vector<8x32xbf16>
    %c0_1 = arith.constant 0 : index
    %c0_2 = arith.constant 0 : index
    %2 = vector.load %arg2[%c0_1, %c0_2] : memref<32x2048xbf16, #tpu.memory_space<vmem>>, vector<32x2048xbf16>
    %cst = arith.constant dense<0.000000e+00> : vector<8x2048xf32>
    %3 = tpu.matmul %1, %2, %cst {dimension_numbers = #tpu.dot_dimension_numbers<[1], [0], [0], [1], [0, 0, 1, 1], [], []>} : vector<8x32xbf16>, vector<32x2048xbf16>, vector<8x2048xf32> -> vector<8x2048xf32>
    %c0_3 = arith.constant 0 : index
    %c0_4 = arith.constant 0 : index
    %4 = vector.load %arg3[%c0_3, %c0_4] : memref<1x2048xf32, #tpu.memory_space<vmem>>, vector<1x2048xf32>
    %5 = vector.broadcast %4 : vector<1x2048xf32> to vector<8x2048xf32>
    %6 = arith.addf %3, %5 : vector<8x2048xf32>
    %7 = math.tanh %6 : vector<8x2048xf32>
    %8 = arith.truncf %7 : vector<8x2048xf32> to vector<8x2048xbf16>
    %9 = vector.extract_strided_slice %8 {offsets = [0, 0], sizes = [8, 1024], strides = [1, 1]} : vector<8x2048xbf16> to vector<8x1024xbf16>
    %10 = vector.extract_strided_slice %8 {offsets = [0, 1024], sizes = [8, 1024], strides = [1, 1]} : vector<8x2048xbf16> to vector<8x1024xbf16>
    %c0_5 = arith.constant 0 : index
    %c0_6 = arith.constant 0 : index
    %11 = vector.load %arg4[%c0_5, %c0_6] : memref<1024x512xbf16, #tpu.memory_space<vmem>>, vector<1024x512xbf16>
    %cst_7 = arith.constant dense<0.000000e+00> : vector<8x512xf32>
    %12 = tpu.matmul %9, %11, %cst_7 {dimension_numbers = #tpu.dot_dimension_numbers<[1], [0], [0], [1], [0, 0, 1, 1], [], []>} : vector<8x1024xbf16>, vector<1024x512xbf16>, vector<8x512xf32> -> vector<8x512xf32>
    %c0_8 = arith.constant 0 : index
    %c0_9 = arith.constant 0 : index
    %13 = vector.load %arg5[%c0_8, %c0_9] : memref<1x512xf32, #tpu.memory_space<vmem>>, vector<1x512xf32>
    %14 = vector.broadcast %13 : vector<1x512xf32> to vector<8x512xf32>
    %15 = arith.addf %12, %14 : vector<8x512xf32>
    %16 = math.tanh %15 : vector<8x512xf32>
    %17 = arith.truncf %16 : vector<8x512xf32> to vector<8x512xbf16>
    %c0_10 = arith.constant 0 : index
    %c0_11 = arith.constant 0 : index
    %18 = vector.load %arg6[%c0_10, %c0_11] : memref<1024x512xbf16, #tpu.memory_space<vmem>>, vector<1024x512xbf16>
    %cst_12 = arith.constant dense<0.000000e+00> : vector<8x512xf32>
    %19 = tpu.matmul %10, %18, %cst_12 {dimension_numbers = #tpu.dot_dimension_numbers<[1], [0], [0], [1], [0, 0, 1, 1], [], []>} : vector<8x1024xbf16>, vector<1024x512xbf16>, vector<8x512xf32> -> vector<8x512xf32>
    %c0_13 = arith.constant 0 : index
    %c0_14 = arith.constant 0 : index
    %20 = vector.load %arg7[%c0_13, %c0_14] : memref<1x512xf32, #tpu.memory_space<vmem>>, vector<1x512xf32>
    %21 = vector.broadcast %20 : vector<1x512xf32> to vector<8x512xf32>
    %22 = arith.addf %19, %21 : vector<8x512xf32>
    %23 = math.tanh %22 : vector<8x512xf32>
    %24 = arith.truncf %23 : vector<8x512xf32> to vector<8x512xbf16>
    %25 = tpu.concatenate %17, %24 in 1 : vector<8x512xbf16>, vector<8x512xbf16> -> vector<8x1024xbf16>
    %c0_15 = arith.constant 0 : index
    %c0_16 = arith.constant 0 : index
    %26 = vector.load %arg8[%c0_15, %c0_16] : memref<1024x128xbf16, #tpu.memory_space<vmem>>, vector<1024x128xbf16>
    %cst_17 = arith.constant dense<0.000000e+00> : vector<8x128xf32>
    %27 = tpu.matmul %25, %26, %cst_17 {dimension_numbers = #tpu.dot_dimension_numbers<[1], [0], [0], [1], [0, 0, 1, 1], [], []>} : vector<8x1024xbf16>, vector<1024x128xbf16>, vector<8x128xf32> -> vector<8x128xf32>
    %c0_18 = arith.constant 0 : index
    %c0_19 = arith.constant 0 : index
    %28 = vector.load %arg9[%c0_18, %c0_19] : memref<1x128xf32, #tpu.memory_space<vmem>>, vector<1x128xf32>
    %29 = vector.broadcast %28 : vector<1x128xf32> to vector<8x128xf32>
    %30 = arith.addf %27, %29 : vector<8x128xf32>
    %31 = tpu.iota {dimensions = array<i32: 1>} : vector<8x128xi32>
    %c8_i32 = arith.constant 8 : i32
    %32 = vector.broadcast %c8_i32 : i32 to vector<8x128xi32>
    %33 = arith.cmpi slt, %31, %32 : vector<8x128xi32>
    %34 = math.tanh %30 : vector<8x128xf32>
    %35 = arith.select %33, %34, %30 : vector<8x128xi1>, vector<8x128xf32>
    %c0_20 = arith.constant 0 : index
    %c0_21 = arith.constant 0 : index
    %36 = vector.load %arg10[%c0_20, %c0_21] : memref<8x128xf32, #tpu.memory_space<vmem>>, vector<8x128xf32>
    tpu.vector_store %arg10[%c0_20, %c0_21], %35 {strides = array<i32>} : memref<8x128xf32, #tpu.memory_space<vmem>>, vector<8x128xf32>,
    return
  }
  func.func @transform_0(%arg0: i32) -> (i32, i32) {
    %c0_i32 = arith.constant 0 : i32
    %c0_i32_0 = arith.constant 0 : i32
    return %arg0, %c0_i32 : i32, i32
  }
  func.func @transform_1(%arg0: i32) -> (i32, i32) {
    %c0_i32 = arith.constant 0 : i32
    %c0_i32_0 = arith.constant 0 : i32
    %c0_i32_1 = arith.constant 0 : i32
    return %c0_i32, %c0_i32_0 : i32, i32
  }
  func.func @transform_2(%arg0: i32) -> (i32, i32) {
    %c0_i32 = arith.constant 0 : i32
    %c0_i32_0 = arith.constant 0 : i32
    %c0_i32_1 = arith.constant 0 : i32
    return %c0_i32, %c0_i32_0 : i32, i32
  }
  func.func @transform_3(%arg0: i32) -> (i32, i32) {
    %c0_i32 = arith.constant 0 : i32
    %c0_i32_0 = arith.constant 0 : i32
    %c0_i32_1 = arith.constant 0 : i32
    return %c0_i32, %c0_i32_0 : i32, i32
  }
  func.func @transform_4(%arg0: i32) -> (i32, i32) {
    %c0_i32 = arith.constant 0 : i32
    %c0_i32_0 = arith.constant 0 : i32
    %c0_i32_1 = arith.constant 0 : i32
    return %c0_i32, %c0_i32_0 : i32, i32
  }
  func.func @transform_5(%arg0: i32) -> (i32, i32) {
    %c0_i32 = arith.constant 0 : i32
    %c0_i32_0 = arith.constant 0 : i32
    %c0_i32_1 = arith.constant 0 : i32
    return %c0_i32, %c0_i32_0 : i32, i32
  }
  func.func @transform_6(%arg0: i32) -> (i32, i32) {
    %c0_i32 = arith.constant 0 : i32
    %c0_i32_0 = arith.constant 0 : i32
    %c0_i32_1 = arith.constant 0 : i32
    return %c0_i32, %c0_i32_0 : i32, i32
  }
  func.func @transform_7(%arg0: i32) -> (i32, i32) {
    %c0_i32 = arith.constant 0 : i32
    %c0_i32_0 = arith.constant 0 : i32
    %c0_i32_1 = arith.constant 0 : i32
    return %c0_i32, %c0_i32_0 : i32, i32
  }
  func.func @transform_8(%arg0: i32) -> (i32, i32) {
    %c0_i32 = arith.constant 0 : i32
    %c0_i32_0 = arith.constant 0 : i32
    %c0_i32_1 = arith.constant 0 : i32
    return %c0_i32, %c0_i32_0 : i32, i32
  }
  func.func @transform_9(%arg0: i32) -> (i32, i32) {
    %c0_i32 = arith.constant 0 : i32
    %c0_i32_0 = arith.constant 0 : i32
    return %arg0, %c0_i32 : i32, i32
  }
}

module attributes {stable_mosaic.version = 11 : i64} {
  func.func @actor_critic_kernel(%arg0: i32, %arg1: memref<8x32xf32, #tpu.memory_space<vmem>>, %arg2: memref<32x2048xbf16, #tpu.memory_space<vmem>>, %arg3: memref<1x2048xf32, #tpu.memory_space<vmem>>, %arg4: memref<1024x512xbf16, #tpu.memory_space<vmem>>, %arg5: memref<1x512xf32, #tpu.memory_space<vmem>>, %arg6: memref<1024x512xbf16, #tpu.memory_space<vmem>>, %arg7: memref<1x512xf32, #tpu.memory_space<vmem>>, %arg8: memref<1024x128xbf16, #tpu.memory_space<vmem>>, %arg9: memref<1x128xf32, #tpu.memory_space<vmem>>, %arg10: memref<8x128xf32, #tpu.memory_space<vmem>>) attributes {dimension_semantics = [#tpu.dimension_semantics<parallel>], iteration_bounds = array<i64: 1>, scalar_prefetch = 0 : i64, scratch_operands = 0 : i64, tpu.core_type = #tpu.core_type<tc>, window_params = [{transform_indices = @transform_0, window_bounds = array<i64: 8, 32>}, {pipeline_mode = #tpu.pipeline_mode<synchronous>, transform_indices = @transform_1, window_bounds = array<i64: 32, 2048>}, {pipeline_mode = #tpu.pipeline_mode<synchronous>, transform_indices = @transform_2, window_bounds = array<i64: 1, 2048>}, {pipeline_mode = #tpu.pipeline_mode<synchronous>, transform_indices = @transform_3, window_bounds = array<i64: 1024, 512>}, {pipeline_mode = #tpu.pipeline_mode<synchronous>, transform_indices = @transform_4, window_bounds = array<i64: 1, 512>}, {pipeline_mode = #tpu.pipeline_mode<synchronous>, transform_indices = @transform_5, window_bounds = array<i64: 1024, 512>}, {pipeline_mode = #tpu.pipeline_mode<synchronous>, transform_indices = @transform_6, window_bounds = array<i64: 1, 512>}, {pipeline_mode = #tpu.pipeline_mode<synchronous>, transform_indices = @transform_7, window_bounds = array<i64: 1024, 128>}, {pipeline_mode = #tpu.pipeline_mode<synchronous>, transform_indices = @transform_8, window_bounds = array<i64: 1, 128>}, {transform_indices = @transform_9, window_bounds = array<i64: 8, 128>}]} {
    %c0 = arith.constant 0 : index
    %c0_0 = arith.constant 0 : index
    %0 = vector.load %arg1[%c0, %c0_0] : memref<8x32xf32, #tpu.memory_space<vmem>>, vector<8x32xf32>
    %1 = arith.truncf %0 : vector<8x32xf32> to vector<8x32xbf16>
    %c0_1 = arith.constant 0 : index
    %c0_2 = arith.constant 0 : index
    %2 = vector.load %arg2[%c0_1, %c0_2] : memref<32x2048xbf16, #tpu.memory_space<vmem>>, vector<32x2048xbf16>
    %cst = arith.constant dense<0.000000e+00> : vector<8x2048xf32>
    %3 = tpu.matmul %1, %2, %cst {dimension_numbers = #tpu.dot_dimension_numbers<[1], [0], [0], [1], [0, 0, 1, 1], [], []>} : vector<8x32xbf16>, vector<32x2048xbf16>, vector<8x2048xf32> -> vector<8x2048xf32>
    %c0_3 = arith.constant 0 : index
    %c0_4 = arith.constant 0 : index
    %4 = vector.load %arg3[%c0_3, %c0_4] : memref<1x2048xf32, #tpu.memory_space<vmem>>, vector<1x2048xf32>
    %5 = vector.broadcast %4 : vector<1x2048xf32> to vector<8x2048xf32>
    %6 = arith.addf %3, %5 : vector<8x2048xf32>
    %7 = math.tanh %6 : vector<8x2048xf32>
    %8 = arith.truncf %7 : vector<8x2048xf32> to vector<8x2048xbf16>
    %9 = vector.extract_strided_slice %8 {offsets = [0, 0], sizes = [8, 1024], strides = [1, 1]} : vector<8x2048xbf16> to vector<8x1024xbf16>
    %10 = vector.extract_strided_slice %8 {offsets = [0, 1024], sizes = [8, 1024], strides = [1, 1]} : vector<8x2048xbf16> to vector<8x1024xbf16>
    %c0_5 = arith.constant 0 : index
    %c0_6 = arith.constant 0 : index
    %11 = vector.load %arg4[%c0_5, %c0_6] : memref<1024x512xbf16, #tpu.memory_space<vmem>>, vector<1024x512xbf16>
    %cst_7 = arith.constant dense<0.000000e+00> : vector<8x512xf32>
    %12 = tpu.matmul %9, %11, %cst_7 {dimension_numbers = #tpu.dot_dimension_numbers<[1], [0], [0], [1], [0, 0, 1, 1], [], []>} : vector<8x1024xbf16>, vector<1024x512xbf16>, vector<8x512xf32> -> vector<8x512xf32>
    %c0_8 = arith.constant 0 : index
    %c0_9 = arith.constant 0 : index
    %13 = vector.load %arg5[%c0_8, %c0_9] : memref<1x512xf32, #tpu.memory_space<vmem>>, vector<1x512xf32>
    %14 = vector.broadcast %13 : vector<1x512xf32> to vector<8x512xf32>
    %15 = arith.addf %12, %14 : vector<8x512xf32>
    %16 = math.tanh %15 : vector<8x512xf32>
    %17 = arith.truncf %16 : vector<8x512xf32> to vector<8x512xbf16>
    %c0_10 = arith.constant 0 : index
    %c0_11 = arith.constant 0 : index
    %18 = vector.load %arg6[%c0_10, %c0_11] : memref<1024x512xbf16, #tpu.memory_space<vmem>>, vector<1024x512xbf16>
    %cst_12 = arith.constant dense<0.000000e+00> : vector<8x512xf32>
    %19 = tpu.matmul %10, %18, %cst_12 {dimension_numbers = #tpu.dot_dimension_numbers<[1], [0], [0], [1], [0, 0, 1, 1], [], []>} : vector<8x1024xbf16>, vector<1024x512xbf16>, vector<8x512xf32> -> vector<8x512xf32>
    %c0_13 = arith.constant 0 : index
    %c0_14 = arith.constant 0 : index
    %20 = vector.load %arg7[%c0_13, %c0_14] : memref<1x512xf32, #tpu.memory_space<vmem>>, vector<1x512xf32>
    %21 = vector.broadcast %20 : vector<1x512xf32> to vector<8x512xf32>
    %22 = arith.addf %19, %21 : vector<8x512xf32>
    %23 = math.tanh %22 : vector<8x512xf32>
    %24 = arith.truncf %23 : vector<8x512xf32> to vector<8x512xbf16>
    %25 = tpu.concatenate %17, %24 in 1 : vector<8x512xbf16>, vector<8x512xbf16> -> vector<8x1024xbf16>
    %c0_15 = arith.constant 0 : index
    %c0_16 = arith.constant 0 : index
    %26 = vector.load %arg8[%c0_15, %c0_16] : memref<1024x128xbf16, #tpu.memory_space<vmem>>, vector<1024x128xbf16>
    %cst_17 = arith.constant dense<0.000000e+00> : vector<8x128xf32>
    %27 = tpu.matmul %25, %26, %cst_17 {dimension_numbers = #tpu.dot_dimension_numbers<[1], [0], [0], [1], [0, 0, 1, 1], [], []>} : vector<8x1024xbf16>, vector<1024x128xbf16>, vector<8x128xf32> -> vector<8x128xf32>
    %c0_18 = arith.constant 0 : index
    %c0_19 = arith.constant 0 : index
    %28 = vector.load %arg9[%c0_18, %c0_19] : memref<1x128xf32, #tpu.memory_space<vmem>>, vector<1x128xf32>
    %29 = vector.broadcast %28 : vector<1x128xf32> to vector<8x128xf32>
    %30 = arith.addf %27, %29 : vector<8x128xf32>
    %31 = tpu.iota {dimensions = array<i32: 1>} : vector<8x128xi32>
    %c8_i32 = arith.constant 8 : i32
    %32 = vector.broadcast %c8_i32 : i32 to vector<8x128xi32>
    %33 = arith.cmpi slt, %31, %32 : vector<8x128xi32>
    %34 = math.tanh %30 : vector<8x128xf32>
    %35 = arith.select %33, %34, %30 : vector<8x128xi1>, vector<8x128xf32>
    %c0_20 = arith.constant 0 : index
    %c0_21 = arith.constant 0 : index
    %36 = vector.load %arg10[%c0_20, %c0_21] : memref<8x128xf32, #tpu.memory_space<vmem>>, vector<8x128xf32>
    tpu.vector_store %arg10[%c0_20, %c0_21], %35 {strides = array<i32>} : memref<8x128xf32, #tpu.memory_space<vmem>>, vector<8x128xf32>,
    return
  }
  func.func @transform_0(%arg0: i32) -> (i32, i32) {
    %c0_i32 = arith.constant 0 : i32
    %c0_i32_0 = arith.constant 0 : i32
    return %arg0, %c0_i32 : i32, i32
  }
  func.func @transform_1(%arg0: i32) -> (i32, i32) {
    %c0_i32 = arith.constant 0 : i32
    %c0_i32_0 = arith.constant 0 : i32
    %c0_i32_1 = arith.constant 0 : i32
    return %c0_i32, %c0_i32_0 : i32, i32
  }
  func.func @transform_2(%arg0: i32) -> (i32, i32) {
    %c0_i32 = arith.constant 0 : i32
    %c0_i32_0 = arith.constant 0 : i32
    %c0_i32_1 = arith.constant 0 : i32
    return %c0_i32, %c0_i32_0 : i32, i32
  }
  func.func @transform_3(%arg0: i32) -> (i32, i32) {
    %c0_i32 = arith.constant 0 : i32
    %c0_i32_0 = arith.constant 0 : i32
    %c0_i32_1 = arith.constant 0 : i32
    return %c0_i32, %c0_i32_0 : i32, i32
  }
  func.func @transform_4(%arg0: i32) -> (i32, i32) {
    %c0_i32 = arith.constant 0 : i32
    %c0_i32_0 = arith.constant 0 : i32
    %c0_i32_1 = arith.constant 0 : i32
    return %c0_i32, %c0_i32_0 : i32, i32
  }
  func.func @transform_5(%arg0: i32) -> (i32, i32) {
    %c0_i32 = arith.constant 0 : i32
    %c0_i32_0 = arith.constant 0 : i32
    %c0_i32_1 = arith.constant 0 : i32
    return %c0_i32, %c0_i32_0 : i32, i32
  }
  func.func @transform_6(%arg0: i32) -> (i32, i32) {
    %c0_i32 = arith.constant 0 : i32
    %c0_i32_0 = arith.constant 0 : i32
    %c0_i32_1 = arith.constant 0 : i32
    return %c0_i32, %c0_i32_0 : i32, i32
  }
  func.func @transform_7(%arg0: i32) -> (i32, i32) {
    %c0_i32 = arith.constant 0 : i32
    %c0_i32_0 = arith.constant 0 : i32
    %c0_i32_1 = arith.constant 0 : i32
    return %c0_i32, %c0_i32_0 : i32, i32
  }
  func.func @transform_8(%arg0: i32) -> (i32, i32) {
    %c0_i32 = arith.constant 0 : i32
    %c0_i32_0 = arith.constant 0 : i32
    %c0_i32_1 = arith.constant 0 : i32
    return %c0_i32, %c0_i32_0 : i32, i32
  }
  func.func @transform_9(%arg0: i32) -> (i32, i32) {
    %c0_i32 = arith.constant 0 : i32
    %c0_i32_0 = arith.constant 0 : i32
    return %arg0, %c0_i32 : i32, i32
  }
}

</mosaic_0001>

<bundles_post_ra>
// kernel: tpu_custom_call.1
= control target key start
LH: loop header
LB: loop body
LE: loop exit
PB: predicated region body
PF: predicated region fallthrough
CT: control target
= control target key end

     0   :  { %14 = vsyncpa [#allocation3], 0  ;;  %s7329_s0 = inlined_call_operand.hbm [shape: f32[8,32], index: 0, kind: input, shape index: {}]   ;;  %s7330_s1 = inlined_call_operand.hbm [shape: bf16[32,2048], index: 1, kind: input, shape index: {}]   ;;  %s7331_s2 = inlined_call_operand.hbm [shape: f32[1,2048], index: 2, kind: input, shape index: {}]   ;;  %s7332_s3 = inlined_call_operand.hbm [shape: bf16[1024,512], index: 3, kind: input, shape index: {}]   ;;  %s7333_s4 = inlined_call_operand.vmem [shape: f32[1,512], index: 4, kind: input, shape index: {}]   ;;  %s7334_s5 = inlined_call_operand.hbm [shape: bf16[1024,512], index: 5, kind: input, shape index: {}]   ;;  %s7335_s6 = inlined_call_operand.vmem [shape: f32[1,512], index: 6, kind: input, shape index: {}]   ;;  %s7336_s7 = inlined_call_operand.hbm [shape: bf16[1024,128], index: 7, kind: input, shape index: {}]   ;;  %s7337_s8 = inlined_call_operand.vmem [shape: f32[1,128], index: 8, kind: input, shape index: {}]   ;;  %s7338_s9 = inlined_call_operand.hbm [shape: f32[8,128], index: 9, kind: output, shape index: {}]  }
   0x1   :  { %15 = vsyncpa [#allocation6], 0 }
   0x2   :  { %16 = vsyncpa [#allocation9], 0 }
   0x3   :  { %17 = vsyncpa [#allocation12], 0 }
   0x4   :  { %18 = vsyncpa [#allocation4], 0  ;;  %s6996_s30 = smov [#allocation5]  }
   0x5   :  { %s34_s10 = sshll.u32 %s6996_s30, 4  ;;  %s35_s10 = int_to_ptr.vmem [resolvable:$true] %s34_s10 }
   0x6   :  { %s6854_s11 = scalar_lea.vmem %s35_s10, 4096  ;;  %p6859_p1 = scmp.lt.s32.totalorder %s35_s10, %s35_s10 }
   0x7   :  { %p6855_p0 = scmp.ne.s32.totalorder %s35_s10, %s6854_s11  ;;  %p6860_p2 = scmp.lt.s32.totalorder %s6854_s11, %s6854_s11 }
   0x9   :  { %p6861_p3 = por %p6860_p2, %p6859_p1 }
   0xb   :  { %p6862_p4 = pnand %p6861_p3, %p6855_p0 }
   0xd   :  { %6865 = shalt.err (!%p6862_p4)
}
   0xe   :  { %s6997_s12 = smov 1024   ;;  %s6998_s13 = smov 64  }
   0xf   :  { %40 = dma.hbm_to_vmem [thread:$0]  %s7330_s1, 4096, %s35_s10, [#allocation6], %s6997_s12, %s6997_s12, %s6998_s13  }
  0x10   :  { %s6999_s16 = smov [#allocation8]  }
  0x11   :  { %s56_s17 = sshll.u32 %s6999_s16, 4  ;;  %s57_s17 = int_to_ptr.vmem [resolvable:$true] %s56_s17 }
  0x12   :  { %s6874_s18 = scalar_lea.vmem %s57_s17, 32768  ;;  %p6879_p6 = scmp.lt.s32.totalorder %s57_s17, %s57_s17 }
  0x13   :  { %p6875_p5 = scmp.ne.s32.totalorder %s57_s17, %s6874_s18  ;;  %p6880_p7 = scmp.lt.s32.totalorder %s6874_s18, %s6874_s18 }
  0x15   :  { %p6881_p8 = por %p6880_p7, %p6879_p6 }
  0x17   :  { %p6882_p9 = pnand %p6881_p8, %p6875_p5 }
  0x19   :  { %6885 = shalt.err (!%p6882_p9)
}
  0x1a   :  { %s7000_s19 = smov 256   ;;  %s7001_s20 = smov 16  }
  0x1b   :  { %62 = dma.hbm_to_vmem [thread:$0]  %s7332_s3, 32768, %s57_s17, [#allocation9], %s7000_s19, %s7000_s19, %s7001_s20  }
  0x1c   :  { %s7002_s1 = smov [#allocation2]   ;;  %s7003_s24 = smov [#allocation7]  }
  0x1d   :  { %s25_s23 = sshll.u32 %s7002_s1, 4  ;;  %s47_s25 = sshll.u32 %s7003_s24, 4  ;;  %s26_s23 = int_to_ptr.vmem [resolvable:$true] %s25_s23  ;;  %s48_s25 = int_to_ptr.vmem [resolvable:$true] %s47_s25 }
  0x1e   :  { %s6894_s26 = scalar_lea.vmem %s26_s23, 128  ;;  %p6899_p11 = scmp.lt.s32.totalorder %s26_s23, %s26_s23 }
  0x1f   :  { %p6895_p10 = scmp.ne.s32.totalorder %s26_s23, %s6894_s26  ;;  %p6900_p12 = scmp.lt.s32.totalorder %s6894_s26, %s6894_s26 }
  0x21   :  { %p6901_p13 = por %p6900_p12, %p6899_p11 }
  0x23   :  { %p6902_p0 = pnand %p6901_p13, %p6895_p10 }
  0x25   :  { %6905 = shalt.err (!%p6902_p0)
}
  0x26   :  { %28 = dma.hbm_to_vmem [thread:$0]  %s7329_s0, 128, %s26_s23, [#allocation3]  }
  0x27   :  { %s6914_s29 = scalar_lea.vmem %s48_s25, 256  ;;  %p6919_p2 = scmp.lt.s32.totalorder %s48_s25, %s48_s25 }
  0x28   :  { %p6915_p1 = scmp.ne.s32.totalorder %s48_s25, %s6914_s29  ;;  %p6920_p3 = scmp.lt.s32.totalorder %s6914_s29, %s6914_s29 }
  0x2a   :  { %p6921_p4 = por %p6920_p3, %p6919_p2 }
  0x2c   :  { %p6922_p5 = pnand %p6921_p4, %p6915_p1 }
  0x2e   :  { %6925 = shalt.err (!%p6922_p5)
}
  0x2f   :  { %50 = dma.hbm_to_vmem [thread:$0]  %s7331_s2, 256, %s48_s25, [#allocation6]  }
  0x30   :  { %s7004_s10 = smov [#allocation10]   ;;  %s7005_s12 = smov [#allocation11]  }
  0x31   :  { %s70_s11 = sshll.u32 %s7004_s10, 4  ;;  %s84_s14 = sshll.u32 %s7005_s12, 4  ;;  %s71_s11 = int_to_ptr.vmem [resolvable:$true] %s70_s11  ;;  %s85_s14 = int_to_ptr.vmem [resolvable:$true] %s84_s14 }
  0x32   :  { %s6934_s15 = scalar_lea.vmem %s71_s11, 32768  ;;  %p6939_p7 = scmp.lt.s32.totalorder %s71_s11, %s71_s11 }
  0x33   :  { %p6935_p6 = scmp.ne.s32.totalorder %s71_s11, %s6934_s15  ;;  %p6940_p8 = scmp.lt.s32.totalorder %s6934_s15, %s6934_s15 }
  0x35   :  { %p6941_p9 = por %p6940_p8, %p6939_p7 }
  0x37   :  { %p6942_p10 = pnand %p6941_p9, %p6935_p6 }
  0x39   :  { %6945 = shalt.err (!%p6942_p10)
}
  0x3a   :  { %76 = dma.hbm_to_vmem [thread:$0]  %s7334_s5, 32768, %s71_s11, [#allocation9], %s7000_s19, %s7000_s19, %s7001_s20  }
  0x3b   :  { %s6954_s2 = scalar_lea.vmem %s85_s14, 8192  ;;  %p6959_p12 = scmp.lt.s32.totalorder %s85_s14, %s85_s14 }
  0x3c   :  { %p6955_p11 = scmp.ne.s32.totalorder %s85_s14, %s6954_s2  ;;  %p6960_p13 = scmp.lt.s32.totalorder %s6954_s2, %s6954_s2 }
  0x3e   :  { %p6961_p0 = por %p6960_p13, %p6959_p12 }
  0x40   :  { %p6962_p1 = pnand %p6961_p0, %p6955_p11 }
  0x42   :  { %6965 = shalt.err (!%p6962_p1)
}
  0x43   :  { %s7006_s17 = smov 4  }
  0x44   :  { %90 = dma.hbm_to_vmem [thread:$0]  %s7336_s7, 8192, %s85_s14, [#allocation12], %s6998_s13, %s6998_s13, %s7006_s17  }
  0x45   :  { %6986 = dma.done.wait [#allocation3], 128  }
  0x46   :  { %6987 = vsyncadd [#allocation3], 4294967168 }
  0x47   :  { %6988 = dma.done.wait [#allocation6], 4352  }
  0x48   :  { %6989 = vsyncadd [#allocation6], 4294962944 }
  0x49   :  { %6990 = dma.done.wait [#allocation9], 65536  }
  0x4a   :  { %6991 = vsyncadd [#allocation9], 4294901760 }
  0x4b   :  { %6992 = dma.done.wait [#allocation12], 8192  }
  0x4c   :  { %6993 = vsyncadd [#allocation12], 4294959104  ;;  %v7007_v0 = vmov 0   ;;  %v130_v1 = vld [vmem:[#allocation5 + $0x80] sm:$0xff]  ;;  %v131_v3 = vld [vmem:[#allocation5 + $0x88] sm:$0xff]  ;;  %vm390_vm0 = vcmask 261120  }
  0x4d   :  { %426 = vmatprep.mubr.bf16.mxu0 %v7007_v0  ;;  %467 = vmatprep.mubr.bf16.mxu1 %v7007_v0  ;;  %v138_v2 = vld [vmem:[#allocation5 + $0xc0] sm:$0xff]  ;;  %v139_v5 = vld [vmem:[#allocation5 + $0xc8] sm:$0xff]  ;;  %v132_v15 = vld [vmem:[#allocation5 + $0x90] sm:$0xff] }
  0x4e   :  { %v5262_v4 = vcombine.high %v130_v1, %v138_v2  ;;  %v5261_v6 = vcombine.low %v130_v1, %v138_v2  ;;  %v114_v7 = vld [vmem:[#allocation5] sm:$0xff]  ;;  %v5264_v9 = vcombine.high %v131_v3, %v139_v5  ;;  %v5263_v10 = vcombine.low %v131_v3, %v139_v5  ;;  %v115_v12 = vld [vmem:[#allocation5 + $0x8] sm:$0xff]  ;;  %v140_v16 = vld [vmem:[#allocation5 + $0xd0] sm:$0xff] }
  0x4f   :  { %v122_v8 = vld [vmem:[#allocation5 + $0x40] sm:$0xff]  ;;  %v123_v13 = vld [vmem:[#allocation5 + $0x48] sm:$0xff]  ;;  %v133_v17 = vld [vmem:[#allocation5 + $0x98] sm:$0xff]  ;;  %v5266_v22 = vcombine.high %v132_v15, %v140_v16  ;;  %v5265_v29 = vcombine.low %v132_v15, %v140_v16 }
  0x50   :  { %v5246_v11 = vcombine.high %v114_v7, %v122_v8  ;;  %406 = vmatprep.subr.bf16.mxu0 %v5262_v4  ;;  %v5248_v14 = vcombine.high %v115_v12, %v123_v13  ;;  %447 = vmatprep.subr.bf16.mxu1 %v5264_v9  ;;  %v5245_v18 = vcombine.low %v114_v7, %v122_v8  ;;  %v112_v19 = vld [vmem:[#allocation2] sm:$0xff]  ;;  %v116_v24 = vld [vmem:[#allocation5 + $0x10] sm:$0xff]  ;;  %v134_v33 = vld [vmem:[#allocation5 + $0xa0] sm:$0xff] }
  0x51   :  { %407 = vmatpush1.bf16.msra.mxu0 %v5261_v6  ;;  %v141_v20 = vld [vmem:[#allocation5 + $0xd8] sm:$0xff]  ;;  %448 = vmatpush1.bf16.msra.mxu1 %v5263_v10  ;;  %v5247_v21 = vcombine.low %v115_v12, %v123_v13  ;;  %v124_v25 = vld [vmem:[#allocation5 + $0x50] sm:$0xff]  ;;  %v7088_v26 = vpack.c.bf16 %v112_v19, %v112_v19  ;;  %v142_v34 = vld [vmem:[#allocation5 + $0xe0] sm:$0xff] }
  0x52   :  { %408 = vmatprep.subr.bf16.mxu0 %v5246_v11  ;;  %449 = vmatprep.subr.bf16.mxu1 %v5248_v14  ;;  %v5268_v23 = vcombine.high %v133_v17, %v141_v20  ;;  %v117_v27 = vld [vmem:[#allocation5 + $0x18] sm:$0xff]  ;;  %v5267_v30 = vcombine.low %v133_v17, %v141_v20  ;;  %v5250_v31 = vcombine.high %v116_v24, %v124_v25  ;;  %v135_v35 = vld [vmem:[#allocation5 + $0xa8] sm:$0xff]  ;;  %v118_v40 = vld [vmem:[#allocation5 + $0x20] sm:$0xff] }
  0x53   :  { %v125_v28 = vld [vmem:[#allocation5 + $0x58] sm:$0xff]  ;;  %v143_v36 = vld [vmem:[#allocation5 + $0xe8] sm:$0xff]  ;;  %v5249_v37 = vcombine.low %v116_v24, %v124_v25  ;;  %v5270_v39 = vcombine.high %v134_v33, %v142_v34  ;;  %v126_v42 = vld [vmem:[#allocation5 + $0x60] sm:$0xff]  ;;  %v5269_v45 = vcombine.low %v134_v33, %v142_v34 }
  0x54   :  { %v5252_v32 = vcombine.high %v117_v27, %v125_v28  ;;  %v5251_v38 = vcombine.low %v117_v27, %v125_v28  ;;  %v5272_v41 = vcombine.high %v135_v35, %v143_v36  ;;  %v119_v43 = vld [vmem:[#allocation5 + $0x28] sm:$0xff]  ;;  %v5271_v46 = vcombine.low %v135_v35, %v143_v36  ;;  %v136_v48 = vld [vmem:[#allocation5 + $0xb0] sm:$0xff]  ;;  %v137_v51 = vld [vmem:[#allocation5 + $0xb8] sm:$0xff] }
  0x55   :  { %409 = vmatpush1.bf16.msra.mxu0 %v5245_v18  ;;  %450 = vmatpush1.bf16.msra.mxu1 %v5247_v21  ;;  %v127_v44 = vld [vmem:[#allocation5 + $0x68] sm:$0xff]  ;;  %v5254_v47 = vcombine.high %v118_v40, %v126_v42  ;;  %v144_v50 = vld [vmem:[#allocation5 + $0xf0] sm:$0xff]  ;;  %v145_v52 = vld [vmem:[#allocation5 + $0xf8] sm:$0xff]  ;;  %v5253_v53 = vcombine.low %v118_v40, %v126_v42 }
  0x56   :  { %488 = vmatprep.subr.bf16.mxu0 %v5266_v22  ;;  %529 = vmatprep.subr.bf16.mxu1 %v5268_v23  ;;  %v5256_v49 = vcombine.high %v119_v43, %v127_v44  ;;  %v5255_v54 = vcombine.low %v119_v43, %v127_v44  ;;  %v5274_v55 = vcombine.high %v136_v48, %v144_v50  ;;  %v120_v56 = vld [vmem:[#allocation5 + $0x30] sm:$0xff]  ;;  %v121_v59 = vld [vmem:[#allocation5 + $0x38] sm:$0xff] }
  0x57   :  { %v5276_v57 = vcombine.high %v137_v51, %v145_v52  ;;  %v128_v58 = vld [vmem:[#allocation5 + $0x70] sm:$0xff]  ;;  %v129_v60 = vld [vmem:[#allocation5 + $0x78] sm:$0xff]  ;;  %v5273_v61 = vcombine.low %v136_v48, %v144_v50  ;;  %v5275_v62 = vcombine.low %v137_v51, %v145_v52 }
  0x58   :  { %5277 = vmatmul.mubr.msk.bf16.vlgmr.msra.gmra.mxu0 %vm390_vm0, %v7088_v26  ;;  %5278 = vmatmul.mubr.msk.bf16.vlgmr.msra.gmra.mxu1 %vm390_vm0, %v7088_v26  ;;  %v5258_v63 = vcombine.high %v120_v56, %v128_v58  ;;  %v5260_v1 = vcombine.high %v121_v59, %v129_v60  ;;  %v5257_v2 = vcombine.low %v120_v56, %v128_v58  ;;  %v5965_v4 = vld [vmem:[#allocation8 + $0xe4] ss:$16 sps:$4 sm:$0xff]   ;;  %v5963_v6 = vld [vmem:[#allocation8 + $0xe0] ss:$16 sps:$4 sm:$0xff]  }
  0x59   :  { %489 = vmatpush1.bf16.msra.mxu0 %v5265_v29  ;;  %530 = vmatpush1.bf16.msra.mxu1 %v5267_v30  ;;  %v5259_v3 = vcombine.low %v121_v59, %v129_v60  ;;  %v5968_v5 = vld [vmem:[#allocation8 + $0x2e4] ss:$16 sps:$4 sm:$0xff]   ;;  %v5966_v7 = vld [vmem:[#allocation8 + $0x2e0] ss:$16 sps:$4 sm:$0xff]  }
  0x5a   :  { %490 = vmatprep.subr.bf16.mxu0 %v5250_v31  ;;  %531 = vmatprep.subr.bf16.mxu1 %v5252_v32  ;;  %v5971_v8 = vld [vmem:[#allocation8 + $0xc4] ss:$16 sps:$4 sm:$0xff]   ;;  %v5969_v10 = vld [vmem:[#allocation8 + $0xc0] ss:$16 sps:$4 sm:$0xff]  }
  0x5b   :  { %508 = vmatprep.mubr.bf16.mxu0 %v7007_v0  ;;  %549 = vmatprep.mubr.bf16.mxu1 %v7007_v0  ;;  %v5974_v9 = vld [vmem:[#allocation8 + $0x2c4] ss:$16 sps:$4 sm:$0xff]   ;;  %v5972_v11 = vld [vmem:[#allocation8 + $0x2c0] ss:$16 sps:$4 sm:$0xff]  }
  0x5c   :  { %v5975_v12 = vld [vmem:[#allocation8 + $0xa0] ss:$16 sps:$4 sm:$0xff]   ;;  %v5980_v13 = vld [vmem:[#allocation8 + $0x2a4] ss:$16 sps:$4 sm:$0xff]  }
  0x5d   :  { %491 = vmatpush1.bf16.msra.mxu0 %v5249_v37  ;;  %532 = vmatpush1.bf16.msra.mxu1 %v5251_v38  ;;  %v5978_v14 = vld [vmem:[#allocation8 + $0x2a0] ss:$16 sps:$4 sm:$0xff]   ;;  %v5983_v15 = vld [vmem:[#allocation8 + $0x84] ss:$16 sps:$4 sm:$0xff]  }
  0x5e   :  { %570 = vmatprep.subr.bf16.mxu0 %v5270_v39  ;;  %611 = vmatprep.subr.bf16.mxu1 %v5272_v41  ;;  %v5986_v16 = vld [vmem:[#allocation8 + $0x284] ss:$16 sps:$4 sm:$0xff]   ;;  %v5981_v17 = vld [vmem:[#allocation8 + $0x80] ss:$16 sps:$4 sm:$0xff]  }
  0x5f   :  { %v5984_v18 = vld [vmem:[#allocation8 + $0x280] ss:$16 sps:$4 sm:$0xff]   ;;  %v5989_v19 = vld [vmem:[#allocation8 + $0x64] ss:$16 sps:$4 sm:$0xff]  }
  0x60   :  { %5279 = vmatmul.mubr.msk.bf16.vlgmr.msra.gmra.mxu0 %vm390_vm0, %v7088_v26  ;;  %5280 = vmatmul.mubr.msk.bf16.vlgmr.msra.gmra.mxu1 %vm390_vm0, %v7088_v26  ;;  %v5992_v20 = vld [vmem:[#allocation8 + $0x264] ss:$16 sps:$4 sm:$0xff]   ;;  %v5987_v21 = vld [vmem:[#allocation8 + $0x60] ss:$16 sps:$4 sm:$0xff]  }
  0x61   :  { %571 = vmatpush1.bf16.msra.mxu0 %v5269_v45  ;;  %612 = vmatpush1.bf16.msra.mxu1 %v5271_v46  ;;  %v5990_v22 = vld [vmem:[#allocation8 + $0x260] ss:$16 sps:$4 sm:$0xff]   ;;  %v5995_v23 = vld [vmem:[#allocation8 + $0x44] ss:$16 sps:$4 sm:$0xff]  }
  0x62   :  { %572 = vmatprep.subr.bf16.mxu0 %v5254_v47  ;;  %613 = vmatprep.subr.bf16.mxu1 %v5256_v49  ;;  %v5998_v24 = vld [vmem:[#allocation8 + $0x244] ss:$16 sps:$4 sm:$0xff]   ;;  %v5993_v25 = vld [vmem:[#allocation8 + $0x40] ss:$16 sps:$4 sm:$0xff]  }
  0x63   :  { %590 = vmatprep.mubr.bf16.mxu0 %v7007_v0  ;;  %631 = vmatprep.mubr.bf16.mxu1 %v7007_v0  ;;  %v6001_v27 = vld [vmem:[#allocation8 + $0x24] ss:$16 sps:$4 sm:$0xff]   ;;  %v5999_v29 = vld [vmem:[#allocation8 + $0x20] ss:$16 sps:$4 sm:$0xff]  }
  0x64   :  { %v6004_v28 = vld [vmem:[#allocation8 + $0x224] ss:$16 sps:$4 sm:$0xff]   ;;  %v6002_v30 = vld [vmem:[#allocation8 + $0x220] ss:$16 sps:$4 sm:$0xff]  }
  0x65   :  { %573 = vmatpush1.bf16.msra.mxu0 %v5253_v53  ;;  %614 = vmatpush1.bf16.msra.mxu1 %v5255_v54  ;;  %v6007_v31 = vld [vmem:[#allocation8 + $0x4] ss:$16 sps:$4 sm:$0xff]   ;;  %v6005_v33 = vld [vmem:[#allocation8] ss:$16 sps:$4 sm:$0xff]  }
  0x66   :  { %652 = vmatprep.subr.bf16.mxu0 %v5274_v55  ;;  %693 = vmatprep.subr.bf16.mxu1 %v5276_v57  ;;  %v6010_v32 = vld [vmem:[#allocation8 + $0x204] ss:$16 sps:$4 sm:$0xff]   ;;  %v6008_v34 = vld [vmem:[#allocation8 + $0x200] ss:$16 sps:$4 sm:$0xff]  }
  0x67   :  { %v6013_v35 = vld [vmem:[#allocation8 + $0x1e4] ss:$16 sps:$4 sm:$0xff]   ;;  %v6011_v37 = vld [vmem:[#allocation8 + $0x1e0] ss:$16 sps:$4 sm:$0xff]  }
  0x68   :  { %5281 = vmatmul.mubr.msk.bf16.vlgmr.msra.gmra.mxu0 %vm390_vm0, %v7088_v26  ;;  %5282 = vmatmul.mubr.msk.bf16.vlgmr.msra.gmra.mxu1 %vm390_vm0, %v7088_v26  ;;  %v6016_v36 = vld [vmem:[#allocation8 + $0x3e4] ss:$16 sps:$4 sm:$0xff]   ;;  %v6014_v38 = vld [vmem:[#allocation8 + $0x3e0] ss:$16 sps:$4 sm:$0xff]  }
  0x69   :  { %653 = vmatpush1.bf16.msra.mxu0 %v5273_v61  ;;  %694 = vmatpush1.bf16.msra.mxu1 %v5275_v62  ;;  %v6019_v39 = vld [vmem:[#allocation8 + $0x1c4] ss:$16 sps:$4 sm:$0xff]   ;;  %v6017_v41 = vld [vmem:[#allocation8 + $0x1c0] ss:$16 sps:$4 sm:$0xff]  }
  0x6a   :  { %654 = vmatprep.subr.bf16.mxu0 %v5258_v63  ;;  %695 = vmatprep.subr.bf16.mxu1 %v5260_v1  ;;  %v6022_v40 = vld [vmem:[#allocation8 + $0x3c4] ss:$16 sps:$4 sm:$0xff]   ;;  %v6020_v42 = vld [vmem:[#allocation8 + $0x3c0] ss:$16 sps:$4 sm:$0xff]  }
  0x6b   :  { %672 = vmatprep.mubr.bf16.mxu0 %v7007_v0  ;;  %713 = vmatprep.mubr.bf16.mxu1 %v7007_v0  ;;  %v5977_v0 = vld [vmem:[#allocation8 + $0xa4] ss:$16 sps:$4 sm:$0xff]   ;;  %v6023_v45 = vld [vmem:[#allocation8 + $0x1a0] ss:$16 sps:$4 sm:$0xff]  }
  0x6c   :  { %v6025_v43 = vld [vmem:[#allocation8 + $0x1a4] ss:$16 sps:$4 sm:$0xff]   ;;  %v6026_v46 = vld [vmem:[#allocation8 + $0x3a0] ss:$16 sps:$4 sm:$0xff]  }
  0x6d   :  { %655 = vmatpush1.bf16.msra.mxu0 %v5257_v2  ;;  %696 = vmatpush1.bf16.msra.mxu1 %v5259_v3  ;;  %v6028_v44 = vld [vmem:[#allocation8 + $0x3a4] ss:$16 sps:$4 sm:$0xff]   ;;  %v6029_v49 = vld [vmem:[#allocation8 + $0x180] ss:$16 sps:$4 sm:$0xff]  }
  0x6e   :  { %2312 = vmatprep.subr.bf16.mxu0 %v5965_v4  ;;  %2353 = vmatprep.subr.bf16.mxu1 %v5968_v5  ;;  %v6031_v47 = vld [vmem:[#allocation8 + $0x184] ss:$16 sps:$4 sm:$0xff]   ;;  %v6032_v50 = vld [vmem:[#allocation8 + $0x380] ss:$16 sps:$4 sm:$0xff]  }
  0x6f   :  { %v6034_v48 = vld [vmem:[#allocation8 + $0x384] ss:$16 sps:$4 sm:$0xff]   ;;  %v6035_v53 = vld [vmem:[#allocation8 + $0x160] ss:$16 sps:$4 sm:$0xff]  }
  0x70   :  { %5283 = vmatmul.mubr.msk.bf16.vlgmr.msra.gmra.mxu0 %vm390_vm0, %v7088_v26  ;;  %5284 = vmatmul.mubr.msk.bf16.vlgmr.msra.gmra.mxu1 %vm390_vm0, %v7088_v26  ;;  %v5996_v26 = vld [vmem:[#allocation8 + $0x240] ss:$16 sps:$4 sm:$0xff]   ;;  %v6037_v51 = vld [vmem:[#allocation8 + $0x164] ss:$16 sps:$4 sm:$0xff]  }
  0x71   :  { %2313 = vmatpush1.bf16.msra.mxu0 %v5963_v6  ;;  %2354 = vmatpush1.bf16.msra.mxu1 %v5966_v7  ;;  %v6040_v52 = vld [vmem:[#allocation8 + $0x364] ss:$16 sps:$4 sm:$0xff]   ;;  %v6038_v54 = vld [vmem:[#allocation8 + $0x360] ss:$16 sps:$4 sm:$0xff]   ;;  %v150_v6 = vlaneseq }
  0x72   :  { %2314 = vmatprep.subr.bf16.mxu0 %v5971_v8  ;;  %2355 = vmatprep.subr.bf16.mxu1 %v5974_v9  ;;  %v6043_v55 = vld [vmem:[#allocation8 + $0x144] ss:$16 sps:$4 sm:$0xff]   ;;  %v6041_v57 = vld [vmem:[#allocation8 + $0x140] ss:$16 sps:$4 sm:$0xff]  }
  0x73   :  { %v6046_v56 = vld [vmem:[#allocation8 + $0x344] ss:$16 sps:$4 sm:$0xff]   ;;  %v6044_v58 = vld [vmem:[#allocation8 + $0x340] ss:$16 sps:$4 sm:$0xff]   ;;  %v7113_v7 = vshrl.u32 %v150_v6, 7 }
  0x74   :  { %v6049_v59 = vld [vmem:[#allocation8 + $0x124] ss:$16 sps:$4 sm:$0xff]   ;;  %v6047_v61 = vld [vmem:[#allocation8 + $0x120] ss:$16 sps:$4 sm:$0xff]  }
  0x75   :  { %2315 = vmatpush1.bf16.msra.mxu0 %v5969_v10  ;;  %2356 = vmatpush1.bf16.msra.mxu1 %v5972_v11  ;;  %v6052_v60 = vld [vmem:[#allocation8 + $0x324] ss:$16 sps:$4 sm:$0xff]   ;;  %v6050_v62 = vld [vmem:[#allocation8 + $0x320] ss:$16 sps:$4 sm:$0xff]   ;;  %v7118_v9 = vsub.s32 0, %v7113_v7  ;;  %v7121_v10 = vsub.s32 2, %v7113_v7 }
  0x76   :  { %2316 = vmatprep.subr.bf16.mxu0 %v5977_v0  ;;  %2357 = vmatprep.subr.bf16.mxu1 %v5980_v13  ;;  %v6055_v63 = vld [vmem:[#allocation8 + $0x104] ss:$16 sps:$4 sm:$0xff]   ;;  %v6053_v2 = vld [vmem:[#allocation8 + $0x100] ss:$16 sps:$4 sm:$0xff]   ;;  %v7124_v11 = vsub.s32 1, %v7113_v7  ;;  %v7127_v0 = vsub.s32 3, %v7113_v7 }
  0x77   :  { %v6058_v1 = vld [vmem:[#allocation8 + $0x304] ss:$16 sps:$4 sm:$0xff]   ;;  %v6056_v3 = vld [vmem:[#allocation8 + $0x300] ss:$16 sps:$4 sm:$0xff]  }
  0x78   :  { %v6061_v4 = vld [vmem:[#allocation8 + $0x4e4] ss:$16 sps:$4 sm:$0xff]  }
  0x79   :  { %2317 = vmatpush1.bf16.msra.mxu0 %v5975_v12  ;;  %2358 = vmatpush1.bf16.msra.mxu1 %v5978_v14  ;;  %v6064_v5 = vld [vmem:[#allocation8 + $0x6e4] ss:$16 sps:$4 sm:$0xff]  }
  0x7a   :  { %2318 = vmatprep.subr.bf16.mxu0 %v5983_v15  ;;  %2359 = vmatprep.subr.bf16.mxu1 %v5986_v16  ;;  %v7115_v8 = vld [vmem:[#allocation7] sm:$0xff] }
  0x7b   :  { %v153_v12 = vrot.slane %v7115_v8, %v7118_v9  ;;  %v161_v13 = vrot.slane %v7115_v8, %v7121_v10  ;;  %v157_v14 = vrot.slane %v7115_v8, %v7124_v11  ;;  %v165_v16 = vrot.slane %v7115_v8, %v7127_v0 }
  0x7d   :  { %2319 = vmatpush1.bf16.msra.mxu0 %v5981_v17  ;;  %2360 = vmatpush1.bf16.msra.mxu1 %v5984_v18 }
  0x7e   :  { %2320 = vmatprep.subr.bf16.mxu0 %v5989_v19  ;;  %2361 = vmatprep.subr.bf16.mxu1 %v5992_v20 }
  0x81   :  { %2321 = vmatpush1.bf16.msra.mxu0 %v5987_v21  ;;  %2362 = vmatpush1.bf16.msra.mxu1 %v5990_v22 }
  0x82   :  { %2322 = vmatprep.subr.bf16.mxu0 %v5995_v23  ;;  %2363 = vmatprep.subr.bf16.mxu1 %v5998_v24  ;;  %v172_v23 = vsub.s32 5, %v7113_v7 }
  0x85   :  { %2323 = vmatpush1.bf16.msra.mxu0 %v5993_v25  ;;  %2364 = vmatpush1.bf16.msra.mxu1 %v5996_v26  ;;  %v180_v26 = vsub.s32 7, %v7113_v7 }
  0x86   :  { %2324 = vmatprep.subr.bf16.mxu0 %v6001_v27  ;;  %2365 = vmatprep.subr.bf16.mxu1 %v6004_v28 }
  0x89   :  { %2325 = vmatpush1.bf16.msra.mxu0 %v5999_v29  ;;  %2366 = vmatpush1.bf16.msra.mxu1 %v6002_v30  ;;  %v173_v30 = vrot.slane %v7115_v8, %v172_v23 }
  0x8a   :  { %2326 = vmatprep.subr.bf16.mxu0 %v6007_v31  ;;  %2367 = vmatprep.subr.bf16.mxu1 %v6010_v32  ;;  %v181_v32 = vrot.slane %v7115_v8, %v180_v26 }
  0x8d   :  { %2327 = vmatpush1.bf16.msra.mxu0 %v6005_v33  ;;  %2368 = vmatpush1.bf16.msra.mxu1 %v6008_v34 }
  0x8e   :  { %2328 = vmatprep.subr.bf16.mxu0 %v6013_v35  ;;  %2369 = vmatprep.subr.bf16.mxu1 %v6016_v36 }
  0x91   :  { %2329 = vmatpush2.bf16.msra.mxu0 %v6011_v37  ;;  %2370 = vmatpush2.bf16.msra.mxu1 %v6014_v38 }
  0x92   :  { %2330 = vmatprep.subr.bf16.mxu0 %v6019_v39  ;;  %2371 = vmatprep.subr.bf16.mxu1 %v6022_v40 }
  0x95   :  { %2331 = vmatpush2.bf16.msra.mxu0 %v6017_v41  ;;  %2372 = vmatpush2.bf16.msra.mxu1 %v6020_v42 }
  0x96   :  { %2332 = vmatprep.subr.bf16.mxu0 %v6025_v43  ;;  %2373 = vmatprep.subr.bf16.mxu1 %v6028_v44 }
  0x99   :  { %2333 = vmatpush2.bf16.msra.mxu0 %v6023_v45  ;;  %2374 = vmatpush2.bf16.msra.mxu1 %v6026_v46  ;;  %v6059_v45 = vld [vmem:[#allocation8 + $0x4e0] ss:$16 sps:$4 sm:$0xff]  }
  0x9a   :  { %2334 = vmatprep.subr.bf16.mxu0 %v6031_v47  ;;  %2375 = vmatprep.subr.bf16.mxu1 %v6034_v48  ;;  %v6062_v48 = vld [vmem:[#allocation8 + $0x6e0] ss:$16 sps:$4 sm:$0xff]  }
  0x9d   :  { %2335 = vmatpush2.bf16.msra.mxu0 %v6029_v49  ;;  %2376 = vmatpush2.bf16.msra.mxu1 %v6032_v50  ;;  %v6067_v49 = vld [vmem:[#allocation8 + $0x4c4] ss:$16 sps:$4 sm:$0xff]   ;;  %v147_v50 = vld [vmem:[#allocation7 + $0x8] sm:$0xff] }
  0x9e   :  { %2336 = vmatprep.subr.bf16.mxu0 %v6037_v51  ;;  %2377 = vmatprep.subr.bf16.mxu1 %v6040_v52 }
  0xa1   :  { %2337 = vmatpush2.bf16.msra.mxu0 %v6035_v53  ;;  %2378 = vmatpush2.bf16.msra.mxu1 %v6038_v54 }
  0xa2   :  { %2338 = vmatprep.subr.bf16.mxu0 %v6043_v55  ;;  %2379 = vmatprep.subr.bf16.mxu1 %v6046_v56  ;;  %v6070_v55 = vld [vmem:[#allocation8 + $0x6c4] ss:$16 sps:$4 sm:$0xff]   ;;  %v168_v56 = vsub.s32 4, %v7113_v7 }
  0xa5   :  { %2339 = vmatpush2.bf16.msra.mxu0 %v6041_v57  ;;  %2380 = vmatpush2.bf16.msra.mxu1 %v6044_v58 }
  0xa6   :  { %2340 = vmatprep.subr.bf16.mxu0 %v6049_v59  ;;  %2381 = vmatprep.subr.bf16.mxu1 %v6052_v60  ;;  %v176_v60 = vsub.s32 6, %v7113_v7  ;;  %v6131_v7 = vld [vmem:[#allocation8 + $0x560] ss:$16 sps:$4 sm:$0xff]  }
  0xa9   :  { %2341 = vmatpush2.bf16.msra.mxu0 %v6047_v61  ;;  %2382 = vmatpush2.bf16.msra.mxu1 %v6050_v62 }
  0xaa   :  { %2342 = vmatprep.subr.bf16.mxu0 %v6055_v63  ;;  %2383 = vmatprep.subr.bf16.mxu1 %v6058_v1  ;;  %v201_v63 = vrot.slane %v147_v50, %v168_v56  ;;  %v6065_v1 = vld [vmem:[#allocation8 + $0x4c0] ss:$16 sps:$4 sm:$0xff]  }
  0xad   :  { %2343 = vmatpush2.bf16.msra.mxu0 %v6053_v2  ;;  %2384 = vmatpush2.bf16.msra.mxu1 %v6056_v3  ;;  %v209_v3 = vrot.slane %v147_v50, %v176_v60 }
  0xae   :  { %2394 = vmatprep.subr.bf16.mxu0 %v6061_v4  ;;  %2435 = vmatprep.subr.bf16.mxu1 %v6064_v5  ;;  %v6068_v4 = vld [vmem:[#allocation8 + $0x6c0] ss:$16 sps:$4 sm:$0xff]   ;;  %v6073_v5 = vld [vmem:[#allocation8 + $0x4a4] ss:$16 sps:$4 sm:$0xff]  }
 0x118   :  { %v428_v15 = vpop.f32.mrf.mxu0  ;;  %v469_v18 = vpop.f32.mrf.mxu1 }
 0x119   :  { %v429_v17 = vadd.f32 %v428_v15, %v153_v12  ;;  %v470_v19 = vadd.f32 %v469_v18, %v161_v13  ;;  %v205_v13 = vrot.slane %v147_v50, %v172_v23  ;;  %v213_v15 = vrot.slane %v147_v50, %v180_v26  ;;  %v6074_v26 = vld [vmem:[#allocation8 + $0x6a0] ss:$16 sps:$4 sm:$0xff]   ;;  %v6097_v50 = vld [vmem:[#allocation8 + $0x424] ss:$16 sps:$4 sm:$0xff]  }
 0x11a   :  { %v430_v20 = vpop.f32.mrf.mxu0  ;;  %v471_v22 = vpop.f32.mrf.mxu1 }
 0x11b   :  { %6795 = vtanh.f32 %v429_v17  ;;  %v431_v21 = vadd.f32 %v430_v20, %v157_v14  ;;  %v472_v24 = vadd.f32 %v471_v22, %v165_v16  ;;  %v6076_v16 = vld [vmem:[#allocation8 + $0x6a4] ss:$16 sps:$4 sm:$0xff]   ;;  %v6071_v20 = vld [vmem:[#allocation8 + $0x4a0] ss:$16 sps:$4 sm:$0xff]  }
 0x11c   :  { %6797 = vtanh.f32 %v470_v19  ;;  %v432_v25 = vpop.f32.mrf.mxu0  ;;  %v473_v27 = vpop.f32.mrf.mxu1 }
 0x11d   :  { %6799 = vtanh.f32 %v431_v21 }
 0x11e   :  { %6801 = vtanh.f32 %v472_v24  ;;  %v433_v28 = vpop.f32.mrf.mxu0  ;;  %v474_v29 = vpop.f32.mrf.mxu1 }
 0x11f   :  { %v6079_v28 = vld [vmem:[#allocation8 + $0x484] ss:$16 sps:$4 sm:$0xff]  }
 0x120   :  { %v7140_v31 = vpop.f32.mrf.mxu0  ;;  %v7143_v33 = vpop.f32.mrf.mxu1 }
 0x122   :  { %v512_v34 = vpop.f32.mrf.mxu0  ;;  %v553_v36 = vpop.f32.mrf.mxu1 }
 0x123   :  { %v513_v35 = vadd.f32 %v512_v34, %v173_v30  ;;  %v554_v38 = vadd.f32 %v553_v36, %v181_v32  ;;  %v6077_v34 = vld [vmem:[#allocation8 + $0x480] ss:$16 sps:$4 sm:$0xff]  }
 0x124   :  { %v514_v37 = vpop.f32.mrf.mxu0  ;;  %v555_v39 = vpop.f32.mrf.mxu1 }
 0x125   :  { %6803 = vtanh.f32 %v513_v35  ;;  %v6082_v35 = vld [vmem:[#allocation8 + $0x684] ss:$16 sps:$4 sm:$0xff]   ;;  %v6080_v39 = vld [vmem:[#allocation8 + $0x680] ss:$16 sps:$4 sm:$0xff]  }
 0x126   :  { %6805 = vtanh.f32 %v554_v38  ;;  %v515_v40 = vpop.f32.mrf.mxu0  ;;  %v556_v41 = vpop.f32.mrf.mxu1 }
 0x127   :  { %v6085_v40 = vld [vmem:[#allocation8 + $0x464] ss:$16 sps:$4 sm:$0xff]   ;;  %v6083_v41 = vld [vmem:[#allocation8 + $0x460] ss:$16 sps:$4 sm:$0xff]  }
 0x128   :  { %v6796_v42 = vpop.eup %6795  ;;  %v7145_v43 = vpop.f32.mrf.mxu0 }
 0x129   :  { %v6798_v44 = vpop.eup %6797  ;;  %v7147_v46 = vpop.f32.mrf.mxu1  ;;  %v7158_v58 = vpack.c.bf16 %v6796_v42, %v6796_v42  ;;  %v6088_v42 = vld [vmem:[#allocation8 + $0x664] ss:$16 sps:$4 sm:$0xff]  }
 0x12a   :  { %v6800_v47 = vpop.eup %6799  ;;  %v7149_v51 = vpop.f32.mrf.mxu0  ;;  %v7151_v53 = vpack.c.bf16 %v6798_v44, %v6798_v44  ;;  %v6086_v44 = vld [vmem:[#allocation8 + $0x660] ss:$16 sps:$4 sm:$0xff]  }
 0x12b   :  { %v6802_v52 = vpop.eup %6801  ;;  %v7153_v54 = vpack.c.bf16 %v6800_v47, %v6800_v47  ;;  %v7156_v57 = vpop.f32.mrf.mxu1  ;;  %v6089_v47 = vld [vmem:[#allocation8 + $0x440] ss:$16 sps:$4 sm:$0xff]  }
 0x12c   :  { %v7160_v59 = vpack.c.bf16 %v6802_v52, %v6802_v52  ;;  %v596_v61 = vpop.f32.mrf.mxu0  ;;  %v6095_v52 = vld [vmem:[#allocation8 + $0x420] ss:$16 sps:$4 sm:$0xff]  }
 0x12d   :  { %2344 = vmatprep.mubr.bf16.mxu0 %v7153_v54  ;;  %v637_v62 = vpop.f32.mrf.mxu1  ;;  %v6098_v61 = vld [vmem:[#allocation8 + $0x620] ss:$16 sps:$4 sm:$0xff]  }
 0x12e   :  { %2385 = vmatprep.mubr.bf16.mxu1 %v7160_v59  ;;  %2345 = vmatmul.mubr.bf16.vlgmr.msra.gmra.mxu0 %v7158_v58  ;;  %v597_v2 = vpop.f32.mrf.mxu0  ;;  %v6103_v62 = vld [vmem:[#allocation8 + $0x404] ss:$16 sps:$4 sm:$0xff]  }
 0x12f   :  { %2386 = vmatmul.mubr.bf16.vlgmr.msra.gmra.mxu1 %v7151_v53  ;;  %2395 = vmatpush1.bf16.msra.mxu0 %v6059_v45  ;;  %v638_v12 = vpop.f32.mrf.mxu1  ;;  %v6091_v45 = vld [vmem:[#allocation8 + $0x444] ss:$16 sps:$4 sm:$0xff]   ;;  %v6104_v2 = vld [vmem:[#allocation8 + $0x600] ss:$16 sps:$4 sm:$0xff]  }
 0x130   :  { %2436 = vmatpush1.bf16.msra.mxu1 %v6062_v48  ;;  %2396 = vmatprep.subr.bf16.mxu0 %v6067_v49  ;;  %v674_v14 = vpop.f32.mrf.mxu0  ;;  %v6094_v48 = vld [vmem:[#allocation8 + $0x644] ss:$16 sps:$4 sm:$0xff]   ;;  %v6092_v49 = vld [vmem:[#allocation8 + $0x640] ss:$16 sps:$4 sm:$0xff]  }
 0x131   :  { %2437 = vmatprep.subr.bf16.mxu1 %v6070_v55  ;;  %v7171_v17 = vadd.f32 %v674_v14, %v201_v63  ;;  %v715_v18 = vpop.f32.mrf.mxu1  ;;  %v6100_v55 = vld [vmem:[#allocation8 + $0x624] ss:$16 sps:$4 sm:$0xff]   ;;  %v6101_v63 = vld [vmem:[#allocation8 + $0x400] ss:$16 sps:$4 sm:$0xff]  }
 0x132   :  { %v6804_v19 = vpop.eup %6803  ;;  %v676_v21 = vpop.f32.mrf.mxu0  ;;  %v7173_v22 = vadd.f32 %v715_v18, %v209_v3  ;;  %v6109_v3 = vld [vmem:[#allocation8 + $0x5e4] ss:$16 sps:$4 sm:$0xff]   ;;  %v6110_v12 = vld [vmem:[#allocation8 + $0x7e0] ss:$16 sps:$4 sm:$0xff]  }
 0x133   :  { %v6806_v24 = vpop.eup %6805  ;;  %2397 = vmatpush1.bf16.msra.mxu0 %v6065_v1  ;;  %v7175_v25 = vpack.c.bf16 %v6804_v19, %v6804_v19  ;;  %v7177_v27 = vadd.f32 %v676_v21, %v205_v13  ;;  %v717_v23 = vpop.f32.mrf.mxu1  ;;  %v6106_v1 = vld [vmem:[#allocation8 + $0x604] ss:$16 sps:$4 sm:$0xff]   ;;  %v6113_v14 = vld [vmem:[#allocation8 + $0x5c0] ss:$16 sps:$4 sm:$0xff]   ;;  %v177_v21 = vrot.slane %v7115_v8, %v176_v60 }
 0x134   :  { %2438 = vmatpush1.bf16.msra.mxu1 %v6068_v4  ;;  %2398 = vmatprep.subr.bf16.mxu0 %v6073_v5  ;;  %v7179_v29 = vpack.c.bf16 %v6806_v24, %v6806_v24  ;;  %v678_v30 = vpop.f32.mrf.mxu0  ;;  %v7181_v32 = vadd.f32 %v717_v23, %v213_v15  ;;  %v6107_v4 = vld [vmem:[#allocation8 + $0x5e0] ss:$16 sps:$4 sm:$0xff]   ;;  %v6112_v5 = vld [vmem:[#allocation8 + $0x7e4] ss:$16 sps:$4 sm:$0xff]   ;;  %v169_v24 = vrot.slane %v7115_v8, %v168_v56 }
 0x135   :  { %2439 = vmatprep.subr.bf16.mxu1 %v6076_v16  ;;  %2426 = vmatprep.mubr.bf16.mxu0 %v7175_v25  ;;  %v719_v36 = vpop.f32.mrf.mxu1  ;;  %v6115_v13 = vld [vmem:[#allocation8 + $0x5c4] ss:$16 sps:$4 sm:$0xff]   ;;  %v6116_v16 = vld [vmem:[#allocation8 + $0x7c0] ss:$16 sps:$4 sm:$0xff]  }
 0x136   :  { %2467 = vmatprep.mubr.bf16.mxu1 %v7179_v29  ;;  %v679_v37 = vpop.f32.mrf.mxu0  ;;  %v6118_v15 = vld [vmem:[#allocation8 + $0x7c4] ss:$16 sps:$4 sm:$0xff]   ;;  %v6119_v19 = vld [vmem:[#allocation8 + $0x5a0] ss:$16 sps:$4 sm:$0xff]  }
 0x137   :  { %2399 = vmatpush1.bf16.msra.mxu0 %v6071_v20  ;;  %v720_v38 = vpop.f32.mrf.mxu1  ;;  %v6121_v18 = vld [vmem:[#allocation8 + $0x5a4] ss:$16 sps:$4 sm:$0xff]   ;;  %v6122_v23 = vld [vmem:[#allocation8 + $0x7a0] ss:$16 sps:$4 sm:$0xff]  }
 0x138   :  { %2440 = vmatpush1.bf16.msra.mxu1 %v6074_v26  ;;  %2400 = vmatprep.subr.bf16.mxu0 %v6079_v28  ;;  %v6124_v20 = vld [vmem:[#allocation8 + $0x7a4] ss:$16 sps:$4 sm:$0xff]   ;;  %v6125_v28 = vld [vmem:[#allocation8 + $0x580] ss:$16 sps:$4 sm:$0xff]  }
 0x139   :  { %2441 = vmatprep.subr.bf16.mxu1 %v6082_v35  ;;  %v6127_v26 = vld [vmem:[#allocation8 + $0x584] ss:$16 sps:$4 sm:$0xff]   ;;  %v511_v35 = vadd.f32 %v7140_v31, %v169_v24  ;;  %v6128_v36 = vld [vmem:[#allocation8 + $0x780] ss:$16 sps:$4 sm:$0xff]   ;;  %v6184_v24 = vld [vmem:[#allocation8 + $0x26c] ss:$16 sps:$4 sm:$0xff]  }
 0x13a   :  { %v6130_v30 = vld [vmem:[#allocation8 + $0x784] ss:$16 sps:$4 sm:$0xff]   ;;  %v6134_v8 = vld [vmem:[#allocation8 + $0x760] ss:$16 sps:$4 sm:$0xff]  }
 0x13b   :  { %2401 = vmatpush1.bf16.msra.mxu0 %v6077_v34  ;;  %v552_v34 = vadd.f32 %v7143_v33, %v177_v21  ;;  %v6133_v60 = vld [vmem:[#allocation8 + $0x564] ss:$16 sps:$4 sm:$0xff]   ;;  %v6137_v38 = vld [vmem:[#allocation8 + $0x540] ss:$16 sps:$4 sm:$0xff]   ;;  %v6181_v21 = vld [vmem:[#allocation8 + $0x6c] ss:$16 sps:$4 sm:$0xff]  }
 0x13c   :  { %2442 = vmatpush1.bf16.msra.mxu1 %v6080_v39  ;;  %2402 = vmatprep.subr.bf16.mxu0 %v6085_v40  ;;  %v6136_v37 = vld [vmem:[#allocation8 + $0x764] ss:$16 sps:$4 sm:$0xff]   ;;  %v6140_v31 = vld [vmem:[#allocation8 + $0x740] ss:$16 sps:$4 sm:$0xff]  }
 0x13d   :  { %2443 = vmatprep.subr.bf16.mxu1 %v6088_v42  ;;  %6807 = vtanh.f32 %v552_v34  ;;  %v6139_v56 = vld [vmem:[#allocation8 + $0x544] ss:$16 sps:$4 sm:$0xff]   ;;  %v6143_v40 = vld [vmem:[#allocation8 + $0x520] ss:$16 sps:$4 sm:$0xff]   ;;  %v6193_v34 = vld [vmem:[#allocation8 + $0x2c] ss:$16 sps:$4 sm:$0xff]  }
 0x13e   :  { %6809 = vtanh.f32 %v511_v35  ;;  %v6142_v33 = vld [vmem:[#allocation8 + $0x744] ss:$16 sps:$4 sm:$0xff]   ;;  %v6146_v42 = vld [vmem:[#allocation8 + $0x720] ss:$16 sps:$4 sm:$0xff]   ;;  %v6191_v35 = vld [vmem:[#allocation8 + $0x28] ss:$16 sps:$4 sm:$0xff]  }
 0x13f   :  { %2403 = vmatpush1.bf16.msra.mxu0 %v6083_v41  ;;  %v6145_v39 = vld [vmem:[#allocation8 + $0x524] ss:$16 sps:$4 sm:$0xff]  }
 0x140   :  { %2444 = vmatpush1.bf16.msra.mxu1 %v6086_v44  ;;  %2404 = vmatprep.subr.bf16.mxu0 %v6091_v45  ;;  %v6148_v41 = vld [vmem:[#allocation8 + $0x724] ss:$16 sps:$4 sm:$0xff]   ;;  %v6149_v45 = vld [vmem:[#allocation8 + $0x500] ss:$16 sps:$4 sm:$0xff]  }
 0x141   :  { %2445 = vmatprep.subr.bf16.mxu1 %v6094_v48  ;;  %v6151_v44 = vld [vmem:[#allocation8 + $0x504] ss:$16 sps:$4 sm:$0xff]  }
 0x143   :  { %2405 = vmatpush1.bf16.msra.mxu0 %v6089_v47  ;;  %v6154_v47 = vld [vmem:[#allocation8 + $0x704] ss:$16 sps:$4 sm:$0xff]  }
 0x144   :  { %2446 = vmatpush1.bf16.msra.mxu1 %v6092_v49  ;;  %2406 = vmatprep.subr.bf16.mxu0 %v6097_v50  ;;  %v6152_v49 = vld [vmem:[#allocation8 + $0x700] ss:$16 sps:$4 sm:$0xff]   ;;  %v6157_v50 = vld [vmem:[#allocation8 + $0xec] ss:$16 sps:$4 sm:$0xff]  }
 0x145   :  { %2447 = vmatprep.subr.bf16.mxu1 %v6100_v55 }
 0x147   :  { %2407 = vmatpush1.bf16.msra.mxu0 %v6095_v52  ;;  %v6160_v52 = vld [vmem:[#allocation8 + $0x2ec] ss:$16 sps:$4 sm:$0xff]  }
 0x148   :  { %2448 = vmatpush1.bf16.msra.mxu1 %v6098_v61  ;;  %2408 = vmatprep.subr.bf16.mxu0 %v6103_v62  ;;  %v6155_v61 = vld [vmem:[#allocation8 + $0xe8] ss:$16 sps:$4 sm:$0xff]  }
 0x149   :  { %2449 = vmatprep.subr.bf16.mxu1 %v6106_v1  ;;  %v6158_v62 = vld [vmem:[#allocation8 + $0x2e8] ss:$16 sps:$4 sm:$0xff]   ;;  %v6163_v1 = vld [vmem:[#allocation8 + $0xcc] ss:$16 sps:$4 sm:$0xff]  }
 0x14a   :  { %v6808_v48 = vpop.eup %6807 }
 0x14b   :  { %2409 = vmatpush1.bf16.msra.mxu0 %v6101_v63  ;;  %v6810_v55 = vpop.eup %6809  ;;  %v7193_v63 = vpack.c.bf16 %v6808_v48, %v6808_v48  ;;  %v6215_v48 = vld [vmem:[#allocation8 + $0x1a8] ss:$16 sps:$4 sm:$0xff]  }
 0x14c   :  { %2450 = vmatpush1.bf16.msra.mxu1 %v6104_v2  ;;  %2410 = vmatprep.subr.bf16.mxu0 %v6109_v3  ;;  %v7195_v2 = vpack.c.bf16 %v6810_v55, %v6810_v55  ;;  %v6161_v3 = vld [vmem:[#allocation8 + $0xc8] ss:$16 sps:$4 sm:$0xff]  }
 0x14d   :  { %2451 = vmatprep.subr.bf16.mxu1 %v6112_v5  ;;  %v6164_v5 = vld [vmem:[#allocation8 + $0x2c8] ss:$16 sps:$4 sm:$0xff]  }
 0x14e   :  { %v6221_v55 = vld [vmem:[#allocation8 + $0x188] ss:$16 sps:$4 sm:$0xff]  }
 0x14f   :  { %2411 = vmatpush2.bf16.msra.mxu0 %v6107_v4  ;;  %v6166_v4 = vld [vmem:[#allocation8 + $0x2cc] ss:$16 sps:$4 sm:$0xff]  }
 0x150   :  { %2452 = vmatpush2.bf16.msra.mxu1 %v6110_v12  ;;  %2412 = vmatprep.subr.bf16.mxu0 %v6115_v13  ;;  %v6169_v12 = vld [vmem:[#allocation8 + $0xac] ss:$16 sps:$4 sm:$0xff]  }
 0x151   :  { %2453 = vmatprep.subr.bf16.mxu1 %v6118_v15  ;;  %v6172_v13 = vld [vmem:[#allocation8 + $0x2ac] ss:$16 sps:$4 sm:$0xff]   ;;  %v6170_v15 = vld [vmem:[#allocation8 + $0x2a8] ss:$16 sps:$4 sm:$0xff]  }
 0x153   :  { %2413 = vmatpush2.bf16.msra.mxu0 %v6113_v14  ;;  %v6167_v14 = vld [vmem:[#allocation8 + $0xa8] ss:$16 sps:$4 sm:$0xff]  }
 0x154   :  { %2454 = vmatpush2.bf16.msra.mxu1 %v6116_v16  ;;  %2414 = vmatprep.subr.bf16.mxu0 %v6121_v18  ;;  %v6175_v16 = vld [vmem:[#allocation8 + $0x8c] ss:$16 sps:$4 sm:$0xff]  }
 0x155   :  { %2455 = vmatprep.subr.bf16.mxu1 %v6124_v20  ;;  %v6178_v18 = vld [vmem:[#allocation8 + $0x28c] ss:$16 sps:$4 sm:$0xff]   ;;  %v6176_v20 = vld [vmem:[#allocation8 + $0x288] ss:$16 sps:$4 sm:$0xff]  }
 0x157   :  { %2415 = vmatpush2.bf16.msra.mxu0 %v6119_v19  ;;  %v6173_v19 = vld [vmem:[#allocation8 + $0x88] ss:$16 sps:$4 sm:$0xff]  }
 0x158   :  { %2456 = vmatpush2.bf16.msra.mxu1 %v6122_v23  ;;  %2416 = vmatprep.subr.bf16.mxu0 %v6127_v26  ;;  %v6187_v23 = vld [vmem:[#allocation8 + $0x4c] ss:$16 sps:$4 sm:$0xff]   ;;  %v6185_v26 = vld [vmem:[#allocation8 + $0x48] ss:$16 sps:$4 sm:$0xff]  }
 0x159   :  { %2457 = vmatprep.subr.bf16.mxu1 %v6130_v30  ;;  %v6188_v30 = vld [vmem:[#allocation8 + $0x248] ss:$16 sps:$4 sm:$0xff]  }
 0x15b   :  { %2417 = vmatpush2.bf16.msra.mxu0 %v6125_v28  ;;  %v6190_v28 = vld [vmem:[#allocation8 + $0x24c] ss:$16 sps:$4 sm:$0xff]  }
 0x15c   :  { %2458 = vmatpush2.bf16.msra.mxu1 %v6128_v36  ;;  %2418 = vmatprep.subr.bf16.mxu0 %v6133_v60  ;;  %v6196_v36 = vld [vmem:[#allocation8 + $0x22c] ss:$16 sps:$4 sm:$0xff]   ;;  %v6194_v60 = vld [vmem:[#allocation8 + $0x228] ss:$16 sps:$4 sm:$0xff]  }
 0x15d   :  { %2459 = vmatprep.subr.bf16.mxu1 %v6136_v37  ;;  %v6197_v37 = vld [vmem:[#allocation8 + $0x8] ss:$16 sps:$4 sm:$0xff]  }
 0x15f   :  { %2419 = vmatpush2.bf16.msra.mxu0 %v6131_v7  ;;  %v6199_v7 = vld [vmem:[#allocation8 + $0xc] ss:$16 sps:$4 sm:$0xff]  }
 0x160   :  { %2460 = vmatpush2.bf16.msra.mxu1 %v6134_v8  ;;  %2420 = vmatprep.subr.bf16.mxu0 %v6139_v56  ;;  %v6202_v8 = vld [vmem:[#allocation8 + $0x20c] ss:$16 sps:$4 sm:$0xff]   ;;  %v6200_v56 = vld [vmem:[#allocation8 + $0x208] ss:$16 sps:$4 sm:$0xff]  }
 0x161   :  { %2461 = vmatprep.subr.bf16.mxu1 %v6142_v33  ;;  %v6203_v33 = vld [vmem:[#allocation8 + $0x1e8] ss:$16 sps:$4 sm:$0xff]  }
 0x163   :  { %2421 = vmatpush2.bf16.msra.mxu0 %v6137_v38  ;;  %v6205_v38 = vld [vmem:[#allocation8 + $0x1ec] ss:$16 sps:$4 sm:$0xff]  }
 0x164   :  { %2462 = vmatpush2.bf16.msra.mxu1 %v6140_v31  ;;  %2422 = vmatprep.subr.bf16.mxu0 %v6145_v39  ;;  %v6208_v31 = vld [vmem:[#allocation8 + $0x3ec] ss:$16 sps:$4 sm:$0xff]   ;;  %v6206_v39 = vld [vmem:[#allocation8 + $0x3e8] ss:$16 sps:$4 sm:$0xff]  }
 0x165   :  { %2463 = vmatprep.subr.bf16.mxu1 %v6148_v41  ;;  %v6209_v41 = vld [vmem:[#allocation8 + $0x1c8] ss:$16 sps:$4 sm:$0xff]  }
 0x167   :  { %2423 = vmatpush2.bf16.msra.mxu0 %v6143_v40  ;;  %v6211_v40 = vld [vmem:[#allocation8 + $0x1cc] ss:$16 sps:$4 sm:$0xff]  }
 0x168   :  { %2464 = vmatpush2.bf16.msra.mxu1 %v6146_v42  ;;  %2424 = vmatprep.subr.bf16.mxu0 %v6151_v44  ;;  %v6214_v42 = vld [vmem:[#allocation8 + $0x3cc] ss:$16 sps:$4 sm:$0xff]   ;;  %v6212_v44 = vld [vmem:[#allocation8 + $0x3c8] ss:$16 sps:$4 sm:$0xff]  }
 0x169   :  { %2465 = vmatprep.subr.bf16.mxu1 %v6154_v47  ;;  %v6220_v47 = vld [vmem:[#allocation8 + $0x3ac] ss:$16 sps:$4 sm:$0xff]  }
 0x16b   :  { %2425 = vmatpush2.bf16.msra.mxu0 %v6149_v45  ;;  %v6217_v45 = vld [vmem:[#allocation8 + $0x1ac] ss:$16 sps:$4 sm:$0xff]  }
 0x16c   :  { %2466 = vmatpush2.bf16.msra.mxu1 %v6152_v49  ;;  %2476 = vmatprep.subr.bf16.mxu0 %v6157_v50  ;;  %v6218_v49 = vld [vmem:[#allocation8 + $0x3a8] ss:$16 sps:$4 sm:$0xff]   ;;  %v6223_v50 = vld [vmem:[#allocation8 + $0x18c] ss:$16 sps:$4 sm:$0xff]  }
 0x16d   :  { %2517 = vmatprep.subr.bf16.mxu1 %v6160_v52  ;;  %v6226_v52 = vld [vmem:[#allocation8 + $0x38c] ss:$16 sps:$4 sm:$0xff]  }
 0x16e   :  { %2427 = vmatmul.mubr.bf16.vlgmr.msra.gmra.mxu0 %v7195_v2 }
 0x16f   :  { %2468 = vmatmul.mubr.bf16.vlgmr.msra.gmra.mxu1 %v7193_v63  ;;  %2477 = vmatpush1.bf16.msra.mxu0 %v6155_v61  ;;  %v6224_v61 = vld [vmem:[#allocation8 + $0x388] ss:$16 sps:$4 sm:$0xff]  }
 0x170   :  { %2508 = vmatprep.mubr.bf16.mxu0 %v7153_v54  ;;  %2518 = vmatpush1.bf16.msra.mxu1 %v6158_v62  ;;  %v6179_v54 = vld [vmem:[#allocation8 + $0x68] ss:$16 sps:$4 sm:$0xff]   ;;  %v6229_v62 = vld [vmem:[#allocation8 + $0x16c] ss:$16 sps:$4 sm:$0xff]  }
 0x171   :  { %2549 = vmatprep.mubr.bf16.mxu1 %v7160_v59  ;;  %2478 = vmatprep.subr.bf16.mxu0 %v6163_v1  ;;  %v6182_v59 = vld [vmem:[#allocation8 + $0x268] ss:$16 sps:$4 sm:$0xff]   ;;  %v6232_v1 = vld [vmem:[#allocation8 + $0x36c] ss:$16 sps:$4 sm:$0xff]  }
 0x172   :  { %2519 = vmatprep.subr.bf16.mxu1 %v6166_v4  ;;  %v6230_v4 = vld [vmem:[#allocation8 + $0x368] ss:$16 sps:$4 sm:$0xff]  }
 0x173   :  { %2479 = vmatpush1.bf16.msra.mxu0 %v6161_v3  ;;  %v6227_v3 = vld [vmem:[#allocation8 + $0x168] ss:$16 sps:$4 sm:$0xff]  }
 0x174   :  { %2520 = vmatpush1.bf16.msra.mxu1 %v6164_v5  ;;  %2480 = vmatprep.subr.bf16.mxu0 %v6169_v12  ;;  %v6235_v5 = vld [vmem:[#allocation8 + $0x14c] ss:$16 sps:$4 sm:$0xff]  }
 0x175   :  { %2521 = vmatprep.subr.bf16.mxu1 %v6172_v13  ;;  %v6238_v12 = vld [vmem:[#allocation8 + $0x34c] ss:$16 sps:$4 sm:$0xff]   ;;  %v6233_v13 = vld [vmem:[#allocation8 + $0x148] ss:$16 sps:$4 sm:$0xff]  }
 0x177   :  { %2481 = vmatpush1.bf16.msra.mxu0 %v6167_v14  ;;  %v6236_v14 = vld [vmem:[#allocation8 + $0x348] ss:$16 sps:$4 sm:$0xff]  }
 0x178   :  { %2522 = vmatpush1.bf16.msra.mxu1 %v6170_v15  ;;  %2482 = vmatprep.subr.bf16.mxu0 %v6175_v16  ;;  %v6241_v15 = vld [vmem:[#allocation8 + $0x12c] ss:$16 sps:$4 sm:$0xff]  }
 0x179   :  { %2523 = vmatprep.subr.bf16.mxu1 %v6178_v18  ;;  %v6244_v16 = vld [vmem:[#allocation8 + $0x32c] ss:$16 sps:$4 sm:$0xff]   ;;  %v6239_v18 = vld [vmem:[#allocation8 + $0x128] ss:$16 sps:$4 sm:$0xff]  }
 0x17b   :  { %2483 = vmatpush1.bf16.msra.mxu0 %v6173_v19  ;;  %v6242_v19 = vld [vmem:[#allocation8 + $0x328] ss:$16 sps:$4 sm:$0xff]  }
 0x17c   :  { %2524 = vmatpush1.bf16.msra.mxu1 %v6176_v20  ;;  %2484 = vmatprep.subr.bf16.mxu0 %v6181_v21  ;;  %v6247_v20 = vld [vmem:[#allocation8 + $0x10c] ss:$16 sps:$4 sm:$0xff]  }
 0x17d   :  { %2525 = vmatprep.subr.bf16.mxu1 %v6184_v24  ;;  %v6250_v21 = vld [vmem:[#allocation8 + $0x30c] ss:$16 sps:$4 sm:$0xff]   ;;  %v6248_v24 = vld [vmem:[#allocation8 + $0x308] ss:$16 sps:$4 sm:$0xff]  }
 0x17f   :  { %2485 = vmatpush1.bf16.msra.mxu0 %v6179_v54  ;;  %v6245_v54 = vld [vmem:[#allocation8 + $0x108] ss:$16 sps:$4 sm:$0xff]  }
 0x180   :  { %2526 = vmatpush1.bf16.msra.mxu1 %v6182_v59  ;;  %2486 = vmatprep.subr.bf16.mxu0 %v6187_v23  ;;  %v6253_v59 = vld [vmem:[#allocation8 + $0x4ec] ss:$16 sps:$4 sm:$0xff]  }
 0x181   :  { %2527 = vmatprep.subr.bf16.mxu1 %v6190_v28  ;;  %v6256_v23 = vld [vmem:[#allocation8 + $0x6ec] ss:$16 sps:$4 sm:$0xff]   ;;  %v6254_v28 = vld [vmem:[#allocation8 + $0x6e8] ss:$16 sps:$4 sm:$0xff]  }
 0x183   :  { %2487 = vmatpush1.bf16.msra.mxu0 %v6185_v26  ;;  %v6251_v26 = vld [vmem:[#allocation8 + $0x4e8] ss:$16 sps:$4 sm:$0xff]  }
 0x184   :  { %2528 = vmatpush1.bf16.msra.mxu1 %v6188_v30  ;;  %2488 = vmatprep.subr.bf16.mxu0 %v6193_v34  ;;  %v6259_v30 = vld [vmem:[#allocation8 + $0x4cc] ss:$16 sps:$4 sm:$0xff]  }
 0x185   :  { %2529 = vmatprep.subr.bf16.mxu1 %v6196_v36  ;;  %v6262_v34 = vld [vmem:[#allocation8 + $0x6cc] ss:$16 sps:$4 sm:$0xff]   ;;  %v6260_v36 = vld [vmem:[#allocation8 + $0x6c8] ss:$16 sps:$4 sm:$0xff]  }
 0x187   :  { %2489 = vmatpush1.bf16.msra.mxu0 %v6191_v35  ;;  %v6257_v35 = vld [vmem:[#allocation8 + $0x4c8] ss:$16 sps:$4 sm:$0xff]  }
 0x188   :  { %2530 = vmatpush1.bf16.msra.mxu1 %v6194_v60  ;;  %2490 = vmatprep.subr.bf16.mxu0 %v6199_v7  ;;  %v6265_v60 = vld [vmem:[#allocation8 + $0x4ac] ss:$16 sps:$4 sm:$0xff]  }
 0x189   :  { %2531 = vmatprep.subr.bf16.mxu1 %v6202_v8  ;;  %v6268_v7 = vld [vmem:[#allocation8 + $0x6ac] ss:$16 sps:$4 sm:$0xff]  }
 0x18a   :  { %v6271_v8 = vld [vmem:[#allocation8 + $0x48c] ss:$16 sps:$4 sm:$0xff]  }
 0x18b   :  { %2491 = vmatpush1.bf16.msra.mxu0 %v6197_v37  ;;  %v6263_v37 = vld [vmem:[#allocation8 + $0x4a8] ss:$16 sps:$4 sm:$0xff]  }
 0x18c   :  { %2532 = vmatpush1.bf16.msra.mxu1 %v6200_v56  ;;  %2492 = vmatprep.subr.bf16.mxu0 %v6205_v38  ;;  %v6269_v56 = vld [vmem:[#allocation8 + $0x488] ss:$16 sps:$4 sm:$0xff]   ;;  %v6277_v38 = vld [vmem:[#allocation8 + $0x46c] ss:$16 sps:$4 sm:$0xff]  }
 0x18d   :  { %2533 = vmatprep.subr.bf16.mxu1 %v6208_v31  ;;  %v6278_v31 = vld [vmem:[#allocation8 + $0x668] ss:$16 sps:$4 sm:$0xff]  }
 0x18f   :  { %2493 = vmatpush2.bf16.msra.mxu0 %v6203_v33  ;;  %v6280_v33 = vld [vmem:[#allocation8 + $0x66c] ss:$16 sps:$4 sm:$0xff]  }
 0x190   :  { %2534 = vmatpush2.bf16.msra.mxu1 %v6206_v39  ;;  %2494 = vmatprep.subr.bf16.mxu0 %v6211_v40  ;;  %v6283_v39 = vld [vmem:[#allocation8 + $0x44c] ss:$16 sps:$4 sm:$0xff]  }
 0x191   :  { %2535 = vmatprep.subr.bf16.mxu1 %v6214_v42  ;;  %v6286_v40 = vld [vmem:[#allocation8 + $0x64c] ss:$16 sps:$4 sm:$0xff]   ;;  %v6284_v42 = vld [vmem:[#allocation8 + $0x648] ss:$16 sps:$4 sm:$0xff]  }
 0x193   :  { %2495 = vmatpush2.bf16.msra.mxu0 %v6209_v41  ;;  %v6281_v41 = vld [vmem:[#allocation8 + $0x448] ss:$16 sps:$4 sm:$0xff]  }
 0x194   :  { %2536 = vmatpush2.bf16.msra.mxu1 %v6212_v44  ;;  %2496 = vmatprep.subr.bf16.mxu0 %v6217_v45  ;;  %v6289_v44 = vld [vmem:[#allocation8 + $0x42c] ss:$16 sps:$4 sm:$0xff]  }
 0x195   :  { %2537 = vmatprep.subr.bf16.mxu1 %v6220_v47  ;;  %v6292_v45 = vld [vmem:[#allocation8 + $0x62c] ss:$16 sps:$4 sm:$0xff]   ;;  %v6287_v47 = vld [vmem:[#allocation8 + $0x428] ss:$16 sps:$4 sm:$0xff]  }
 0x197   :  { %2497 = vmatpush2.bf16.msra.mxu0 %v6215_v48  ;;  %v6290_v48 = vld [vmem:[#allocation8 + $0x628] ss:$16 sps:$4 sm:$0xff]  }
 0x198   :  { %2538 = vmatpush2.bf16.msra.mxu1 %v6218_v49  ;;  %2498 = vmatprep.subr.bf16.mxu0 %v6223_v50  ;;  %v6295_v49 = vld [vmem:[#allocation8 + $0x40c] ss:$16 sps:$4 sm:$0xff]  }
 0x199   :  { %2539 = vmatprep.subr.bf16.mxu1 %v6226_v52  ;;  %v6298_v50 = vld [vmem:[#allocation8 + $0x60c] ss:$16 sps:$4 sm:$0xff]   ;;  %v6293_v52 = vld [vmem:[#allocation8 + $0x408] ss:$16 sps:$4 sm:$0xff]  }
 0x19b   :  { %2499 = vmatpush2.bf16.msra.mxu0 %v6221_v55  ;;  %v6296_v55 = vld [vmem:[#allocation8 + $0x608] ss:$16 sps:$4 sm:$0xff]  }
 0x19c   :  { %2540 = vmatpush2.bf16.msra.mxu1 %v6224_v61  ;;  %2500 = vmatprep.subr.bf16.mxu0 %v6229_v62  ;;  %v6301_v61 = vld [vmem:[#allocation8 + $0x5ec] ss:$16 sps:$4 sm:$0xff]  }
 0x19d   :  { %2541 = vmatprep.subr.bf16.mxu1 %v6232_v1  ;;  %v6304_v62 = vld [vmem:[#allocation8 + $0x7ec] ss:$16 sps:$4 sm:$0xff]   ;;  %v6299_v1 = vld [vmem:[#allocation8 + $0x5e8] ss:$16 sps:$4 sm:$0xff]  }
 0x19f   :  { %2501 = vmatpush2.bf16.msra.mxu0 %v6227_v3  ;;  %v6302_v3 = vld [vmem:[#allocation8 + $0x7e8] ss:$16 sps:$4 sm:$0xff]  }
 0x1a0   :  { %2542 = vmatpush2.bf16.msra.mxu1 %v6230_v4  ;;  %2502 = vmatprep.subr.bf16.mxu0 %v6235_v5  ;;  %v6307_v4 = vld [vmem:[#allocation8 + $0x5cc] ss:$16 sps:$4 sm:$0xff]  }
 0x1a1   :  { %2543 = vmatprep.subr.bf16.mxu1 %v6238_v12  ;;  %v6310_v5 = vld [vmem:[#allocation8 + $0x7cc] ss:$16 sps:$4 sm:$0xff]   ;;  %v6305_v12 = vld [vmem:[#allocation8 + $0x5c8] ss:$16 sps:$4 sm:$0xff]  }
 0x1a3   :  { %2503 = vmatpush2.bf16.msra.mxu0 %v6233_v13  ;;  %v6308_v13 = vld [vmem:[#allocation8 + $0x7c8] ss:$16 sps:$4 sm:$0xff]  }
 0x1a4   :  { %2544 = vmatpush2.bf16.msra.mxu1 %v6236_v14  ;;  %2504 = vmatprep.subr.bf16.mxu0 %v6241_v15  ;;  %v6313_v14 = vld [vmem:[#allocation8 + $0x5ac] ss:$16 sps:$4 sm:$0xff]  }
 0x1a5   :  { %2545 = vmatprep.subr.bf16.mxu1 %v6244_v16  ;;  %v6316_v15 = vld [vmem:[#allocation8 + $0x7ac] ss:$16 sps:$4 sm:$0xff]   ;;  %v6311_v16 = vld [vmem:[#allocation8 + $0x5a8] ss:$16 sps:$4 sm:$0xff]  }
 0x1a7   :  { %2505 = vmatpush2.bf16.msra.mxu0 %v6239_v18  ;;  %v6314_v18 = vld [vmem:[#allocation8 + $0x7a8] ss:$16 sps:$4 sm:$0xff]  }
 0x1a8   :  { %2546 = vmatpush2.bf16.msra.mxu1 %v6242_v19  ;;  %2506 = vmatprep.subr.bf16.mxu0 %v6247_v20  ;;  %v6319_v19 = vld [vmem:[#allocation8 + $0x58c] ss:$16 sps:$4 sm:$0xff]  }
 0x1a9   :  { %2547 = vmatprep.subr.bf16.mxu1 %v6250_v21  ;;  %v6322_v20 = vld [vmem:[#allocation8 + $0x78c] ss:$16 sps:$4 sm:$0xff]  }
 0x1aa   :  { %v7205_v21 = vld [vmem:[#allocation7 + $0x8] sm:$0xff] }
 0x1ab   :  { %2507 = vmatpush2.bf16.msra.mxu0 %v6245_v54  ;;  %v189_v54 = vrot.slane %v7205_v21, %v7124_v11 }
 0x1ac   :  { %2548 = vmatpush2.bf16.msra.mxu1 %v6248_v24  ;;  %2558 = vmatprep.subr.bf16.mxu0 %v6253_v59  ;;  %v197_v24 = vrot.slane %v7205_v21, %v7127_v0  ;;  %v6317_v59 = vld [vmem:[#allocation8 + $0x588] ss:$16 sps:$4 sm:$0xff]  }
 0x1ad   :  { %2599 = vmatprep.subr.bf16.mxu1 %v6256_v23  ;;  %v6320_v23 = vld [vmem:[#allocation8 + $0x788] ss:$16 sps:$4 sm:$0xff]  }
 0x1ae   :  { %2509 = vmatmul.mubr.bf16.vlgmr.msra.gmra.mxu0 %v7158_v58  ;;  %v6266_v58 = vld [vmem:[#allocation8 + $0x6a8] ss:$16 sps:$4 sm:$0xff]  }
 0x1af   :  { %2550 = vmatmul.mubr.bf16.vlgmr.msra.gmra.mxu1 %v7151_v53  ;;  %2559 = vmatpush1.bf16.msra.mxu0 %v6251_v26  ;;  %v6274_v53 = vld [vmem:[#allocation8 + $0x68c] ss:$16 sps:$4 sm:$0xff]  }
 0x1b0   :  { %2590 = vmatprep.mubr.bf16.mxu0 %v7175_v25  ;;  %2600 = vmatpush1.bf16.msra.mxu1 %v6254_v28  ;;  %v6272_v25 = vld [vmem:[#allocation8 + $0x688] ss:$16 sps:$4 sm:$0xff]   ;;  %v6325_v26 = vld [vmem:[#allocation8 + $0x56c] ss:$16 sps:$4 sm:$0xff]  }
 0x1b1   :  { %2631 = vmatprep.mubr.bf16.mxu1 %v7179_v29  ;;  %2560 = vmatprep.subr.bf16.mxu0 %v6259_v30  ;;  %v6275_v29 = vld [vmem:[#allocation8 + $0x468] ss:$16 sps:$4 sm:$0xff]   ;;  %v6328_v28 = vld [vmem:[#allocation8 + $0x76c] ss:$16 sps:$4 sm:$0xff]   ;;  %v595_v30 = vadd.f32 %v7149_v51, %v189_v54  ;;  %v6367_v54 = vld [vmem:[#allocation10 + $0x84] ss:$16 sps:$4 sm:$0xff]  }
 0x1b2   :  { %2601 = vmatprep.subr.bf16.mxu1 %v6262_v34  ;;  %v636_v34 = vadd.f32 %v7156_v57, %v197_v24  ;;  %v6340_v51 = vld [vmem:[#allocation8 + $0x72c] ss:$16 sps:$4 sm:$0xff]   ;;  %v6335_v57 = vld [vmem:[#allocation8 + $0x528] ss:$16 sps:$4 sm:$0xff]  }
 0x1b3   :  { %2561 = vmatpush1.bf16.msra.mxu0 %v6257_v35  ;;  %v6323_v35 = vld [vmem:[#allocation8 + $0x568] ss:$16 sps:$4 sm:$0xff]   ;;  %6811 = vtanh.f32 %v595_v30  ;;  %v6376_v30 = vld [vmem:[#allocation10 + $0x264] ss:$16 sps:$4 sm:$0xff]  }
 0x1b4   :  { %2602 = vmatpush1.bf16.msra.mxu1 %v6260_v36  ;;  %2562 = vmatprep.subr.bf16.mxu0 %v6265_v60  ;;  %v6326_v36 = vld [vmem:[#allocation8 + $0x768] ss:$16 sps:$4 sm:$0xff]   ;;  %v6331_v60 = vld [vmem:[#allocation8 + $0x54c] ss:$16 sps:$4 sm:$0xff]   ;;  %6813 = vtanh.f32 %v636_v34  ;;  %v6371_v34 = vld [vmem:[#allocation10 + $0x60] ss:$16 sps:$4 sm:$0xff]  }
 0x1b5   :  { %2603 = vmatprep.subr.bf16.mxu1 %v6268_v7  ;;  %v6334_v7 = vld [vmem:[#allocation8 + $0x74c] ss:$16 sps:$4 sm:$0xff]  }
 0x1b7   :  { %2563 = vmatpush1.bf16.msra.mxu0 %v6263_v37  ;;  %v6329_v37 = vld [vmem:[#allocation8 + $0x548] ss:$16 sps:$4 sm:$0xff]  }
 0x1b8   :  { %2604 = vmatpush1.bf16.msra.mxu1 %v6266_v58  ;;  %2564 = vmatprep.subr.bf16.mxu0 %v6271_v8  ;;  %v6332_v58 = vld [vmem:[#allocation8 + $0x748] ss:$16 sps:$4 sm:$0xff]   ;;  %v6337_v8 = vld [vmem:[#allocation8 + $0x52c] ss:$16 sps:$4 sm:$0xff]  }
 0x1b9   :  { %2605 = vmatprep.subr.bf16.mxu1 %v6274_v53  ;;  %v6338_v53 = vld [vmem:[#allocation8 + $0x728] ss:$16 sps:$4 sm:$0xff]  }
 0x1bb   :  { %2565 = vmatpush1.bf16.msra.mxu0 %v6269_v56  ;;  %v6343_v56 = vld [vmem:[#allocation8 + $0x50c] ss:$16 sps:$4 sm:$0xff]  }
 0x1bc   :  { %2606 = vmatpush1.bf16.msra.mxu1 %v6272_v25  ;;  %2566 = vmatprep.subr.bf16.mxu0 %v6277_v38  ;;  %v6346_v25 = vld [vmem:[#allocation8 + $0x70c] ss:$16 sps:$4 sm:$0xff]   ;;  %v6341_v38 = vld [vmem:[#allocation8 + $0x508] ss:$16 sps:$4 sm:$0xff]  }
 0x1bd   :  { %2607 = vmatprep.subr.bf16.mxu1 %v6280_v33  ;;  %v6344_v33 = vld [vmem:[#allocation8 + $0x708] ss:$16 sps:$4 sm:$0xff]  }
 0x1bf   :  { %2567 = vmatpush1.bf16.msra.mxu0 %v6275_v29  ;;  %v6349_v29 = vld [vmem:[#allocation10 + $0xe4] ss:$16 sps:$4 sm:$0xff]  }
 0x1c0   :  { %2608 = vmatpush1.bf16.msra.mxu1 %v6278_v31  ;;  %2568 = vmatprep.subr.bf16.mxu0 %v6283_v39  ;;  %v7216_v31 = vld [vmem:[%s7333_s4] sm:$0xf]  ;;  %v6352_v39 = vld [vmem:[#allocation10 + $0x2e4] ss:$16 sps:$4 sm:$0xff]  }
 0x1c1   :  { %2609 = vmatprep.subr.bf16.mxu1 %v6286_v40  ;;  %v6812_v40 = vpop.eup %6811 }
 0x1c3   :  { %2569 = vmatpush1.bf16.msra.mxu0 %v6281_v41  ;;  %v6347_v41 = vld [vmem:[#allocation10 + $0xe0] ss:$16 sps:$4 sm:$0xff]  }
 0x1c4   :  { %2610 = vmatpush1.bf16.msra.mxu1 %v6284_v42  ;;  %2570 = vmatprep.subr.bf16.mxu0 %v6289_v44  ;;  %v1015_v42 = vrot.slane %v7216_v31, %v7118_v9  ;;  %v6814_v44 = vpop.eup %6813 }
 0x1c5   :  { %2611 = vmatprep.subr.bf16.mxu1 %v6292_v45  ;;  %v6350_v45 = vld [vmem:[#allocation10 + $0x2e0] ss:$16 sps:$4 sm:$0xff]  }
 0x1c7   :  { %2571 = vmatpush1.bf16.msra.mxu0 %v6287_v47  ;;  %v1019_v47 = vrot.slane %v7216_v31, %v7124_v11 }
 0x1c8   :  { %2612 = vmatpush1.bf16.msra.mxu1 %v6290_v48  ;;  %2572 = vmatprep.subr.bf16.mxu0 %v6295_v49  ;;  %v6355_v48 = vld [vmem:[#allocation10 + $0xc4] ss:$16 sps:$4 sm:$0xff]  }
 0x1c9   :  { %2613 = vmatprep.subr.bf16.mxu1 %v6298_v50  ;;  %v7223_v50 = vpack.c.bf16 %v6812_v40, %v6812_v40  ;;  %v6398_v40 = vld [vmem:[#allocation10 + $0x3e0] ss:$16 sps:$4 sm:$0xff]  }
 0x1cb   :  { %2573 = vmatpush1.bf16.msra.mxu0 %v6293_v52  ;;  %v6358_v52 = vld [vmem:[#allocation10 + $0x2c4] ss:$16 sps:$4 sm:$0xff]  }
 0x1cc   :  { %2614 = vmatpush1.bf16.msra.mxu1 %v6296_v55  ;;  %2574 = vmatprep.subr.bf16.mxu0 %v6301_v61 }
 0x1cd   :  { %2615 = vmatprep.subr.bf16.mxu1 %v6304_v62  ;;  %v7226_v62 = vpack.c.bf16 %v6814_v44, %v6814_v44  ;;  %v6401_v44 = vld [vmem:[#allocation10 + $0x1c0] ss:$16 sps:$4 sm:$0xff]  }
 0x1cf   :  { %2575 = vmatpush2.bf16.msra.mxu0 %v6299_v1  ;;  %v6353_v1 = vld [vmem:[#allocation10 + $0xc0] ss:$16 sps:$4 sm:$0xff]  }
 0x1d0   :  { %2616 = vmatpush2.bf16.msra.mxu1 %v6302_v3  ;;  %2576 = vmatprep.subr.bf16.mxu0 %v6307_v4  ;;  %v6356_v4 = vld [vmem:[#allocation10 + $0x2c0] ss:$16 sps:$4 sm:$0xff]  }
 0x1d1   :  { %2617 = vmatprep.subr.bf16.mxu1 %v6310_v5  ;;  %v6361_v5 = vld [vmem:[#allocation10 + $0xa4] ss:$16 sps:$4 sm:$0xff]  }
 0x1d3   :  { %2577 = vmatpush2.bf16.msra.mxu0 %v6305_v12 }
 0x1d4   :  { %2618 = vmatpush2.bf16.msra.mxu1 %v6308_v13  ;;  %2578 = vmatprep.subr.bf16.mxu0 %v6313_v14 }
 0x1d5   :  { %2619 = vmatprep.subr.bf16.mxu1 %v6316_v15 }
 0x1d7   :  { %2579 = vmatpush2.bf16.msra.mxu0 %v6311_v16 }
 0x1d8   :  { %2620 = vmatpush2.bf16.msra.mxu1 %v6314_v18  ;;  %2580 = vmatprep.subr.bf16.mxu0 %v6319_v19  ;;  %v6359_v18 = vld [vmem:[#allocation10 + $0xa0] ss:$16 sps:$4 sm:$0xff]  }
 0x1d9   :  { %2621 = vmatprep.subr.bf16.mxu1 %v6322_v20  ;;  %v6362_v20 = vld [vmem:[#allocation10 + $0x2a0] ss:$16 sps:$4 sm:$0xff]  }
 0x1db   :  { %2581 = vmatpush2.bf16.msra.mxu0 %v6317_v59  ;;  %v6370_v59 = vld [vmem:[#allocation10 + $0x284] ss:$16 sps:$4 sm:$0xff]  }
 0x1dc   :  { %2622 = vmatpush2.bf16.msra.mxu1 %v6320_v23  ;;  %2582 = vmatprep.subr.bf16.mxu0 %v6325_v26  ;;  %v6365_v23 = vld [vmem:[#allocation10 + $0x80] ss:$16 sps:$4 sm:$0xff]  }
 0x1dd   :  { %2623 = vmatprep.subr.bf16.mxu1 %v6328_v28  ;;  %v6368_v26 = vld [vmem:[#allocation10 + $0x280] ss:$16 sps:$4 sm:$0xff]   ;;  %v6373_v28 = vld [vmem:[#allocation10 + $0x64] ss:$16 sps:$4 sm:$0xff]  }
 0x1df   :  { %2583 = vmatpush2.bf16.msra.mxu0 %v6323_v35  ;;  %v6374_v35 = vld [vmem:[#allocation10 + $0x260] ss:$16 sps:$4 sm:$0xff]  }
 0x1e0   :  { %2624 = vmatpush2.bf16.msra.mxu1 %v6326_v36  ;;  %2584 = vmatprep.subr.bf16.mxu0 %v6331_v60  ;;  %v6379_v36 = vld [vmem:[#allocation10 + $0x44] ss:$16 sps:$4 sm:$0xff]  }
 0x1e1   :  { %2625 = vmatprep.subr.bf16.mxu1 %v6334_v7  ;;  %v6382_v60 = vld [vmem:[#allocation10 + $0x244] ss:$16 sps:$4 sm:$0xff]   ;;  %v6377_v7 = vld [vmem:[#allocation10 + $0x40] ss:$16 sps:$4 sm:$0xff]  }
 0x1e3   :  { %2585 = vmatpush2.bf16.msra.mxu0 %v6329_v37  ;;  %v6380_v37 = vld [vmem:[#allocation10 + $0x240] ss:$16 sps:$4 sm:$0xff]  }
 0x1e4   :  { %2626 = vmatpush2.bf16.msra.mxu1 %v6332_v58  ;;  %2586 = vmatprep.subr.bf16.mxu0 %v6337_v8  ;;  %v6385_v58 = vld [vmem:[#allocation10 + $0x24] ss:$16 sps:$4 sm:$0xff]  }
 0x1e5   :  { %2627 = vmatprep.subr.bf16.mxu1 %v6340_v51  ;;  %v6388_v8 = vld [vmem:[#allocation10 + $0x224] ss:$16 sps:$4 sm:$0xff]   ;;  %v6383_v51 = vld [vmem:[#allocation10 + $0x20] ss:$16 sps:$4 sm:$0xff]  }
 0x1e7   :  { %2587 = vmatpush2.bf16.msra.mxu0 %v6335_v57  ;;  %v6386_v57 = vld [vmem:[#allocation10 + $0x220] ss:$16 sps:$4 sm:$0xff]  }
 0x1e8   :  { %2628 = vmatpush2.bf16.msra.mxu1 %v6338_v53  ;;  %2588 = vmatprep.subr.bf16.mxu0 %v6343_v56  ;;  %v6391_v53 = vld [vmem:[#allocation10 + $0x4] ss:$16 sps:$4 sm:$0xff]  }
 0x1e9   :  { %2629 = vmatprep.subr.bf16.mxu1 %v6346_v25  ;;  %v6394_v56 = vld [vmem:[#allocation10 + $0x204] ss:$16 sps:$4 sm:$0xff]   ;;  %v6389_v25 = vld [vmem:[#allocation10] ss:$16 sps:$4 sm:$0xff]  }
 0x1eb   :  { %2589 = vmatpush2.bf16.msra.mxu0 %v6341_v38  ;;  %v6392_v38 = vld [vmem:[#allocation10 + $0x200] ss:$16 sps:$4 sm:$0xff]  }
 0x1ec   :  { %2630 = vmatpush2.bf16.msra.mxu1 %v6344_v33  ;;  %4206 = vmatprep.subr.bf16.mxu0 %v6349_v29  ;;  %v6397_v33 = vld [vmem:[#allocation10 + $0x1e4] ss:$16 sps:$4 sm:$0xff]  }
 0x1ed   :  { %4247 = vmatprep.subr.bf16.mxu1 %v6352_v39  ;;  %v6400_v29 = vld [vmem:[#allocation10 + $0x3e4] ss:$16 sps:$4 sm:$0xff]   ;;  %v6395_v39 = vld [vmem:[#allocation10 + $0x1e0] ss:$16 sps:$4 sm:$0xff]  }
 0x1ee   :  { %2591 = vmatmul.mubr.bf16.vlgmr.msra.gmra.mxu0 %v7195_v2  ;;  %v2346_v49 = vpop.f32.mrf.mxu0 }
 0x1ef   :  { %2632 = vmatmul.mubr.bf16.vlgmr.msra.gmra.mxu1 %v7193_v63  ;;  %v2347_v55 = vadd.f32 %v2346_v49, %v1015_v42  ;;  %v2387_v61 = vpop.f32.mrf.mxu1  ;;  %4207 = vmatpush1.bf16.msra.mxu0 %v6347_v41  ;;  %v6364_v63 = vld [vmem:[#allocation10 + $0x2a4] ss:$16 sps:$4 sm:$0xff]   ;;  %v6407_v49 = vld [vmem:[#allocation10 + $0x1a0] ss:$16 sps:$4 sm:$0xff]  }
 0x1f0   :  { %4238 = vmatprep.mubr.bf16.mxu0 %v7223_v50  ;;  %4248 = vmatpush1.bf16.msra.mxu1 %v6350_v45  ;;  %v2348_v3 = vpop.f32.mrf.mxu0  ;;  %v6403_v41 = vld [vmem:[#allocation10 + $0x1c4] ss:$16 sps:$4 sm:$0xff]   ;;  %v6404_v45 = vld [vmem:[#allocation10 + $0x3c0] ss:$16 sps:$4 sm:$0xff]  }
 0x1f1   :  { %v7229_v12 = vadd.f32 %v2387_v61, %v2347_v55  ;;  %4279 = vmatprep.mubr.bf16.mxu1 %v7226_v62  ;;  %v2349_v2 = vadd.f32 %v2348_v3, %v1019_v47  ;;  %v2389_v13 = vpop.f32.mrf.mxu1  ;;  %4208 = vmatprep.subr.bf16.mxu0 %v6355_v48  ;;  %v6406_v42 = vld [vmem:[#allocation10 + $0x3c4] ss:$16 sps:$4 sm:$0xff]   ;;  %v6410_v55 = vld [vmem:[#allocation10 + $0x3a0] ss:$16 sps:$4 sm:$0xff]  }
 0x1f2   :  { %4249 = vmatprep.subr.bf16.mxu1 %v6358_v52  ;;  %v2350_v14 = vpop.f32.mrf.mxu0  ;;  %v6409_v47 = vld [vmem:[#allocation10 + $0x1a4] ss:$16 sps:$4 sm:$0xff]   ;;  %v185_v52 = vrot.slane %v7205_v21, %v7118_v9 }
 0x1f3   :  { %v7232_v15 = vadd.f32 %v2389_v13, %v2349_v2  ;;  %v2391_v16 = vpop.f32.mrf.mxu1  ;;  %4209 = vmatpush1.bf16.msra.mxu0 %v6353_v1  ;;  %v6412_v48 = vld [vmem:[#allocation10 + $0x3a4] ss:$16 sps:$4 sm:$0xff]   ;;  %v193_v1 = vrot.slane %v7205_v21, %v7121_v10  ;;  %v6416_v2 = vld [vmem:[#allocation10 + $0x380] ss:$16 sps:$4 sm:$0xff]  }
 0x1f4   :  { %4250 = vmatpush1.bf16.msra.mxu1 %v6356_v4  ;;  %v2351_v19 = vpop.f32.mrf.mxu0  ;;  %4210 = vmatprep.subr.bf16.mxu0 %v6361_v5  ;;  %v6415_v61 = vld [vmem:[#allocation10 + $0x184] ss:$16 sps:$4 sm:$0xff]   ;;  %v6413_v4 = vld [vmem:[#allocation10 + $0x180] ss:$16 sps:$4 sm:$0xff]   ;;  %v593_v5 = vadd.f32 %v7145_v43, %v185_v52 }
 0x1f5   :  { %v2392_v24 = vpop.f32.mrf.mxu1  ;;  %4251 = vmatprep.subr.bf16.mxu1 %v6364_v63  ;;  %v6418_v3 = vld [vmem:[#allocation10 + $0x384] ss:$16 sps:$4 sm:$0xff]   ;;  %v634_v63 = vadd.f32 %v7147_v46, %v193_v1  ;;  %v6419_v16 = vld [vmem:[#allocation10 + $0x160] ss:$16 sps:$4 sm:$0xff]  }
 0x1f6   :  { %v6421_v13 = vld [vmem:[#allocation10 + $0x164] ss:$16 sps:$4 sm:$0xff]   ;;  %6815 = vtanh.f32 %v593_v5  ;;  %v6422_v21 = vld [vmem:[#allocation10 + $0x360] ss:$16 sps:$4 sm:$0xff]  }
 0x1f7   :  { %4211 = vmatpush1.bf16.msra.mxu0 %v6359_v18  ;;  %v6424_v14 = vld [vmem:[#allocation10 + $0x364] ss:$16 sps:$4 sm:$0xff]   ;;  %6817 = vtanh.f32 %v634_v63  ;;  %v6425_v43 = vld [vmem:[#allocation10 + $0x140] ss:$16 sps:$4 sm:$0xff]  }
 0x1f8   :  { %4252 = vmatpush1.bf16.msra.mxu1 %v6362_v20  ;;  %4212 = vmatprep.subr.bf16.mxu0 %v6367_v54  ;;  %v6427_v18 = vld [vmem:[#allocation10 + $0x144] ss:$16 sps:$4 sm:$0xff]   ;;  %6819 = vtanh.f32 %v7177_v27  ;;  %v6428_v46 = vld [vmem:[#allocation10 + $0x340] ss:$16 sps:$4 sm:$0xff]  }
 0x1f9   :  { %4253 = vmatprep.subr.bf16.mxu1 %v6370_v59  ;;  %v6430_v19 = vld [vmem:[#allocation10 + $0x344] ss:$16 sps:$4 sm:$0xff]   ;;  %6821 = vtanh.f32 %v7181_v32  ;;  %v6431_v24 = vld [vmem:[#allocation10 + $0x120] ss:$16 sps:$4 sm:$0xff]  }
 0x1fa   :  { %v6433_v20 = vld [vmem:[#allocation10 + $0x124] ss:$16 sps:$4 sm:$0xff]   ;;  %v6434_v59 = vld [vmem:[#allocation10 + $0x320] ss:$16 sps:$4 sm:$0xff]   ;;  %6823 = vtanh.f32 %v7171_v17 }
 0x1fb   :  { %4213 = vmatpush1.bf16.msra.mxu0 %v6365_v23  ;;  %v6436_v54 = vld [vmem:[#allocation10 + $0x324] ss:$16 sps:$4 sm:$0xff]   ;;  %v6437_v27 = vld [vmem:[#allocation10 + $0x100] ss:$16 sps:$4 sm:$0xff]   ;;  %6825 = vtanh.f32 %v7173_v22 }
 0x1fc   :  { %4254 = vmatpush1.bf16.msra.mxu1 %v6368_v26  ;;  %4214 = vmatprep.subr.bf16.mxu0 %v6373_v28  ;;  %v6439_v23 = vld [vmem:[#allocation10 + $0x104] ss:$16 sps:$4 sm:$0xff]   ;;  %v6440_v32 = vld [vmem:[#allocation10 + $0x300] ss:$16 sps:$4 sm:$0xff]  }
 0x1fd   :  { %4255 = vmatprep.subr.bf16.mxu1 %v6376_v30  ;;  %v6442_v26 = vld [vmem:[#allocation10 + $0x304] ss:$16 sps:$4 sm:$0xff]   ;;  %v6455_v52 = vld [vmem:[#allocation10 + $0x4a0] ss:$16 sps:$4 sm:$0xff]  }
 0x1fe   :  { %v6445_v28 = vld [vmem:[#allocation10 + $0x4e4] ss:$16 sps:$4 sm:$0xff]   ;;  %v6464_v5 = vld [vmem:[#allocation10 + $0x680] ss:$16 sps:$4 sm:$0xff]  }
 0x1ff   :  { %4215 = vmatpush1.bf16.msra.mxu0 %v6371_v34  ;;  %v6448_v34 = vld [vmem:[#allocation10 + $0x6e4] ss:$16 sps:$4 sm:$0xff]   ;;  %v6467_v63 = vld [vmem:[#allocation10 + $0x460] ss:$16 sps:$4 sm:$0xff]  }
 0x200   :  { %4256 = vmatpush1.bf16.msra.mxu1 %v6374_v35  ;;  %4216 = vmatprep.subr.bf16.mxu0 %v6379_v36  ;;  %v6463_v1 = vld [vmem:[#allocation10 + $0x484] ss:$16 sps:$4 sm:$0xff]   ;;  %v6530_v17 = vld [vmem:[#allocation10 + $0x720] ss:$16 sps:$4 sm:$0xff]  }
 0x201   :  { %4257 = vmatprep.subr.bf16.mxu1 %v6382_v60  ;;  %v6443_v60 = vld [vmem:[#allocation10 + $0x4e0] ss:$16 sps:$4 sm:$0xff]  }
 0x202   :  { %v6533_v22 = vld [vmem:[#allocation10 + $0x500] ss:$16 sps:$4 sm:$0xff]  }
 0x203   :  { %4217 = vmatpush1.bf16.msra.mxu0 %v6377_v7  ;;  %v6816_v30 = vpop.eup %6815 }
 0x204   :  { %4258 = vmatpush1.bf16.msra.mxu1 %v6380_v37  ;;  %4218 = vmatprep.subr.bf16.mxu0 %v6385_v58  ;;  %v6818_v35 = vpop.eup %6817  ;;  %v7242_v37 = vpack.c.bf16 %v6816_v30, %v6816_v30  ;;  %v6446_v58 = vld [vmem:[#allocation10 + $0x6e0] ss:$16 sps:$4 sm:$0xff]  }
 0x205   :  { %4259 = vmatprep.subr.bf16.mxu1 %v6388_v8  ;;  %v6820_v36 = vpop.eup %6819  ;;  %v7244_v8 = vpack.c.bf16 %v6818_v35, %v6818_v35  ;;  %v6494_v30 = vld [vmem:[#allocation10 + $0x7e0] ss:$16 sps:$4 sm:$0xff]   ;;  %v6502_v35 = vld [vmem:[#allocation10 + $0x7c4] ss:$16 sps:$4 sm:$0xff]  }
 0x206   :  { %v6822_v7 = vpop.eup %6821 }
 0x207   :  { %4219 = vmatpush1.bf16.msra.mxu0 %v6383_v51  ;;  %v6451_v51 = vld [vmem:[#allocation10 + $0x4c4] ss:$16 sps:$4 sm:$0xff]  }
 0x208   :  { %4260 = vmatpush1.bf16.msra.mxu1 %v6386_v57  ;;  %4220 = vmatprep.subr.bf16.mxu0 %v6391_v53  ;;  %v7247_v53 = vpack.c.bf16 %v6820_v36, %v6820_v36  ;;  %v6497_v36 = vld [vmem:[#allocation10 + $0x5c0] ss:$16 sps:$4 sm:$0xff]  }
 0x209   :  { %4261 = vmatprep.subr.bf16.mxu1 %v6394_v56  ;;  %v6454_v56 = vld [vmem:[#allocation10 + $0x6c4] ss:$16 sps:$4 sm:$0xff]  }
 0x20b   :  { %4221 = vmatpush1.bf16.msra.mxu0 %v6389_v25 }
 0x20c   :  { %4262 = vmatpush1.bf16.msra.mxu1 %v6392_v38  ;;  %4222 = vmatprep.subr.bf16.mxu0 %v6397_v33  ;;  %v7251_v33 = vpack.c.bf16 %v6822_v7, %v6822_v7  ;;  %v6505_v7 = vld [vmem:[#allocation10 + $0x5a4] ss:$16 sps:$4 sm:$0xff]  }
 0x20d   :  { %4263 = vmatprep.subr.bf16.mxu1 %v6400_v29  ;;  %v6449_v29 = vld [vmem:[#allocation10 + $0x4c0] ss:$16 sps:$4 sm:$0xff]  }
 0x20f   :  { %4223 = vmatpush2.bf16.msra.mxu0 %v6395_v39 }
 0x210   :  { %4264 = vmatpush2.bf16.msra.mxu1 %v6398_v40  ;;  %4224 = vmatprep.subr.bf16.mxu0 %v6403_v41  ;;  %v6452_v40 = vld [vmem:[#allocation10 + $0x6c0] ss:$16 sps:$4 sm:$0xff]   ;;  %v6457_v41 = vld [vmem:[#allocation10 + $0x4a4] ss:$16 sps:$4 sm:$0xff]  }
 0x211   :  { %4265 = vmatprep.subr.bf16.mxu1 %v6406_v42 }
 0x213   :  { %4225 = vmatpush2.bf16.msra.mxu0 %v6401_v44 }
 0x214   :  { %4266 = vmatpush2.bf16.msra.mxu1 %v6404_v45  ;;  %4226 = vmatprep.subr.bf16.mxu0 %v6409_v47  ;;  %v6460_v45 = vld [vmem:[#allocation10 + $0x6a4] ss:$16 sps:$4 sm:$0xff]  }
 0x215   :  { %4267 = vmatprep.subr.bf16.mxu1 %v6412_v48 }
 0x217   :  { %4227 = vmatpush2.bf16.msra.mxu0 %v6407_v49 }
 0x218   :  { %4268 = vmatpush2.bf16.msra.mxu1 %v6410_v55  ;;  %4228 = vmatprep.subr.bf16.mxu0 %v6415_v61  ;;  %v6458_v61 = vld [vmem:[#allocation10 + $0x6a0] ss:$16 sps:$4 sm:$0xff]  }
 0x219   :  { %4269 = vmatprep.subr.bf16.mxu1 %v6418_v3 }
 0x21b   :  { %4229 = vmatpush2.bf16.msra.mxu0 %v6413_v4  ;;  %v6466_v4 = vld [vmem:[#allocation10 + $0x684] ss:$16 sps:$4 sm:$0xff]  }
 0x21c   :  { %4270 = vmatpush2.bf16.msra.mxu1 %v6416_v2  ;;  %4230 = vmatprep.subr.bf16.mxu0 %v6421_v13  ;;  %v6469_v2 = vld [vmem:[#allocation10 + $0x464] ss:$16 sps:$4 sm:$0xff]  }
 0x21d   :  { %4271 = vmatprep.subr.bf16.mxu1 %v6424_v14  ;;  %v6472_v13 = vld [vmem:[#allocation10 + $0x664] ss:$16 sps:$4 sm:$0xff]   ;;  %v6470_v14 = vld [vmem:[#allocation10 + $0x660] ss:$16 sps:$4 sm:$0xff]  }
 0x21f   :  { %4231 = vmatpush2.bf16.msra.mxu0 %v6419_v16  ;;  %v6475_v16 = vld [vmem:[#allocation10 + $0x444] ss:$16 sps:$4 sm:$0xff]  }
 0x220   :  { %4272 = vmatpush2.bf16.msra.mxu1 %v6422_v21  ;;  %4232 = vmatprep.subr.bf16.mxu0 %v6427_v18  ;;  %v6478_v21 = vld [vmem:[#allocation10 + $0x644] ss:$16 sps:$4 sm:$0xff]   ;;  %v6473_v18 = vld [vmem:[#allocation10 + $0x440] ss:$16 sps:$4 sm:$0xff]  }
 0x221   :  { %4273 = vmatprep.subr.bf16.mxu1 %v6430_v19  ;;  %v6476_v19 = vld [vmem:[#allocation10 + $0x640] ss:$16 sps:$4 sm:$0xff]  }
 0x223   :  { %4233 = vmatpush2.bf16.msra.mxu0 %v6425_v43  ;;  %v6481_v43 = vld [vmem:[#allocation10 + $0x424] ss:$16 sps:$4 sm:$0xff]  }
 0x224   :  { %4274 = vmatpush2.bf16.msra.mxu1 %v6428_v46  ;;  %4234 = vmatprep.subr.bf16.mxu0 %v6433_v20  ;;  %v6484_v46 = vld [vmem:[#allocation10 + $0x624] ss:$16 sps:$4 sm:$0xff]   ;;  %v6479_v20 = vld [vmem:[#allocation10 + $0x420] ss:$16 sps:$4 sm:$0xff]  }
 0x225   :  { %4275 = vmatprep.subr.bf16.mxu1 %v6436_v54  ;;  %v6482_v54 = vld [vmem:[#allocation10 + $0x620] ss:$16 sps:$4 sm:$0xff]  }
 0x227   :  { %4235 = vmatpush2.bf16.msra.mxu0 %v6431_v24  ;;  %v6487_v24 = vld [vmem:[#allocation10 + $0x404] ss:$16 sps:$4 sm:$0xff]  }
 0x228   :  { %4276 = vmatpush2.bf16.msra.mxu1 %v6434_v59  ;;  %4236 = vmatprep.subr.bf16.mxu0 %v6439_v23  ;;  %v6490_v59 = vld [vmem:[#allocation10 + $0x604] ss:$16 sps:$4 sm:$0xff]   ;;  %v6485_v23 = vld [vmem:[#allocation10 + $0x400] ss:$16 sps:$4 sm:$0xff]  }
 0x229   :  { %4277 = vmatprep.subr.bf16.mxu1 %v6442_v26  ;;  %v6488_v26 = vld [vmem:[#allocation10 + $0x600] ss:$16 sps:$4 sm:$0xff]  }
 0x22b   :  { %4237 = vmatpush2.bf16.msra.mxu0 %v6437_v27  ;;  %v6493_v27 = vld [vmem:[#allocation10 + $0x5e4] ss:$16 sps:$4 sm:$0xff]  }
 0x22c   :  { %4278 = vmatpush2.bf16.msra.mxu1 %v6440_v32  ;;  %4288 = vmatprep.subr.bf16.mxu0 %v6445_v28  ;;  %v6496_v32 = vld [vmem:[#allocation10 + $0x7e4] ss:$16 sps:$4 sm:$0xff]   ;;  %v6491_v28 = vld [vmem:[#allocation10 + $0x5e0] ss:$16 sps:$4 sm:$0xff]  }
 0x22d   :  { %4329 = vmatprep.subr.bf16.mxu1 %v6448_v34  ;;  %v6499_v34 = vld [vmem:[#allocation10 + $0x5c4] ss:$16 sps:$4 sm:$0xff]  }
 0x22e   :  { %v2428_v57 = vpop.f32.mrf.mxu0  ;;  %4239 = vmatmul.mubr.bf16.vlgmr.msra.gmra.mxu0 %v7242_v37 }
 0x22f   :  { %v2429_v25 = vadd.f32 %v2428_v57, %v7229_v12  ;;  %v2469_v38 = vpop.f32.mrf.mxu1  ;;  %4280 = vmatmul.mubr.bf16.vlgmr.msra.gmra.mxu1 %v7244_v8  ;;  %4289 = vmatpush1.bf16.msra.mxu0 %v6443_v60  ;;  %v6500_v60 = vld [vmem:[#allocation10 + $0x7c0] ss:$16 sps:$4 sm:$0xff]  }
 0x230   :  { %4320 = vmatprep.mubr.bf16.mxu0 %v7247_v53  ;;  %4330 = vmatpush1.bf16.msra.mxu1 %v6446_v58  ;;  %v2430_v39 = vpop.f32.mrf.mxu0  ;;  %v6508_v58 = vld [vmem:[#allocation10 + $0x7a4] ss:$16 sps:$4 sm:$0xff]   ;;  %v6506_v57 = vld [vmem:[#allocation10 + $0x7a0] ss:$16 sps:$4 sm:$0xff]  }
 0x231   :  { %v7254_v42 = vadd.f32 %v2469_v38, %v2429_v25  ;;  %4361 = vmatprep.mubr.bf16.mxu1 %v7251_v33  ;;  %v2431_v44 = vadd.f32 %v2430_v39, %v7232_v15  ;;  %v2471_v12 = vpop.f32.mrf.mxu1  ;;  %4290 = vmatprep.subr.bf16.mxu0 %v6451_v51  ;;  %v6461_v15 = vld [vmem:[#allocation10 + $0x480] ss:$16 sps:$4 sm:$0xff]   ;;  %v6514_v25 = vld [vmem:[#allocation10 + $0x784] ss:$16 sps:$4 sm:$0xff]  }
 0x232   :  { %v2432_v47 = vpop.f32.mrf.mxu0  ;;  %4331 = vmatprep.subr.bf16.mxu1 %v6454_v56  ;;  %v6503_v51 = vld [vmem:[#allocation10 + $0x5a0] ss:$16 sps:$4 sm:$0xff]   ;;  %v6511_v56 = vld [vmem:[#allocation10 + $0x584] ss:$16 sps:$4 sm:$0xff]  }
 0x233   :  { %v7258_v48 = vadd.f32 %v2471_v12, %v2431_v44  ;;  %v2473_v49 = vpop.f32.mrf.mxu1  ;;  %4291 = vmatpush1.bf16.msra.mxu0 %v6449_v29  ;;  %v6509_v38 = vld [vmem:[#allocation10 + $0x580] ss:$16 sps:$4 sm:$0xff]   ;;  %v6517_v39 = vld [vmem:[#allocation10 + $0x564] ss:$16 sps:$4 sm:$0xff]  }
 0x234   :  { %4332 = vmatpush1.bf16.msra.mxu1 %v6452_v40  ;;  %v2433_v55 = vpop.f32.mrf.mxu0  ;;  %4292 = vmatprep.subr.bf16.mxu0 %v6457_v41  ;;  %v6512_v29 = vld [vmem:[#allocation10 + $0x780] ss:$16 sps:$4 sm:$0xff]   ;;  %v6520_v40 = vld [vmem:[#allocation10 + $0x764] ss:$16 sps:$4 sm:$0xff]  }
 0x235   :  { %v2474_v3 = vpop.f32.mrf.mxu1  ;;  %4333 = vmatprep.subr.bf16.mxu1 %v6460_v45  ;;  %v6515_v41 = vld [vmem:[#allocation10 + $0x560] ss:$16 sps:$4 sm:$0xff]   ;;  %v6523_v12 = vld [vmem:[#allocation10 + $0x544] ss:$16 sps:$4 sm:$0xff]   ;;  %6827 = vtanh.f32 %v7258_v48  ;;  %v6728_v48 = vld [vmem:[#allocation10 + $0x708] ss:$16 sps:$4 sm:$0xff]  }
 0x236   :  { %v6518_v44 = vld [vmem:[#allocation10 + $0x760] ss:$16 sps:$4 sm:$0xff]   ;;  %v6526_v45 = vld [vmem:[#allocation10 + $0x744] ss:$16 sps:$4 sm:$0xff]  }
 0x237   :  { %4293 = vmatpush1.bf16.msra.mxu0 %v6455_v52  ;;  %v6521_v47 = vld [vmem:[#allocation10 + $0x540] ss:$16 sps:$4 sm:$0xff]   ;;  %v6529_v52 = vld [vmem:[#allocation10 + $0x524] ss:$16 sps:$4 sm:$0xff]  }
 0x238   :  { %4334 = vmatpush1.bf16.msra.mxu1 %v6458_v61  ;;  %4294 = vmatprep.subr.bf16.mxu0 %v6463_v1  ;;  %v6524_v49 = vld [vmem:[#allocation10 + $0x740] ss:$16 sps:$4 sm:$0xff]   ;;  %v6532_v55 = vld [vmem:[#allocation10 + $0x724] ss:$16 sps:$4 sm:$0xff]  }
 0x239   :  { %4335 = vmatprep.subr.bf16.mxu1 %v6466_v4  ;;  %v6527_v61 = vld [vmem:[#allocation10 + $0x520] ss:$16 sps:$4 sm:$0xff]   ;;  %v6535_v1 = vld [vmem:[#allocation10 + $0x504] ss:$16 sps:$4 sm:$0xff]  }
 0x23a   :  { %v6538_v3 = vld [vmem:[#allocation10 + $0x704] ss:$16 sps:$4 sm:$0xff]   ;;  %v6536_v4 = vld [vmem:[#allocation10 + $0x700] ss:$16 sps:$4 sm:$0xff]  }
 0x23b   :  { %4295 = vmatpush1.bf16.msra.mxu0 %v6461_v15  ;;  %v6541_v15 = vld [vmem:[#allocation10 + $0xec] ss:$16 sps:$4 sm:$0xff]  }
 0x23c   :  { %4336 = vmatpush1.bf16.msra.mxu1 %v6464_v5  ;;  %4296 = vmatprep.subr.bf16.mxu0 %v6469_v2  ;;  %v6824_v5 = vpop.eup %6823  ;;  %v6544_v2 = vld [vmem:[#allocation10 + $0x2ec] ss:$16 sps:$4 sm:$0xff]  }
 0x23d   :  { %4337 = vmatprep.subr.bf16.mxu1 %v6472_v13  ;;  %v6826_v13 = vpop.eup %6825 }
 0x23f   :  { %4297 = vmatpush1.bf16.msra.mxu0 %v6467_v63  ;;  %v1023_v63 = vrot.slane %v7216_v31, %v7121_v10 }
 0x240   :  { %4338 = vmatpush1.bf16.msra.mxu1 %v6470_v14  ;;  %4298 = vmatprep.subr.bf16.mxu0 %v6475_v16  ;;  %v6539_v14 = vld [vmem:[#allocation10 + $0xe8] ss:$16 sps:$4 sm:$0xff]   ;;  %v7264_v16 = vpack.c.bf16 %v6824_v5, %v6824_v5  ;;  %v6595_v5 = vld [vmem:[#allocation10 + $0x1cc] ss:$16 sps:$4 sm:$0xff]  }
 0x241   :  { %4339 = vmatprep.subr.bf16.mxu1 %v6478_v21  ;;  %v6542_v21 = vld [vmem:[#allocation10 + $0x2e8] ss:$16 sps:$4 sm:$0xff]  }
 0x243   :  { %4299 = vmatpush1.bf16.msra.mxu0 %v6473_v18  ;;  %v7266_v18 = vpack.c.bf16 %v6826_v13, %v6826_v13  ;;  %v6593_v13 = vld [vmem:[#allocation10 + $0x1c8] ss:$16 sps:$4 sm:$0xff]  }
 0x244   :  { %4340 = vmatpush1.bf16.msra.mxu1 %v6476_v19  ;;  %4300 = vmatprep.subr.bf16.mxu0 %v6481_v43  ;;  %v1027_v19 = vrot.slane %v7216_v31, %v7127_v0  ;;  %v6547_v43 = vld [vmem:[#allocation10 + $0xcc] ss:$16 sps:$4 sm:$0xff]  }
 0x245   :  { %4341 = vmatprep.subr.bf16.mxu1 %v6484_v46 }
 0x247   :  { %4301 = vmatpush1.bf16.msra.mxu0 %v6479_v20  ;;  %v6550_v20 = vld [vmem:[#allocation10 + $0x2cc] ss:$16 sps:$4 sm:$0xff]  }
 0x248   :  { %4342 = vmatpush1.bf16.msra.mxu1 %v6482_v54  ;;  %4302 = vmatprep.subr.bf16.mxu0 %v6487_v24 }
 0x249   :  { %4343 = vmatprep.subr.bf16.mxu1 %v6490_v59  ;;  %v6545_v59 = vld [vmem:[#allocation10 + $0xc8] ss:$16 sps:$4 sm:$0xff]  }
 0x24b   :  { %4303 = vmatpush1.bf16.msra.mxu0 %v6485_v23 }
 0x24c   :  { %4344 = vmatpush1.bf16.msra.mxu1 %v6488_v26  ;;  %4304 = vmatprep.subr.bf16.mxu0 %v6493_v27  ;;  %v6548_v26 = vld [vmem:[#allocation10 + $0x2c8] ss:$16 sps:$4 sm:$0xff]   ;;  %v6553_v27 = vld [vmem:[#allocation10 + $0xac] ss:$16 sps:$4 sm:$0xff]  }
 0x24d   :  { %4345 = vmatprep.subr.bf16.mxu1 %v6496_v32 }
 0x24f   :  { %4305 = vmatpush2.bf16.msra.mxu0 %v6491_v28 }
 0x250   :  { %4346 = vmatpush2.bf16.msra.mxu1 %v6494_v30  ;;  %4306 = vmatprep.subr.bf16.mxu0 %v6499_v34  ;;  %v6556_v30 = vld [vmem:[#allocation10 + $0x2ac] ss:$16 sps:$4 sm:$0xff]  }
 0x251   :  { %4347 = vmatprep.subr.bf16.mxu1 %v6502_v35 }
 0x253   :  { %4307 = vmatpush2.bf16.msra.mxu0 %v6497_v36 }
 0x254   :  { %4348 = vmatpush2.bf16.msra.mxu1 %v6500_v60  ;;  %4308 = vmatprep.subr.bf16.mxu0 %v6505_v7  ;;  %v6551_v60 = vld [vmem:[#allocation10 + $0xa8] ss:$16 sps:$4 sm:$0xff]  }
 0x255   :  { %4349 = vmatprep.subr.bf16.mxu1 %v6508_v58  ;;  %v6554_v7 = vld [vmem:[#allocation10 + $0x2a8] ss:$16 sps:$4 sm:$0xff]   ;;  %v6559_v58 = vld [vmem:[#allocation10 + $0x8c] ss:$16 sps:$4 sm:$0xff]  }
 0x257   :  { %4309 = vmatpush2.bf16.msra.mxu0 %v6503_v51 }
 0x258   :  { %4350 = vmatpush2.bf16.msra.mxu1 %v6506_v57  ;;  %4310 = vmatprep.subr.bf16.mxu0 %v6511_v56  ;;  %v6562_v57 = vld [vmem:[#allocation10 + $0x28c] ss:$16 sps:$4 sm:$0xff]   ;;  %v6560_v56 = vld [vmem:[#allocation10 + $0x288] ss:$16 sps:$4 sm:$0xff]  }
 0x259   :  { %4351 = vmatprep.subr.bf16.mxu1 %v6514_v25  ;;  %v6565_v25 = vld [vmem:[#allocation10 + $0x6c] ss:$16 sps:$4 sm:$0xff]  }
 0x25b   :  { %4311 = vmatpush2.bf16.msra.mxu0 %v6509_v38  ;;  %v6568_v38 = vld [vmem:[#allocation10 + $0x26c] ss:$16 sps:$4 sm:$0xff]  }
 0x25c   :  { %4352 = vmatpush2.bf16.msra.mxu1 %v6512_v29  ;;  %4312 = vmatprep.subr.bf16.mxu0 %v6517_v39  ;;  %v6563_v29 = vld [vmem:[#allocation10 + $0x68] ss:$16 sps:$4 sm:$0xff]  }
 0x25d   :  { %4353 = vmatprep.subr.bf16.mxu1 %v6520_v40  ;;  %v6566_v39 = vld [vmem:[#allocation10 + $0x268] ss:$16 sps:$4 sm:$0xff]   ;;  %v6571_v40 = vld [vmem:[#allocation10 + $0x4c] ss:$16 sps:$4 sm:$0xff]  }
 0x25f   :  { %4313 = vmatpush2.bf16.msra.mxu0 %v6515_v41  ;;  %v6574_v41 = vld [vmem:[#allocation10 + $0x24c] ss:$16 sps:$4 sm:$0xff]  }
 0x260   :  { %4354 = vmatpush2.bf16.msra.mxu1 %v6518_v44  ;;  %4314 = vmatprep.subr.bf16.mxu0 %v6523_v12  ;;  %v6569_v44 = vld [vmem:[#allocation10 + $0x48] ss:$16 sps:$4 sm:$0xff]  }
 0x261   :  { %4355 = vmatprep.subr.bf16.mxu1 %v6526_v45  ;;  %v6572_v12 = vld [vmem:[#allocation10 + $0x248] ss:$16 sps:$4 sm:$0xff]   ;;  %v6577_v45 = vld [vmem:[#allocation10 + $0x2c] ss:$16 sps:$4 sm:$0xff]  }
 0x263   :  { %4315 = vmatpush2.bf16.msra.mxu0 %v6521_v47  ;;  %v6580_v47 = vld [vmem:[#allocation10 + $0x22c] ss:$16 sps:$4 sm:$0xff]  }
 0x264   :  { %4356 = vmatpush2.bf16.msra.mxu1 %v6524_v49  ;;  %4316 = vmatprep.subr.bf16.mxu0 %v6529_v52  ;;  %v6575_v49 = vld [vmem:[#allocation10 + $0x28] ss:$16 sps:$4 sm:$0xff]  }
 0x265   :  { %4357 = vmatprep.subr.bf16.mxu1 %v6532_v55  ;;  %v6578_v52 = vld [vmem:[#allocation10 + $0x228] ss:$16 sps:$4 sm:$0xff]   ;;  %v6583_v55 = vld [vmem:[#allocation10 + $0xc] ss:$16 sps:$4 sm:$0xff]  }
 0x267   :  { %4317 = vmatpush2.bf16.msra.mxu0 %v6527_v61  ;;  %v6586_v61 = vld [vmem:[#allocation10 + $0x20c] ss:$16 sps:$4 sm:$0xff]  }
 0x268   :  { %4358 = vmatpush2.bf16.msra.mxu1 %v6530_v17  ;;  %4318 = vmatprep.subr.bf16.mxu0 %v6535_v1  ;;  %v6581_v17 = vld [vmem:[#allocation10 + $0x8] ss:$16 sps:$4 sm:$0xff]  }
 0x269   :  { %4359 = vmatprep.subr.bf16.mxu1 %v6538_v3  ;;  %v6584_v1 = vld [vmem:[#allocation10 + $0x208] ss:$16 sps:$4 sm:$0xff]   ;;  %v6589_v3 = vld [vmem:[#allocation10 + $0x1ec] ss:$16 sps:$4 sm:$0xff]  }
 0x26b   :  { %4319 = vmatpush2.bf16.msra.mxu0 %v6533_v22  ;;  %v6592_v22 = vld [vmem:[#allocation10 + $0x3ec] ss:$16 sps:$4 sm:$0xff]  }
 0x26c   :  { %4360 = vmatpush2.bf16.msra.mxu1 %v6536_v4  ;;  %4370 = vmatprep.subr.bf16.mxu0 %v6541_v15  ;;  %v6587_v4 = vld [vmem:[#allocation10 + $0x1e8] ss:$16 sps:$4 sm:$0xff]  }
 0x26d   :  { %4411 = vmatprep.subr.bf16.mxu1 %v6544_v2  ;;  %v6590_v15 = vld [vmem:[#allocation10 + $0x3e8] ss:$16 sps:$4 sm:$0xff]   ;;  %v6598_v2 = vld [vmem:[#allocation10 + $0x3cc] ss:$16 sps:$4 sm:$0xff]  }
 0x26e   :  { %v2510_v46 = vpop.f32.mrf.mxu0  ;;  %4321 = vmatmul.mubr.bf16.vlgmr.msra.gmra.mxu0 %v7264_v16 }
 0x26f   :  { %v2511_v54 = vadd.f32 %v2510_v46, %v1023_v63  ;;  %v2551_v24 = vpop.f32.mrf.mxu1  ;;  %4362 = vmatmul.mubr.bf16.vlgmr.msra.gmra.mxu1 %v7266_v18  ;;  %4371 = vmatpush1.bf16.msra.mxu0 %v6539_v14  ;;  %v6596_v63 = vld [vmem:[#allocation10 + $0x3c8] ss:$16 sps:$4 sm:$0xff]   ;;  %v6601_v14 = vld [vmem:[#allocation10 + $0x1ac] ss:$16 sps:$4 sm:$0xff]  }
 0x270   :  { %4402 = vmatprep.mubr.bf16.mxu0 %v7223_v50  ;;  %4412 = vmatpush1.bf16.msra.mxu1 %v6542_v21  ;;  %v2512_v23 = vpop.f32.mrf.mxu0  ;;  %v6604_v21 = vld [vmem:[#allocation10 + $0x3ac] ss:$16 sps:$4 sm:$0xff]  }
 0x271   :  { %v7273_v32 = vadd.f32 %v2551_v24, %v2511_v54  ;;  %4443 = vmatprep.mubr.bf16.mxu1 %v7226_v62  ;;  %v2513_v31 = vadd.f32 %v2512_v23, %v1027_v19  ;;  %v2553_v28 = vpop.f32.mrf.mxu1  ;;  %4372 = vmatprep.subr.bf16.mxu0 %v6547_v43  ;;  %v6557_v62 = vld [vmem:[#allocation10 + $0x88] ss:$16 sps:$4 sm:$0xff]   ;;  %v6607_v46 = vld [vmem:[#allocation10 + $0x18c] ss:$16 sps:$4 sm:$0xff]  }
 0x272   :  { %v2514_v34 = vpop.f32.mrf.mxu0  ;;  %4413 = vmatprep.subr.bf16.mxu1 %v6550_v20  ;;  %v6599_v19 = vld [vmem:[#allocation10 + $0x1a8] ss:$16 sps:$4 sm:$0xff]   ;;  %v6610_v20 = vld [vmem:[#allocation10 + $0x38c] ss:$16 sps:$4 sm:$0xff]  }
 0x273   :  { %v7276_v35 = vadd.f32 %v2553_v28, %v2513_v31  ;;  %v2555_v36 = vpop.f32.mrf.mxu1  ;;  %4373 = vmatpush1.bf16.msra.mxu0 %v6545_v59  ;;  %v6602_v43 = vld [vmem:[#allocation10 + $0x3a8] ss:$16 sps:$4 sm:$0xff]   ;;  %v6613_v59 = vld [vmem:[#allocation10 + $0x16c] ss:$16 sps:$4 sm:$0xff]  }
 0x274   :  { %4414 = vmatpush1.bf16.msra.mxu1 %v6548_v26  ;;  %v2515_v50 = vpop.f32.mrf.mxu0  ;;  %4374 = vmatprep.subr.bf16.mxu0 %v6553_v27  ;;  %v6605_v54 = vld [vmem:[#allocation10 + $0x188] ss:$16 sps:$4 sm:$0xff]   ;;  %v6616_v23 = vld [vmem:[#allocation10 + $0x36c] ss:$16 sps:$4 sm:$0xff]  }
 0x275   :  { %v2556_v51 = vpop.f32.mrf.mxu1  ;;  %4415 = vmatprep.subr.bf16.mxu1 %v6556_v30  ;;  %v6608_v24 = vld [vmem:[#allocation10 + $0x388] ss:$16 sps:$4 sm:$0xff]   ;;  %v6619_v31 = vld [vmem:[#allocation10 + $0x14c] ss:$16 sps:$4 sm:$0xff]  }
 0x276   :  { %v6611_v26 = vld [vmem:[#allocation10 + $0x168] ss:$16 sps:$4 sm:$0xff]   ;;  %v6622_v28 = vld [vmem:[#allocation10 + $0x34c] ss:$16 sps:$4 sm:$0xff]  }
 0x277   :  { %4375 = vmatpush1.bf16.msra.mxu0 %v6551_v60  ;;  %v6614_v27 = vld [vmem:[#allocation10 + $0x368] ss:$16 sps:$4 sm:$0xff]   ;;  %v6625_v36 = vld [vmem:[#allocation10 + $0x12c] ss:$16 sps:$4 sm:$0xff]  }
 0x278   :  { %4416 = vmatpush1.bf16.msra.mxu1 %v6554_v7  ;;  %4376 = vmatprep.subr.bf16.mxu0 %v6559_v58  ;;  %v6617_v30 = vld [vmem:[#allocation10 + $0x148] ss:$16 sps:$4 sm:$0xff]   ;;  %v6628_v60 = vld [vmem:[#allocation10 + $0x32c] ss:$16 sps:$4 sm:$0xff]  }
 0x279   :  { %4417 = vmatprep.subr.bf16.mxu1 %v6562_v57  ;;  %v6620_v34 = vld [vmem:[#allocation10 + $0x348] ss:$16 sps:$4 sm:$0xff]   ;;  %v6631_v58 = vld [vmem:[#allocation10 + $0x10c] ss:$16 sps:$4 sm:$0xff]  }
 0x27a   :  { %v6623_v50 = vld [vmem:[#allocation10 + $0x128] ss:$16 sps:$4 sm:$0xff]   ;;  %v6634_v51 = vld [vmem:[#allocation10 + $0x30c] ss:$16 sps:$4 sm:$0xff]  }
 0x27b   :  { %4377 = vmatpush1.bf16.msra.mxu0 %v6557_v62  ;;  %v6626_v7 = vld [vmem:[#allocation10 + $0x328] ss:$16 sps:$4 sm:$0xff]  }
 0x27c   :  { %4418 = vmatpush1.bf16.msra.mxu1 %v6560_v56  ;;  %4378 = vmatprep.subr.bf16.mxu0 %v6565_v25  ;;  %v6629_v57 = vld [vmem:[#allocation10 + $0x108] ss:$16 sps:$4 sm:$0xff]   ;;  %v6637_v56 = vld [vmem:[#allocation10 + $0x4ec] ss:$16 sps:$4 sm:$0xff]  }
 0x27d   :  { %4419 = vmatprep.subr.bf16.mxu1 %v6568_v38  ;;  %v6632_v62 = vld [vmem:[#allocation10 + $0x308] ss:$16 sps:$4 sm:$0xff]   ;;  %v6640_v25 = vld [vmem:[#allocation10 + $0x6ec] ss:$16 sps:$4 sm:$0xff]  }
 0x27e   :  { %v6635_v38 = vld [vmem:[#allocation10 + $0x4e8] ss:$16 sps:$4 sm:$0xff]  }
 0x27f   :  { %4379 = vmatpush1.bf16.msra.mxu0 %v6563_v29  ;;  %v6638_v29 = vld [vmem:[#allocation10 + $0x6e8] ss:$16 sps:$4 sm:$0xff]  }
 0x280   :  { %4420 = vmatpush1.bf16.msra.mxu1 %v6566_v39  ;;  %4380 = vmatprep.subr.bf16.mxu0 %v6571_v40  ;;  %v6643_v39 = vld [vmem:[#allocation10 + $0x4cc] ss:$16 sps:$4 sm:$0xff]  }
 0x281   :  { %4421 = vmatprep.subr.bf16.mxu1 %v6574_v41  ;;  %v6646_v41 = vld [vmem:[#allocation10 + $0x6cc] ss:$16 sps:$4 sm:$0xff]  }
 0x283   :  { %4381 = vmatpush1.bf16.msra.mxu0 %v6569_v44 }
 0x284   :  { %4422 = vmatpush1.bf16.msra.mxu1 %v6572_v12  ;;  %4382 = vmatprep.subr.bf16.mxu0 %v6577_v45  ;;  %v6641_v45 = vld [vmem:[#allocation10 + $0x4c8] ss:$16 sps:$4 sm:$0xff]  }
 0x285   :  { %4423 = vmatprep.subr.bf16.mxu1 %v6580_v47 }
 0x287   :  { %4383 = vmatpush1.bf16.msra.mxu0 %v6575_v49  ;;  %v6644_v49 = vld [vmem:[#allocation10 + $0x6c8] ss:$16 sps:$4 sm:$0xff]  }
 0x288   :  { %4424 = vmatpush1.bf16.msra.mxu1 %v6578_v52  ;;  %4384 = vmatprep.subr.bf16.mxu0 %v6583_v55  ;;  %v6649_v52 = vld [vmem:[#allocation10 + $0x4ac] ss:$16 sps:$4 sm:$0xff]  }
 0x289   :  { %4425 = vmatprep.subr.bf16.mxu1 %v6586_v61 }
 0x28b   :  { %4385 = vmatpush1.bf16.msra.mxu0 %v6581_v17  ;;  %v6647_v17 = vld [vmem:[#allocation10 + $0x4a8] ss:$16 sps:$4 sm:$0xff]  }
 0x28c   :  { %4426 = vmatpush1.bf16.msra.mxu1 %v6584_v1  ;;  %4386 = vmatprep.subr.bf16.mxu0 %v6589_v3  ;;  %v6650_v1 = vld [vmem:[#allocation10 + $0x6a8] ss:$16 sps:$4 sm:$0xff]   ;;  %v6655_v3 = vld [vmem:[#allocation10 + $0x48c] ss:$16 sps:$4 sm:$0xff]  }
 0x28d   :  { %4427 = vmatprep.subr.bf16.mxu1 %v6592_v22 }
 0x28f   :  { %4387 = vmatpush2.bf16.msra.mxu0 %v6587_v4  ;;  %v6658_v4 = vld [vmem:[#allocation10 + $0x68c] ss:$16 sps:$4 sm:$0xff]  }
 0x290   :  { %4428 = vmatpush2.bf16.msra.mxu1 %v6590_v15  ;;  %4388 = vmatprep.subr.bf16.mxu0 %v6595_v5  ;;  %v6653_v15 = vld [vmem:[#allocation10 + $0x488] ss:$16 sps:$4 sm:$0xff]   ;;  %v6661_v5 = vld [vmem:[#allocation10 + $0x46c] ss:$16 sps:$4 sm:$0xff]  }
 0x291   :  { %4429 = vmatprep.subr.bf16.mxu1 %v6598_v2  ;;  %v6664_v2 = vld [vmem:[#allocation10 + $0x66c] ss:$16 sps:$4 sm:$0xff]  }
 0x293   :  { %4389 = vmatpush2.bf16.msra.mxu0 %v6593_v13  ;;  %v6659_v13 = vld [vmem:[#allocation10 + $0x468] ss:$16 sps:$4 sm:$0xff]  }
 0x294   :  { %4430 = vmatpush2.bf16.msra.mxu1 %v6596_v63  ;;  %4390 = vmatprep.subr.bf16.mxu0 %v6601_v14  ;;  %v6662_v63 = vld [vmem:[#allocation10 + $0x668] ss:$16 sps:$4 sm:$0xff]   ;;  %v6667_v14 = vld [vmem:[#allocation10 + $0x44c] ss:$16 sps:$4 sm:$0xff]  }
 0x295   :  { %4431 = vmatprep.subr.bf16.mxu1 %v6604_v21  ;;  %v6670_v21 = vld [vmem:[#allocation10 + $0x64c] ss:$16 sps:$4 sm:$0xff]  }
 0x297   :  { %4391 = vmatpush2.bf16.msra.mxu0 %v6599_v19  ;;  %v6665_v19 = vld [vmem:[#allocation10 + $0x448] ss:$16 sps:$4 sm:$0xff]  }
 0x298   :  { %4432 = vmatpush2.bf16.msra.mxu1 %v6602_v43  ;;  %4392 = vmatprep.subr.bf16.mxu0 %v6607_v46  ;;  %v6668_v43 = vld [vmem:[#allocation10 + $0x648] ss:$16 sps:$4 sm:$0xff]   ;;  %v6673_v46 = vld [vmem:[#allocation10 + $0x42c] ss:$16 sps:$4 sm:$0xff]  }
 0x299   :  { %4433 = vmatprep.subr.bf16.mxu1 %v6610_v20  ;;  %v6676_v20 = vld [vmem:[#allocation10 + $0x62c] ss:$16 sps:$4 sm:$0xff]  }
 0x29b   :  { %4393 = vmatpush2.bf16.msra.mxu0 %v6605_v54  ;;  %v6671_v54 = vld [vmem:[#allocation10 + $0x428] ss:$16 sps:$4 sm:$0xff]  }
 0x29c   :  { %4434 = vmatpush2.bf16.msra.mxu1 %v6608_v24  ;;  %4394 = vmatprep.subr.bf16.mxu0 %v6613_v59  ;;  %v6674_v24 = vld [vmem:[#allocation10 + $0x628] ss:$16 sps:$4 sm:$0xff]   ;;  %v6679_v59 = vld [vmem:[#allocation10 + $0x40c] ss:$16 sps:$4 sm:$0xff]  }
 0x29d   :  { %4435 = vmatprep.subr.bf16.mxu1 %v6616_v23  ;;  %v6682_v23 = vld [vmem:[#allocation10 + $0x60c] ss:$16 sps:$4 sm:$0xff]  }
 0x29f   :  { %4395 = vmatpush2.bf16.msra.mxu0 %v6611_v26  ;;  %v6677_v26 = vld [vmem:[#allocation10 + $0x408] ss:$16 sps:$4 sm:$0xff]  }
 0x2a0   :  { %4436 = vmatpush2.bf16.msra.mxu1 %v6614_v27  ;;  %4396 = vmatprep.subr.bf16.mxu0 %v6619_v31  ;;  %v6680_v27 = vld [vmem:[#allocation10 + $0x608] ss:$16 sps:$4 sm:$0xff]   ;;  %v6685_v31 = vld [vmem:[#allocation10 + $0x5ec] ss:$16 sps:$4 sm:$0xff]  }
 0x2a1   :  { %4437 = vmatprep.subr.bf16.mxu1 %v6622_v28  ;;  %v6688_v28 = vld [vmem:[#allocation10 + $0x7ec] ss:$16 sps:$4 sm:$0xff]  }
 0x2a3   :  { %4397 = vmatpush2.bf16.msra.mxu0 %v6617_v30  ;;  %v6683_v30 = vld [vmem:[#allocation10 + $0x5e8] ss:$16 sps:$4 sm:$0xff]  }
 0x2a4   :  { %4438 = vmatpush2.bf16.msra.mxu1 %v6620_v34  ;;  %4398 = vmatprep.subr.bf16.mxu0 %v6625_v36  ;;  %v6686_v34 = vld [vmem:[#allocation10 + $0x7e8] ss:$16 sps:$4 sm:$0xff]   ;;  %v6691_v36 = vld [vmem:[#allocation10 + $0x5cc] ss:$16 sps:$4 sm:$0xff]  }
 0x2a5   :  { %4439 = vmatprep.subr.bf16.mxu1 %v6628_v60  ;;  %v6694_v60 = vld [vmem:[#allocation10 + $0x7cc] ss:$16 sps:$4 sm:$0xff]  }
 0x2a7   :  { %4399 = vmatpush2.bf16.msra.mxu0 %v6623_v50  ;;  %v6689_v50 = vld [vmem:[#allocation10 + $0x5c8] ss:$16 sps:$4 sm:$0xff]  }
 0x2a8   :  { %4440 = vmatpush2.bf16.msra.mxu1 %v6626_v7  ;;  %4400 = vmatprep.subr.bf16.mxu0 %v6631_v58  ;;  %v6692_v7 = vld [vmem:[#allocation10 + $0x7c8] ss:$16 sps:$4 sm:$0xff]   ;;  %v6697_v58 = vld [vmem:[#allocation10 + $0x5ac] ss:$16 sps:$4 sm:$0xff]  }
 0x2a9   :  { %4441 = vmatprep.subr.bf16.mxu1 %v6634_v51  ;;  %v6700_v51 = vld [vmem:[#allocation10 + $0x7ac] ss:$16 sps:$4 sm:$0xff]  }
 0x2ab   :  { %4401 = vmatpush2.bf16.msra.mxu0 %v6629_v57  ;;  %v6695_v57 = vld [vmem:[#allocation10 + $0x5a8] ss:$16 sps:$4 sm:$0xff]  }
 0x2ac   :  { %4442 = vmatpush2.bf16.msra.mxu1 %v6632_v62  ;;  %4452 = vmatprep.subr.bf16.mxu0 %v6637_v56  ;;  %v6698_v62 = vld [vmem:[#allocation10 + $0x7a8] ss:$16 sps:$4 sm:$0xff]   ;;  %v6703_v56 = vld [vmem:[#allocation10 + $0x58c] ss:$16 sps:$4 sm:$0xff]  }
 0x2ad   :  { %4493 = vmatprep.subr.bf16.mxu1 %v6640_v25  ;;  %v6706_v25 = vld [vmem:[#allocation10 + $0x78c] ss:$16 sps:$4 sm:$0xff]  }
 0x2ae   :  { %v2592_v40 = vpop.f32.mrf.mxu0  ;;  %4403 = vmatmul.mubr.bf16.vlgmr.msra.gmra.mxu0 %v7242_v37 }
 0x2af   :  { %v2593_v44 = vadd.f32 %v2592_v40, %v7273_v32  ;;  %v2633_v12 = vpop.f32.mrf.mxu1  ;;  %4444 = vmatmul.mubr.bf16.vlgmr.msra.gmra.mxu1 %v7244_v8  ;;  %4453 = vmatpush1.bf16.msra.mxu0 %v6635_v38  ;;  %v6652_v32 = vld [vmem:[#allocation10 + $0x6ac] ss:$16 sps:$4 sm:$0xff]  }
 0x2b0   :  { %4484 = vmatprep.mubr.bf16.mxu0 %v7247_v53  ;;  %4494 = vmatpush1.bf16.msra.mxu1 %v6638_v29  ;;  %v7282_v47 = vpop.f32.mrf.mxu0  ;;  %v6701_v29 = vld [vmem:[#allocation10 + $0x588] ss:$16 sps:$4 sm:$0xff]   ;;  %v6709_v40 = vld [vmem:[#allocation10 + $0x56c] ss:$16 sps:$4 sm:$0xff]  }
 0x2b1   :  { %v7284_v55 = vadd.f32 %v2633_v12, %v2593_v44  ;;  %4525 = vmatprep.mubr.bf16.mxu1 %v7251_v33  ;;  %v7287_v37 = vpop.f32.mrf.mxu1  ;;  %4454 = vmatprep.subr.bf16.mxu0 %v6643_v39  ;;  %v6656_v33 = vld [vmem:[#allocation10 + $0x688] ss:$16 sps:$4 sm:$0xff]   ;;  %v2595_v38 = vadd.f32 %v7282_v47, %v7276_v35 }
 0x2b2   :  { %v2596_v61 = vpop.f32.mrf.mxu0  ;;  %4495 = vmatprep.subr.bf16.mxu1 %v6646_v41  ;;  %v6704_v39 = vld [vmem:[#allocation10 + $0x788] ss:$16 sps:$4 sm:$0xff]   ;;  %v6712_v41 = vld [vmem:[#allocation10 + $0x76c] ss:$16 sps:$4 sm:$0xff]  }
 0x2b3   :  { %v2637_v8 = vpop.f32.mrf.mxu1  ;;  %4455 = vmatpush1.bf16.msra.mxu0 %v6641_v45  ;;  %v2636_v44 = vadd.f32 %v7287_v37, %v2595_v38  ;;  %v6707_v12 = vld [vmem:[#allocation10 + $0x568] ss:$16 sps:$4 sm:$0xff]   ;;  %v6724_v61 = vld [vmem:[#allocation10 + $0x72c] ss:$16 sps:$4 sm:$0xff]  }
 0x2b4   :  { %4496 = vmatpush1.bf16.msra.mxu1 %v6644_v49  ;;  %v2597_v53 = vpop.f32.mrf.mxu0  ;;  %4456 = vmatprep.subr.bf16.mxu0 %v6649_v52  ;;  %v6710_v45 = vld [vmem:[#allocation10 + $0x768] ss:$16 sps:$4 sm:$0xff]   ;;  %v6715_v49 = vld [vmem:[#allocation10 + $0x54c] ss:$16 sps:$4 sm:$0xff]  }
 0x2b5   :  { %v2638_v22 = vpop.f32.mrf.mxu1  ;;  %4497 = vmatprep.subr.bf16.mxu1 %v6652_v32  ;;  %v6718_v52 = vld [vmem:[#allocation10 + $0x74c] ss:$16 sps:$4 sm:$0xff]   ;;  %6829 = vtanh.f32 %v2636_v44  ;;  %v6713_v35 = vld [vmem:[#allocation10 + $0x548] ss:$16 sps:$4 sm:$0xff]  }
 0x2b6   :  { %v6716_v47 = vld [vmem:[#allocation10 + $0x748] ss:$16 sps:$4 sm:$0xff]   ;;  %v6721_v32 = vld [vmem:[#allocation10 + $0x52c] ss:$16 sps:$4 sm:$0xff]   ;;  %6831 = vtanh.f32 %v7254_v42 }
 0x2b7   :  { %4457 = vmatpush1.bf16.msra.mxu0 %v6647_v17  ;;  %v6719_v37 = vld [vmem:[#allocation10 + $0x528] ss:$16 sps:$4 sm:$0xff]   ;;  %v6727_v17 = vld [vmem:[#allocation10 + $0x50c] ss:$16 sps:$4 sm:$0xff]   ;;  %6833 = vtanh.f32 %v7284_v55  ;;  %v6761_v55 = vld [vmem:[#allocation11] sm:$0xff]  }
 0x2b8   :  { %4498 = vmatpush1.bf16.msra.mxu1 %v6650_v1  ;;  %4458 = vmatprep.subr.bf16.mxu0 %v6655_v3  ;;  %v6722_v8 = vld [vmem:[#allocation10 + $0x728] ss:$16 sps:$4 sm:$0xff]   ;;  %v6730_v53 = vld [vmem:[#allocation10 + $0x70c] ss:$16 sps:$4 sm:$0xff]  }
 0x2b9   :  { %4499 = vmatprep.subr.bf16.mxu1 %v6658_v4  ;;  %v6725_v1 = vld [vmem:[#allocation10 + $0x508] ss:$16 sps:$4 sm:$0xff]   ;;  %v6828_v4 = vpop.eup %6827 }
 0x2ba   :  { %v6731_v3 = vld [vmem:[#allocation11 + $0x78] sm:$0xff]   ;;  %v6756_v38 = vld [vmem:[#allocation11 + $0xc8] sm:$0xff]  }
 0x2bb   :  { %4459 = vmatpush1.bf16.msra.mxu0 %v6653_v15  ;;  %v6732_v22 = vld [vmem:[#allocation11 + $0xf8] sm:$0xff]   ;;  %v6758_v42 = vld [vmem:[#allocation11 + $0x88] sm:$0xff]  }
 0x2bc   :  { %4500 = vmatpush1.bf16.msra.mxu1 %v6656_v33  ;;  %4460 = vmatprep.subr.bf16.mxu0 %v6661_v5  ;;  %v6733_v15 = vld [vmem:[#allocation11 + $0x38] sm:$0xff]  }
 0x2bd   :  { %4501 = vmatprep.subr.bf16.mxu1 %v6664_v2  ;;  %v6734_v5 = vld [vmem:[#allocation11 + $0xb8] sm:$0xff]   ;;  %v6735_v2 = vld [vmem:[#allocation11 + $0x70] sm:$0xff]  }
 0x2be   :  { %v6763_v44 = vld [vmem:[#allocation11 + $0x178] sm:$0xff]  }
 0x2bf   :  { %4461 = vmatpush1.bf16.msra.mxu0 %v6659_v13 }
 0x2c0   :  { %4502 = vmatpush1.bf16.msra.mxu1 %v6662_v63  ;;  %4462 = vmatprep.subr.bf16.mxu0 %v6667_v14  ;;  %v2645_v63 = vpack.c.bf16 %v6828_v4, %v6828_v4  ;;  %v6736_v14 = vld [vmem:[#allocation11 + $0xf0] sm:$0xff]   ;;  %v6772_v4 = vld [vmem:[#allocation11 + $0x118] sm:$0xff]  }
 0x2c1   :  { %4503 = vmatprep.subr.bf16.mxu1 %v6670_v21 }
 0x2c2   :  { %v6830_v33 = vpop.eup %6829 }
 0x2c3   :  { %4463 = vmatpush1.bf16.msra.mxu0 %v6665_v19  ;;  %v2647_v19 = vpack.c.bf16 %v6830_v33, %v6830_v33  ;;  %v6774_v33 = vld [vmem:[#allocation11 + $0x110] sm:$0xff]  }
 0x2c4   :  { %4504 = vmatpush1.bf16.msra.mxu1 %v6668_v43  ;;  %4464 = vmatprep.subr.bf16.mxu0 %v6673_v46  ;;  %v6737_v43 = vld [vmem:[#allocation11 + $0x30] sm:$0xff]  }
 0x2c5   :  { %4505 = vmatprep.subr.bf16.mxu1 %v6676_v20  ;;  %v6738_v20 = vld [vmem:[#allocation11 + $0xb0] sm:$0xff]  }
 0x2c7   :  { %4465 = vmatpush1.bf16.msra.mxu0 %v6671_v54  ;;  %v6739_v54 = vld [vmem:[#allocation11 + $0x68] sm:$0xff]  }
 0x2c8   :  { %4506 = vmatpush1.bf16.msra.mxu1 %v6674_v24  ;;  %4466 = vmatprep.subr.bf16.mxu0 %v6679_v59 }
 0x2c9   :  { %4507 = vmatprep.subr.bf16.mxu1 %v6682_v23 }
 0x2cb   :  { %4467 = vmatpush1.bf16.msra.mxu0 %v6677_v26  ;;  %v6741_v26 = vld [vmem:[#allocation11 + $0x28] sm:$0xff]  }
 0x2cc   :  { %4508 = vmatpush1.bf16.msra.mxu1 %v6680_v27  ;;  %4468 = vmatprep.subr.bf16.mxu0 %v6685_v31  ;;  %v6742_v27 = vld [vmem:[#allocation11 + $0xa8] sm:$0xff]   ;;  %v6743_v31 = vld [vmem:[#allocation11 + $0x60] sm:$0xff]  }
 0x2cd   :  { %4509 = vmatprep.subr.bf16.mxu1 %v6688_v28 }
 0x2cf   :  { %4469 = vmatpush2.bf16.msra.mxu0 %v6683_v30  ;;  %v6744_v30 = vld [vmem:[#allocation11 + $0xe0] sm:$0xff]  }
 0x2d0   :  { %4510 = vmatpush2.bf16.msra.mxu1 %v6686_v34  ;;  %4470 = vmatprep.subr.bf16.mxu0 %v6691_v36  ;;  %v6745_v34 = vld [vmem:[#allocation11 + $0x20] sm:$0xff]  }
 0x2d1   :  { %4511 = vmatprep.subr.bf16.mxu1 %v6694_v60  ;;  %v6746_v36 = vld [vmem:[#allocation11 + $0xa0] sm:$0xff]   ;;  %v6747_v60 = vld [vmem:[#allocation11 + $0x58] sm:$0xff]  }
 0x2d3   :  { %4471 = vmatpush2.bf16.msra.mxu0 %v6689_v50  ;;  %v6748_v50 = vld [vmem:[#allocation11 + $0xd8] sm:$0xff]  }
 0x2d4   :  { %4512 = vmatpush2.bf16.msra.mxu1 %v6692_v7  ;;  %4472 = vmatprep.subr.bf16.mxu0 %v6697_v58  ;;  %v6749_v7 = vld [vmem:[#allocation11 + $0x18] sm:$0xff]  }
 0x2d5   :  { %4513 = vmatprep.subr.bf16.mxu1 %v6700_v51  ;;  %v6750_v58 = vld [vmem:[#allocation11 + $0x98] sm:$0xff]   ;;  %v6751_v51 = vld [vmem:[#allocation11 + $0x50] sm:$0xff]  }
 0x2d7   :  { %4473 = vmatpush2.bf16.msra.mxu0 %v6695_v57  ;;  %v6752_v57 = vld [vmem:[#allocation11 + $0xd0] sm:$0xff]  }
 0x2d8   :  { %4514 = vmatpush2.bf16.msra.mxu1 %v6698_v62  ;;  %4474 = vmatprep.subr.bf16.mxu0 %v6703_v56  ;;  %v6753_v62 = vld [vmem:[#allocation11 + $0x10] sm:$0xff]  }
 0x2d9   :  { %4515 = vmatprep.subr.bf16.mxu1 %v6706_v25  ;;  %v6754_v56 = vld [vmem:[#allocation11 + $0x90] sm:$0xff]   ;;  %v6755_v25 = vld [vmem:[#allocation11 + $0x48] sm:$0xff]  }
 0x2db   :  { %4475 = vmatpush2.bf16.msra.mxu0 %v6701_v29  ;;  %v6757_v29 = vld [vmem:[#allocation11 + $0x8] sm:$0xff]  }
 0x2dc   :  { %4516 = vmatpush2.bf16.msra.mxu1 %v6704_v39  ;;  %4476 = vmatprep.subr.bf16.mxu0 %v6709_v40  ;;  %v6759_v39 = vld [vmem:[#allocation11 + $0x40] sm:$0xff]  }
 0x2dd   :  { %4517 = vmatprep.subr.bf16.mxu1 %v6712_v41  ;;  %v6760_v40 = vld [vmem:[#allocation11 + $0xc0] sm:$0xff]  }
 0x2de   :  { %v6762_v41 = vld [vmem:[#allocation11 + $0x80] sm:$0xff]  }
 0x2df   :  { %4477 = vmatpush2.bf16.msra.mxu0 %v6707_v12  ;;  %v6832_v12 = vpop.eup %6831 }
 0x2e0   :  { %4518 = vmatpush2.bf16.msra.mxu1 %v6710_v45  ;;  %4478 = vmatprep.subr.bf16.mxu0 %v6715_v49  ;;  %v6779_v45 = vld [vmem:[#allocation11 + $0x1f8] sm:$0xff]   ;;  %v6834_v49 = vpop.eup %6833 }
 0x2e1   :  { %4519 = vmatprep.subr.bf16.mxu1 %v6718_v52  ;;  %v6764_v52 = vld [vmem:[#allocation11 + $0x138] sm:$0xff]  }
 0x2e3   :  { %4479 = vmatpush2.bf16.msra.mxu0 %v6713_v35  ;;  %v2644_v35 = vpack.c.bf16 %v6832_v12, %v6832_v12 }
 0x2e4   :  { %4520 = vmatpush2.bf16.msra.mxu1 %v6716_v47  ;;  %4480 = vmatprep.subr.bf16.mxu0 %v6721_v32  ;;  %v6765_v47 = vld [vmem:[#allocation11 + $0x170] sm:$0xff]   ;;  %v6780_v32 = vld [vmem:[#allocation11 + $0x1b8] sm:$0xff]  }
 0x2e5   :  { %4521 = vmatprep.subr.bf16.mxu1 %v6724_v61  ;;  %v2646_v61 = vpack.c.bf16 %v6834_v49, %v6834_v49 }
 0x2e7   :  { %4481 = vmatpush2.bf16.msra.mxu0 %v6719_v37  ;;  %v6781_v37 = vld [vmem:[#allocation11 + $0x1f0] sm:$0xff]  }
 0x2e8   :  { %4522 = vmatpush2.bf16.msra.mxu1 %v6722_v8  ;;  %4482 = vmatprep.subr.bf16.mxu0 %v6727_v17  ;;  %v6766_v8 = vld [vmem:[#allocation11 + $0x130] sm:$0xff]   ;;  %v6767_v17 = vld [vmem:[#allocation11 + $0x168] sm:$0xff]  }
 0x2e9   :  { %4523 = vmatprep.subr.bf16.mxu1 %v6730_v53  ;;  %v6782_v53 = vld [vmem:[#allocation11 + $0x1b0] sm:$0xff]  }
 0x2eb   :  { %4483 = vmatpush2.bf16.msra.mxu0 %v6725_v1  ;;  %v6768_v1 = vld [vmem:[#allocation11 + $0x128] sm:$0xff]  }
 0x2ec   :  { %4524 = vmatpush2.bf16.msra.mxu1 %v6728_v48  ;;  %5862 = vmatprep.subr.bf16.mxu0 %v6731_v3  ;;  %v6769_v48 = vld [vmem:[#allocation11 + $0x160] sm:$0xff]  }
 0x2ed   :  { %5884 = vmatprep.subr.bf16.mxu1 %v6732_v22  ;;  %v6770_v3 = vld [vmem:[#allocation11 + $0x120] sm:$0xff]   ;;  %v6771_v22 = vld [vmem:[#allocation11 + $0x158] sm:$0xff]  }
 0x2ee   :  { %v7293_v13 = vpop.f32.mrf.mxu0  ;;  %4485 = vmatmul.mubr.bf16.vlgmr.msra.gmra.mxu0 %v7264_v16  ;;  %v6740_v16 = vld [vmem:[#allocation11 + $0xe8] sm:$0xff]  }
 0x2ef   :  { %v7296_v21 = vpop.f32.mrf.mxu1  ;;  %4526 = vmatmul.mubr.bf16.vlgmr.msra.gmra.mxu1 %v7266_v18  ;;  %5863 = vmatpush3.bf16.msra.mxu0 %v6733_v15  ;;  %v6773_v15 = vld [vmem:[#allocation11 + $0x150] sm:$0xff]  }
 0x2f0   :  { %5093 = vmatprep.mubr.bf16.mxu0 %v2645_v63  ;;  %5885 = vmatpush3.bf16.msra.mxu1 %v6734_v5  ;;  %v7299_v46 = vpop.f32.mrf.mxu0  ;;  %v6775_v5 = vld [vmem:[#allocation11 + $0x148] sm:$0xff]  }
 0x2f1   :  { %5133 = vmatprep.mubr.bf16.mxu1 %v2647_v19  ;;  %v7301_v24 = vpop.f32.mrf.mxu1  ;;  %5864 = vmatprep.subr.bf16.mxu0 %v6735_v2  ;;  %v7308_v2 = vld [vmem:[%s7335_s6] sm:$0xf] }
 0x2f2   :  { %v4244_v59 = vpop.f32.mrf.mxu0  ;;  %5886 = vmatprep.subr.bf16.mxu1 %v6736_v14  ;;  %v6776_v63 = vld [vmem:[#allocation11 + $0x108] sm:$0xff]   ;;  %v6777_v14 = vld [vmem:[#allocation11 + $0x140] sm:$0xff]   ;;  %v2909_v19 = vrot.slane %v7308_v2, %v7118_v9 }
 0x2f3   :  { %v4285_v23 = vpop.f32.mrf.mxu1  ;;  %5865 = vmatpush3.bf16.msra.mxu0 %v6737_v43  ;;  %v2913_v43 = vrot.slane %v7308_v2, %v7124_v11  ;;  %v6784_v9 = vld [vmem:[#allocation11 + $0x1a8] sm:$0xff]  }
 0x2f4   :  { %5887 = vmatpush3.bf16.msra.mxu1 %v6738_v20  ;;  %v4245_v18 = vpop.f32.mrf.mxu0  ;;  %5866 = vmatprep.subr.bf16.mxu0 %v6739_v54  ;;  %v6778_v20 = vld [vmem:[#allocation11 + $0x100] sm:$0xff]   ;;  %v4241_v54 = vadd.f32 %v7293_v13, %v2909_v19 }
 0x2f5   :  { %v4286_v28 = vpop.f32.mrf.mxu1  ;;  %5888 = vmatprep.subr.bf16.mxu1 %v6740_v16  ;;  %v4243_v16 = vadd.f32 %v7299_v46, %v2913_v43  ;;  %v6785_v13 = vld [vmem:[#allocation11 + $0x1e0] sm:$0xff]  }
 0x2f6   :  { %v4282_v59 = vadd.f32 %v7296_v21, %v4241_v54 }
 0x2f7   :  { %5867 = vmatpush3.bf16.msra.mxu0 %v6741_v26  ;;  %v6783_v26 = vld [vmem:[#allocation11 + $0x1e8] sm:$0xff]   ;;  %v4284_v18 = vadd.f32 %v7301_v24, %v4243_v16  ;;  %v6787_v24 = vld [vmem:[#allocation11 + $0x1d8] sm:$0xff]  }
 0x2f8   :  { %5889 = vmatpush3.bf16.msra.mxu1 %v6742_v27  ;;  %5868 = vmatprep.subr.bf16.mxu0 %v6743_v31  ;;  %v5797_v16 = vld [vmem:[%s7337_s8] ss:$0 sm:$0xff]  ;;  %s7008_s8 = smov [#allocation13]  }
 0x2f9   :  { %5890 = vmatprep.subr.bf16.mxu1 %v6744_v30  ;;  %s5233_s20 = sshll.u32 %s7008_s8, 4  ;;  %s5234_s20 = int_to_ptr.vmem [resolvable:$true] %s5233_s20 }
 0x2fa   :  { %s6966_s22 = scalar_lea.vmem %s5234_s20, 128  ;;  %p6971_p3 = scmp.lt.s32.totalorder %s5234_s20, %s5234_s20 }
 0x2fb   :  { %5869 = vmatpush3.bf16.msra.mxu0 %v6745_v34  ;;  %p6967_p2 = scmp.ne.s32.totalorder %s5234_s20, %s6966_s22  ;;  %p6972_p4 = scmp.lt.s32.totalorder %s6966_s22, %s6966_s22 }
 0x2fc   :  { %5891 = vmatpush3.bf16.msra.mxu1 %v6746_v36  ;;  %5870 = vmatprep.subr.bf16.mxu0 %v6747_v60 }
 0x2fd   :  { %5892 = vmatprep.subr.bf16.mxu1 %v6748_v50  ;;  %v6786_v50 = vld [vmem:[#allocation11 + $0x1a0] sm:$0xff]   ;;  %p6973_p5 = por %p6972_p4, %p6971_p3 }
 0x2ff   :  { %5871 = vmatpush3.bf16.msra.mxu0 %v6749_v7  ;;  %p6974_p6 = pnand %p6973_p5, %p6967_p2 }
 0x300   :  { %5893 = vmatpush3.bf16.msra.mxu1 %v6750_v58  ;;  %5872 = vmatprep.subr.bf16.mxu0 %v6751_v51  ;;  %v6788_v58 = vld [vmem:[#allocation11 + $0x198] sm:$0xff]   ;;  %v6789_v51 = vld [vmem:[#allocation11 + $0x1d0] sm:$0xff]  }
 0x301   :  { %5894 = vmatprep.subr.bf16.mxu1 %v6752_v57  ;;  %v6790_v57 = vld [vmem:[#allocation11 + $0x190] sm:$0xff]  }
 0x303   :  { %5873 = vmatpush3.bf16.msra.mxu0 %v6753_v62  ;;  %v6791_v62 = vld [vmem:[#allocation11 + $0x1c8] sm:$0xff]  }
 0x304   :  { %5895 = vmatpush3.bf16.msra.mxu1 %v6754_v56  ;;  %5874 = vmatprep.subr.bf16.mxu0 %v6755_v25  ;;  %v6792_v56 = vld [vmem:[#allocation11 + $0x188] sm:$0xff]  }
 0x305   :  { %5896 = vmatprep.subr.bf16.mxu1 %v6756_v38  ;;  %v6793_v38 = vld [vmem:[#allocation11 + $0x1c0] sm:$0xff]  }
 0x307   :  { %5875 = vmatpush3.bf16.msra.mxu0 %v6757_v29  ;;  %v6794_v29 = vld [vmem:[#allocation11 + $0x180] sm:$0xff]  }
 0x308   :  { %5897 = vmatpush3.bf16.msra.mxu1 %v6758_v42  ;;  %5876 = vmatprep.subr.bf16.mxu0 %v6759_v39 }
 0x309   :  { %5898 = vmatprep.subr.bf16.mxu1 %v6760_v40 }
 0x30b   :  { %5877 = vmatpush3.bf16.msra.mxu0 %v6761_v55 }
 0x30c   :  { %5899 = vmatpush3.bf16.msra.mxu1 %v6762_v41  ;;  %5906 = vmatprep.subr.bf16.mxu0 %v6763_v44 }
 0x30d   :  { %5928 = vmatprep.subr.bf16.mxu1 %v6779_v45 }
 0x30e   :  { %5094 = vmatmul.mubr.bf16.vlgmr.msra.gmra.mxu0 %v2644_v35 }
 0x30f   :  { %5134 = vmatmul.mubr.bf16.vlgmr.msra.gmra.mxu1 %v2646_v61  ;;  %5907 = vmatpush3.bf16.msra.mxu0 %v6764_v52 }
 0x310   :  { %5908 = vmatprep.subr.bf16.mxu0 %v6765_v47  ;;  %5929 = vmatpush3.bf16.msra.mxu1 %v6780_v32  ;;  %v2917_v47 = vrot.slane %v7308_v2, %v7121_v10  ;;  %v2921_v32 = vrot.slane %v7308_v2, %v7127_v0 }
 0x311   :  { %5930 = vmatprep.subr.bf16.mxu1 %v6781_v37 }
 0x313   :  { %5909 = vmatpush3.bf16.msra.mxu0 %v6766_v8 }
 0x314   :  { %5910 = vmatprep.subr.bf16.mxu0 %v6767_v17  ;;  %5931 = vmatpush3.bf16.msra.mxu1 %v6782_v53 }
 0x315   :  { %5932 = vmatprep.subr.bf16.mxu1 %v6783_v26 }
 0x317   :  { %5911 = vmatpush3.bf16.msra.mxu0 %v6768_v1 }
 0x318   :  { %5912 = vmatprep.subr.bf16.mxu0 %v6769_v48  ;;  %5933 = vmatpush3.bf16.msra.mxu1 %v6784_v9 }
 0x319   :  { %5934 = vmatprep.subr.bf16.mxu1 %v6785_v13 }
 0x31b   :  { %5913 = vmatpush3.bf16.msra.mxu0 %v6770_v3 }
 0x31c   :  { %5914 = vmatprep.subr.bf16.mxu0 %v6771_v22  ;;  %5935 = vmatpush3.bf16.msra.mxu1 %v6786_v50 }
 0x31d   :  { %5936 = vmatprep.subr.bf16.mxu1 %v6787_v24 }
 0x31f   :  { %5915 = vmatpush3.bf16.msra.mxu0 %v6772_v4 }
 0x320   :  { %5916 = vmatprep.subr.bf16.mxu0 %v6773_v15  ;;  %5937 = vmatpush3.bf16.msra.mxu1 %v6788_v58 }
 0x321   :  { %5938 = vmatprep.subr.bf16.mxu1 %v6789_v51 }
 0x323   :  { %5917 = vmatpush3.bf16.msra.mxu0 %v6774_v33 }
 0x324   :  { %5918 = vmatprep.subr.bf16.mxu0 %v6775_v5  ;;  %5939 = vmatpush3.bf16.msra.mxu1 %v6790_v57 }
 0x325   :  { %5940 = vmatprep.subr.bf16.mxu1 %v6791_v62  ;;  %v5222_v62 = vand.u32 127, %v150_v6 }
 0x327   :  { %5919 = vmatpush3.bf16.msra.mxu0 %v6776_v63  ;;  %vm5223_vm1 = vcmp.lt.s32.totalorder %v5222_v62, 8 }
 0x328   :  { %5920 = vmatprep.subr.bf16.mxu0 %v6777_v14  ;;  %5941 = vmatpush3.bf16.msra.mxu1 %v6792_v56 }
 0x329   :  { %5942 = vmatprep.subr.bf16.mxu1 %v6793_v38 }
 0x32b   :  { %5921 = vmatpush3.bf16.msra.mxu0 %v6778_v20 }
 0x32c   :  { %5943 = vmatpush3.bf16.msra.mxu1 %v6794_v29 }
 0x32e   :  { %v4322_v23 = vpop.f32.mrf.mxu0 }
 0x32f   :  { %v4323_v27 = vadd.f32 %v4322_v23, %v4282_v59  ;;  %v4363_v31 = vpop.f32.mrf.mxu1 }
 0x330   :  { %v4324_v28 = vpop.f32.mrf.mxu0 }
 0x331   :  { %v4364_v11 = vadd.f32 %v4363_v31, %v4323_v27  ;;  %v4325_v30 = vadd.f32 %v4324_v28, %v4284_v18  ;;  %v4365_v34 = vpop.f32.mrf.mxu1 }
 0x332   :  { %v4326_v36 = vpop.f32.mrf.mxu0 }
 0x333   :  { %v4366_v60 = vadd.f32 %v4365_v34, %v4325_v30  ;;  %v4367_v46 = vpop.f32.mrf.mxu1  ;;  %6835 = vtanh.f32 %v4364_v11 }
 0x334   :  { %v4327_v21 = vpop.f32.mrf.mxu0 }
 0x335   :  { %6837 = vtanh.f32 %v4366_v60  ;;  %v4368_v7 = vpop.f32.mrf.mxu1 }
 0x340   :  { %v6836_v25 = vpop.eup %6835 }
 0x341   :  { %v4538_v40 = vpack.c.bf16 %v6836_v25, %v6836_v25 }
 0x342   :  { %v6838_v42 = vpop.eup %6837 }
 0x343   :  { %v4539_v39 = vpack.c.bf16 %v6838_v42, %v6838_v42 }
 0x345   :  { %5173 = vmatprep.mubr.bf16.mxu0 %v4539_v39 }
 0x346   :  { %5174 = vmatmul.mubr.bf16.vlgmr.msra.gmra.mxu0 %v4538_v40 }
 0x36e   :  { %v4404_v55 = vpop.f32.mrf.mxu0 }
 0x36f   :  { %v4445_v41 = vpop.f32.mrf.mxu1  ;;  %v4405_v61 = vadd.f32 %v4404_v55, %v2917_v47 }
 0x370   :  { %v4406_v44 = vpop.f32.mrf.mxu0 }
 0x371   :  { %v4447_v12 = vpop.f32.mrf.mxu1  ;;  %v4407_v37 = vadd.f32 %v4406_v44, %v2921_v32  ;;  %v4446_v8 = vadd.f32 %v4445_v41, %v4405_v61 }
 0x372   :  { %v4408_v45 = vpop.f32.mrf.mxu0 }
 0x373   :  { %v4449_v49 = vpop.f32.mrf.mxu1  ;;  %v4448_v53 = vadd.f32 %v4447_v12, %v4407_v37 }
 0x374   :  { %v4409_v52 = vpop.f32.mrf.mxu0 }
 0x375   :  { %v4450_v35 = vpop.f32.mrf.mxu1 }
 0x3ae   :  { %v4486_v17 = vpop.f32.mrf.mxu0 }
 0x3af   :  { %v4487_v1 = vadd.f32 %v4486_v17, %v4446_v8  ;;  %v4527_v48 = vpop.f32.mrf.mxu1 }
 0x3b0   :  { %v4488_v3 = vpop.f32.mrf.mxu0 }
 0x3b1   :  { %v4528_v22 = vadd.f32 %v4527_v48, %v4487_v1  ;;  %v4489_v4 = vadd.f32 %v4488_v3, %v4448_v53  ;;  %v4529_v15 = vpop.f32.mrf.mxu1 }
 0x3b2   :  { %v4490_v33 = vpop.f32.mrf.mxu0 }
 0x3b3   :  { %v4530_v5 = vadd.f32 %v4529_v15, %v4489_v4  ;;  %v4531_v63 = vpop.f32.mrf.mxu1  ;;  %6839 = vtanh.f32 %v4528_v22 }
 0x3b4   :  { %v4491_v14 = vpop.f32.mrf.mxu0 }
 0x3b5   :  { %6841 = vtanh.f32 %v4530_v5  ;;  %v4532_v10 = vpop.f32.mrf.mxu1 }
 0x3c0   :  { %v6840_v19 = vpop.eup %6839 }
 0x3c1   :  { %v4540_v43 = vpack.c.bf16 %v6840_v19, %v6840_v19 }
 0x3c2   :  { %v6842_v0 = vpop.eup %6841 }
 0x3c3   :  { %v4541_v2 = vpack.c.bf16 %v6842_v0, %v6842_v0 }
 0x3c5   :  { %5213 = vmatprep.mubr.bf16.mxu1 %v4541_v2 }
 0x3c6   :  { %5214 = vmatmul.mubr.bf16.vlgmr.msra.gmra.mxu1 %v4540_v43 }
 0x3ce   :  { %v5878_v20 = vpop.f32.mrf.mxu0 }
 0x3cf   :  { %v5900_v54 = vpop.f32.mrf.mxu1 }
 0x3d0   :  { %v5879_v59 = vpop.f32.mrf.mxu0 }
 0x3d1   :  { %v5880_v23 = vadd.f32 %v5879_v59, %v5878_v20  ;;  %v5901_v26 = vpop.f32.mrf.mxu1 }
 0x3d2   :  { %v5902_v18 = vadd.f32 %v5901_v26, %v5900_v54  ;;  %v5881_v27 = vpop.f32.mrf.mxu0 }
 0x3d3   :  { %v5096_v31 = vadd.f32 %v5880_v23, %v5797_v16  ;;  %v5903_v9 = vpop.f32.mrf.mxu1 }
 0x3d4   :  { %v5882_v28 = vpop.f32.mrf.mxu0 }
 0x3d5   :  { %v5136_v11 = vadd.f32 %v5902_v18, %v5096_v31  ;;  %v5904_v30 = vpop.f32.mrf.mxu1 }
 0x406   :  { %v5922_v34 = vpop.f32.mrf.mxu0 }
 0x408   :  { %v5923_v36 = vpop.f32.mrf.mxu0 }
 0x409   :  { %v5924_v13 = vadd.f32 %v5923_v36, %v5922_v34 }
 0x40a   :  { %v5925_v60 = vpop.f32.mrf.mxu0 }
 0x40b   :  { %v5176_v46 = vadd.f32 %v5924_v13, %v5136_v11 }
 0x40c   :  { %v5926_v50 = vpop.f32.mrf.mxu0 }
 0x486   :  { %v5944_v21 = vpop.f32.mrf.mxu1 }
 0x488   :  { %v5945_v7 = vpop.f32.mrf.mxu1 }
 0x489   :  { %v5946_v24 = vadd.f32 %v5945_v7, %v5944_v21 }
 0x48a   :  { %v5947_v58 = vpop.f32.mrf.mxu1 }
 0x48b   :  { %v5216_v51 = vadd.f32 %v5946_v24, %v5176_v46 }
 0x48c   :  { %v5948_v57 = vpop.f32.mrf.mxu1 }
 0x48d   :  { %6843 = vtanh.f32 %v5216_v51 }
 0x49a   :  { %v6844_v56 = vpop.eup %6843 }
 0x49b   :  { %v5225_v25 = vsel %vm5223_vm1, %v6844_v56, %v5216_v51 }
 0x49c   :  { %5226 = vst [vmem:[#allocation13] sm:$0xff] %v5225_v25 }
 0x49d   :  { %6977 = shalt.err (!%p6974_p6)
}
 0x49e   :  { %5236 = dma.vmem_to_hbm [thread:$0]  %s5234_s20, 128, %s7338_s9, [#allocation4]  }
 0x49f   :  { %6994 = dma.done.wait [#allocation4], 128  }
 0x4a0   :  { %6995 = vsyncadd [#allocation4], 4294967168 }
 0x4a1   :  { %5240 = vsyncpa [#allocation3], 1 }
 0x4a2   :  { %5241 = vsyncpa [#allocation6], 1 }
 0x4a3   :  { %5242 = vsyncpa [#allocation9], 1 }
 0x4a4   :  { %5243 = vsyncpa [#allocation12], 1 }
 0x4a5   :  { %5244 = vsyncpa [#allocation4], 1 }

// kernel: tpu_custom_call.1
= control target key start
LH: loop header
LB: loop body
LE: loop exit
PB: predicated region body
PF: predicated region fallthrough
CT: control target
= control target key end

     0   :  { %14 = vsyncpa [#allocation3], 0  ;;  %s7329_s0 = inlined_call_operand.hbm [shape: f32[8,32], index: 0, kind: input, shape index: {}]   ;;  %s7330_s1 = inlined_call_operand.hbm [shape: bf16[32,2048], index: 1, kind: input, shape index: {}]   ;;  %s7331_s2 = inlined_call_operand.hbm [shape: f32[1,2048], index: 2, kind: input, shape index: {}]   ;;  %s7332_s3 = inlined_call_operand.hbm [shape: bf16[1024,512], index: 3, kind: input, shape index: {}]   ;;  %s7333_s4 = inlined_call_operand.vmem [shape: f32[1,512], index: 4, kind: input, shape index: {}]   ;;  %s7334_s5 = inlined_call_operand.hbm [shape: bf16[1024,512], index: 5, kind: input, shape index: {}]   ;;  %s7335_s6 = inlined_call_operand.vmem [shape: f32[1,512], index: 6, kind: input, shape index: {}]   ;;  %s7336_s7 = inlined_call_operand.hbm [shape: bf16[1024,128], index: 7, kind: input, shape index: {}]   ;;  %s7337_s8 = inlined_call_operand.vmem [shape: f32[1,128], index: 8, kind: input, shape index: {}]   ;;  %s7338_s9 = inlined_call_operand.hbm [shape: f32[8,128], index: 9, kind: output, shape index: {}]  }
   0x1   :  { %15 = vsyncpa [#allocation6], 0 }
   0x2   :  { %16 = vsyncpa [#allocation9], 0 }
   0x3   :  { %17 = vsyncpa [#allocation12], 0 }
   0x4   :  { %18 = vsyncpa [#allocation4], 0  ;;  %s6996_s30 = smov [#allocation5]  }
   0x5   :  { %s34_s10 = sshll.u32 %s6996_s30, 4  ;;  %s35_s10 = int_to_ptr.vmem [resolvable:$true] %s34_s10 }
   0x6   :  { %s6854_s11 = scalar_lea.vmem %s35_s10, 4096  ;;  %p6859_p1 = scmp.lt.s32.totalorder %s35_s10, %s35_s10 }
   0x7   :  { %p6855_p0 = scmp.ne.s32.totalorder %s35_s10, %s6854_s11  ;;  %p6860_p2 = scmp.lt.s32.totalorder %s6854_s11, %s6854_s11 }
   0x9   :  { %p6861_p3 = por %p6860_p2, %p6859_p1 }
   0xb   :  { %p6862_p4 = pnand %p6861_p3, %p6855_p0 }
   0xd   :  { %6865 = shalt.err (!%p6862_p4)
}
   0xe   :  { %s6997_s12 = smov 1024   ;;  %s6998_s13 = smov 64  }
   0xf   :  { %40 = dma.hbm_to_vmem [thread:$0]  %s7330_s1, 4096, %s35_s10, [#allocation6], %s6997_s12, %s6997_s12, %s6998_s13  }
  0x10   :  { %s6999_s16 = smov [#allocation8]  }
  0x11   :  { %s56_s17 = sshll.u32 %s6999_s16, 4  ;;  %s57_s17 = int_to_ptr.vmem [resolvable:$true] %s56_s17 }
  0x12   :  { %s6874_s18 = scalar_lea.vmem %s57_s17, 32768  ;;  %p6879_p6 = scmp.lt.s32.totalorder %s57_s17, %s57_s17 }
  0x13   :  { %p6875_p5 = scmp.ne.s32.totalorder %s57_s17, %s6874_s18  ;;  %p6880_p7 = scmp.lt.s32.totalorder %s6874_s18, %s6874_s18 }
  0x15   :  { %p6881_p8 = por %p6880_p7, %p6879_p6 }
  0x17   :  { %p6882_p9 = pnand %p6881_p8, %p6875_p5 }
  0x19   :  { %6885 = shalt.err (!%p6882_p9)
}
  0x1a   :  { %s7000_s19 = smov 256   ;;  %s7001_s20 = smov 16  }
  0x1b   :  { %62 = dma.hbm_to_vmem [thread:$0]  %s7332_s3, 32768, %s57_s17, [#allocation9], %s7000_s19, %s7000_s19, %s7001_s20  }
  0x1c   :  { %s7002_s1 = smov [#allocation2]   ;;  %s7003_s24 = smov [#allocation7]  }
  0x1d   :  { %s25_s23 = sshll.u32 %s7002_s1, 4  ;;  %s47_s25 = sshll.u32 %s7003_s24, 4  ;;  %s26_s23 = int_to_ptr.vmem [resolvable:$true] %s25_s23  ;;  %s48_s25 = int_to_ptr.vmem [resolvable:$true] %s47_s25 }
  0x1e   :  { %s6894_s26 = scalar_lea.vmem %s26_s23, 128  ;;  %p6899_p11 = scmp.lt.s32.totalorder %s26_s23, %s26_s23 }
  0x1f   :  { %p6895_p10 = scmp.ne.s32.totalorder %s26_s23, %s6894_s26  ;;  %p6900_p12 = scmp.lt.s32.totalorder %s6894_s26, %s6894_s26 }
  0x21   :  { %p6901_p13 = por %p6900_p12, %p6899_p11 }
  0x23   :  { %p6902_p0 = pnand %p6901_p13, %p6895_p10 }
  0x25   :  { %6905 = shalt.err (!%p6902_p0)
}
  0x26   :  { %28 = dma.hbm_to_vmem [thread:$0]  %s7329_s0, 128, %s26_s23, [#allocation3]  }
  0x27   :  { %s6914_s29 = scalar_lea.vmem %s48_s25, 256  ;;  %p6919_p2 = scmp.lt.s32.totalorder %s48_s25, %s48_s25 }
  0x28   :  { %p6915_p1 = scmp.ne.s32.totalorder %s48_s25, %s6914_s29  ;;  %p6920_p3 = scmp.lt.s32.totalorder %s6914_s29, %s6914_s29 }
  0x2a   :  { %p6921_p4 = por %p6920_p3, %p6919_p2 }
  0x2c   :  { %p6922_p5 = pnand %p6921_p4, %p6915_p1 }
  0x2e   :  { %6925 = shalt.err (!%p6922_p5)
}
  0x2f   :  { %50 = dma.hbm_to_vmem [thread:$0]  %s7331_s2, 256, %s48_s25, [#allocation6]  }
  0x30   :  { %s7004_s10 = smov [#allocation10]   ;;  %s7005_s12 = smov [#allocation11]  }
  0x31   :  { %s70_s11 = sshll.u32 %s7004_s10, 4  ;;  %s84_s14 = sshll.u32 %s7005_s12, 4  ;;  %s71_s11 = int_to_ptr.vmem [resolvable:$true] %s70_s11  ;;  %s85_s14 = int_to_ptr.vmem [resolvable:$true] %s84_s14 }
  0x32   :  { %s6934_s15 = scalar_lea.vmem %s71_s11, 32768  ;;  %p6939_p7 = scmp.lt.s32.totalorder %s71_s11, %s71_s11 }
  0x33   :  { %p6935_p6 = scmp.ne.s32.totalorder %s71_s11, %s6934_s15  ;;  %p6940_p8 = scmp.lt.s32.totalorder %s6934_s15, %s6934_s15 }
  0x35   :  { %p6941_p9 = por %p6940_p8, %p6939_p7 }
  0x37   :  { %p6942_p10 = pnand %p6941_p9, %p6935_p6 }
  0x39   :  { %6945 = shalt.err (!%p6942_p10)
}
  0x3a   :  { %76 = dma.hbm_to_vmem [thread:$0]  %s7334_s5, 32768, %s71_s11, [#allocation9], %s7000_s19, %s7000_s19, %s7001_s20  }
  0x3b   :  { %s6954_s2 = scalar_lea.vmem %s85_s14, 8192  ;;  %p6959_p12 = scmp.lt.s32.totalorder %s85_s14, %s85_s14 }
  0x3c   :  { %p6955_p11 = scmp.ne.s32.totalorder %s85_s14, %s6954_s2  ;;  %p6960_p13 = scmp.lt.s32.totalorder %s6954_s2, %s6954_s2 }
  0x3e   :  { %p6961_p0 = por %p6960_p13, %p6959_p12 }
  0x40   :  { %p6962_p1 = pnand %p6961_p0, %p6955_p11 }
  0x42   :  { %6965 = shalt.err (!%p6962_p1)
}
  0x43   :  { %s7006_s17 = smov 4  }
  0x44   :  { %90 = dma.hbm_to_vmem [thread:$0]  %s7336_s7, 8192, %s85_s14, [#allocation12], %s6998_s13, %s6998_s13, %s7006_s17  }
  0x45   :  { %6986 = dma.done.wait [#allocation3], 128  }
  0x46   :  { %6987 = vsyncadd [#allocation3], 4294967168 }
  0x47   :  { %6988 = dma.done.wait [#allocation6], 4352  }
  0x48   :  { %6989 = vsyncadd [#allocation6], 4294962944 }
  0x49   :  { %6990 = dma.done.wait [#allocation9], 65536  }
  0x4a   :  { %6991 = vsyncadd [#allocation9], 4294901760 }
  0x4b   :  { %6992 = dma.done.wait [#allocation12], 8192  }
  0x4c   :  { %6993 = vsyncadd [#allocation12], 4294959104  ;;  %v7007_v0 = vmov 0   ;;  %v130_v1 = vld [vmem:[#allocation5 + $0x80] sm:$0xff]  ;;  %v131_v3 = vld [vmem:[#allocation5 + $0x88] sm:$0xff]  ;;  %vm390_vm0 = vcmask 261120  }
  0x4d   :  { %426 = vmatprep.mubr.bf16.mxu0 %v7007_v0  ;;  %467 = vmatprep.mubr.bf16.mxu1 %v7007_v0  ;;  %v138_v2 = vld [vmem:[#allocation5 + $0xc0] sm:$0xff]  ;;  %v139_v5 = vld [vmem:[#allocation5 + $0xc8] sm:$0xff]  ;;  %v132_v15 = vld [vmem:[#allocation5 + $0x90] sm:$0xff] }
  0x4e   :  { %v5262_v4 = vcombine.high %v130_v1, %v138_v2  ;;  %v5261_v6 = vcombine.low %v130_v1, %v138_v2  ;;  %v114_v7 = vld [vmem:[#allocation5] sm:$0xff]  ;;  %v5264_v9 = vcombine.high %v131_v3, %v139_v5  ;;  %v5263_v10 = vcombine.low %v131_v3, %v139_v5  ;;  %v115_v12 = vld [vmem:[#allocation5 + $0x8] sm:$0xff]  ;;  %v140_v16 = vld [vmem:[#allocation5 + $0xd0] sm:$0xff] }
  0x4f   :  { %v122_v8 = vld [vmem:[#allocation5 + $0x40] sm:$0xff]  ;;  %v123_v13 = vld [vmem:[#allocation5 + $0x48] sm:$0xff]  ;;  %v133_v17 = vld [vmem:[#allocation5 + $0x98] sm:$0xff]  ;;  %v5266_v22 = vcombine.high %v132_v15, %v140_v16  ;;  %v5265_v29 = vcombine.low %v132_v15, %v140_v16 }
  0x50   :  { %v5246_v11 = vcombine.high %v114_v7, %v122_v8  ;;  %406 = vmatprep.subr.bf16.mxu0 %v5262_v4  ;;  %v5248_v14 = vcombine.high %v115_v12, %v123_v13  ;;  %447 = vmatprep.subr.bf16.mxu1 %v5264_v9  ;;  %v5245_v18 = vcombine.low %v114_v7, %v122_v8  ;;  %v112_v19 = vld [vmem:[#allocation2] sm:$0xff]  ;;  %v116_v24 = vld [vmem:[#allocation5 + $0x10] sm:$0xff]  ;;  %v134_v33 = vld [vmem:[#allocation5 + $0xa0] sm:$0xff] }
  0x51   :  { %407 = vmatpush1.bf16.msra.mxu0 %v5261_v6  ;;  %v141_v20 = vld [vmem:[#allocation5 + $0xd8] sm:$0xff]  ;;  %448 = vmatpush1.bf16.msra.mxu1 %v5263_v10  ;;  %v5247_v21 = vcombine.low %v115_v12, %v123_v13  ;;  %v124_v25 = vld [vmem:[#allocation5 + $0x50] sm:$0xff]  ;;  %v7088_v26 = vpack.c.bf16 %v112_v19, %v112_v19  ;;  %v142_v34 = vld [vmem:[#allocation5 + $0xe0] sm:$0xff] }
  0x52   :  { %408 = vmatprep.subr.bf16.mxu0 %v5246_v11  ;;  %449 = vmatprep.subr.bf16.mxu1 %v5248_v14  ;;  %v5268_v23 = vcombine.high %v133_v17, %v141_v20  ;;  %v117_v27 = vld [vmem:[#allocation5 + $0x18] sm:$0xff]  ;;  %v5267_v30 = vcombine.low %v133_v17, %v141_v20  ;;  %v5250_v31 = vcombine.high %v116_v24, %v124_v25  ;;  %v135_v35 = vld [vmem:[#allocation5 + $0xa8] sm:$0xff]  ;;  %v118_v40 = vld [vmem:[#allocation5 + $0x20] sm:$0xff] }
  0x53   :  { %v125_v28 = vld [vmem:[#allocation5 + $0x58] sm:$0xff]  ;;  %v143_v36 = vld [vmem:[#allocation5 + $0xe8] sm:$0xff]  ;;  %v5249_v37 = vcombine.low %v116_v24, %v124_v25  ;;  %v5270_v39 = vcombine.high %v134_v33, %v142_v34  ;;  %v126_v42 = vld [vmem:[#allocation5 + $0x60] sm:$0xff]  ;;  %v5269_v45 = vcombine.low %v134_v33, %v142_v34 }
  0x54   :  { %v5252_v32 = vcombine.high %v117_v27, %v125_v28  ;;  %v5251_v38 = vcombine.low %v117_v27, %v125_v28  ;;  %v5272_v41 = vcombine.high %v135_v35, %v143_v36  ;;  %v119_v43 = vld [vmem:[#allocation5 + $0x28] sm:$0xff]  ;;  %v5271_v46 = vcombine.low %v135_v35, %v143_v36  ;;  %v136_v48 = vld [vmem:[#allocation5 + $0xb0] sm:$0xff]  ;;  %v137_v51 = vld [vmem:[#allocation5 + $0xb8] sm:$0xff] }
  0x55   :  { %409 = vmatpush1.bf16.msra.mxu0 %v5245_v18  ;;  %450 = vmatpush1.bf16.msra.mxu1 %v5247_v21  ;;  %v127_v44 = vld [vmem:[#allocation5 + $0x68] sm:$0xff]  ;;  %v5254_v47 = vcombine.high %v118_v40, %v126_v42  ;;  %v144_v50 = vld [vmem:[#allocation5 + $0xf0] sm:$0xff]  ;;  %v145_v52 = vld [vmem:[#allocation5 + $0xf8] sm:$0xff]  ;;  %v5253_v53 = vcombine.low %v118_v40, %v126_v42 }
  0x56   :  { %488 = vmatprep.subr.bf16.mxu0 %v5266_v22  ;;  %529 = vmatprep.subr.bf16.mxu1 %v5268_v23  ;;  %v5256_v49 = vcombine.high %v119_v43, %v127_v44  ;;  %v5255_v54 = vcombine.low %v119_v43, %v127_v44  ;;  %v5274_v55 = vcombine.high %v136_v48, %v144_v50  ;;  %v120_v56 = vld [vmem:[#allocation5 + $0x30] sm:$0xff]  ;;  %v121_v59 = vld [vmem:[#allocation5 + $0x38] sm:$0xff] }
  0x57   :  { %v5276_v57 = vcombine.high %v137_v51, %v145_v52  ;;  %v128_v58 = vld [vmem:[#allocation5 + $0x70] sm:$0xff]  ;;  %v129_v60 = vld [vmem:[#allocation5 + $0x78] sm:$0xff]  ;;  %v5273_v61 = vcombine.low %v136_v48, %v144_v50  ;;  %v5275_v62 = vcombine.low %v137_v51, %v145_v52 }
  0x58   :  { %5277 = vmatmul.mubr.msk.bf16.vlgmr.msra.gmra.mxu0 %vm390_vm0, %v7088_v26  ;;  %5278 = vmatmul.mubr.msk.bf16.vlgmr.msra.gmra.mxu1 %vm390_vm0, %v7088_v26  ;;  %v5258_v63 = vcombine.high %v120_v56, %v128_v58  ;;  %v5260_v1 = vcombine.high %v121_v59, %v129_v60  ;;  %v5257_v2 = vcombine.low %v120_v56, %v128_v58  ;;  %v5965_v4 = vld [vmem:[#allocation8 + $0xe4] ss:$16 sps:$4 sm:$0xff]   ;;  %v5963_v6 = vld [vmem:[#allocation8 + $0xe0] ss:$16 sps:$4 sm:$0xff]  }
  0x59   :  { %489 = vmatpush1.bf16.msra.mxu0 %v5265_v29  ;;  %530 = vmatpush1.bf16.msra.mxu1 %v5267_v30  ;;  %v5259_v3 = vcombine.low %v121_v59, %v129_v60  ;;  %v5968_v5 = vld [vmem:[#allocation8 + $0x2e4] ss:$16 sps:$4 sm:$0xff]   ;;  %v5966_v7 = vld [vmem:[#allocation8 + $0x2e0] ss:$16 sps:$4 sm:$0xff]  }
  0x5a   :  { %490 = vmatprep.subr.bf16.mxu0 %v5250_v31  ;;  %531 = vmatprep.subr.bf16.mxu1 %v5252_v32  ;;  %v5971_v8 = vld [vmem:[#allocation8 + $0xc4] ss:$16 sps:$4 sm:$0xff]   ;;  %v5969_v10 = vld [vmem:[#allocation8 + $0xc0] ss:$16 sps:$4 sm:$0xff]  }
  0x5b   :  { %508 = vmatprep.mubr.bf16.mxu0 %v7007_v0  ;;  %549 = vmatprep.mubr.bf16.mxu1 %v7007_v0  ;;  %v5974_v9 = vld [vmem:[#allocation8 + $0x2c4] ss:$16 sps:$4 sm:$0xff]   ;;  %v5972_v11 = vld [vmem:[#allocation8 + $0x2c0] ss:$16 sps:$4 sm:$0xff]  }
  0x5c   :  { %v5975_v12 = vld [vmem:[#allocation8 + $0xa0] ss:$16 sps:$4 sm:$0xff]   ;;  %v5980_v13 = vld [vmem:[#allocation8 + $0x2a4] ss:$16 sps:$4 sm:$0xff]  }
  0x5d   :  { %491 = vmatpush1.bf16.msra.mxu0 %v5249_v37  ;;  %532 = vmatpush1.bf16.msra.mxu1 %v5251_v38  ;;  %v5978_v14 = vld [vmem:[#allocation8 + $0x2a0] ss:$16 sps:$4 sm:$0xff]   ;;  %v5983_v15 = vld [vmem:[#allocation8 + $0x84] ss:$16 sps:$4 sm:$0xff]  }
  0x5e   :  { %570 = vmatprep.subr.bf16.mxu0 %v5270_v39  ;;  %611 = vmatprep.subr.bf16.mxu1 %v5272_v41  ;;  %v5986_v16 = vld [vmem:[#allocation8 + $0x284] ss:$16 sps:$4 sm:$0xff]   ;;  %v5981_v17 = vld [vmem:[#allocation8 + $0x80] ss:$16 sps:$4 sm:$0xff]  }
  0x5f   :  { %v5984_v18 = vld [vmem:[#allocation8 + $0x280] ss:$16 sps:$4 sm:$0xff]   ;;  %v5989_v19 = vld [vmem:[#allocation8 + $0x64] ss:$16 sps:$4 sm:$0xff]  }
  0x60   :  { %5279 = vmatmul.mubr.msk.bf16.vlgmr.msra.gmra.mxu0 %vm390_vm0, %v7088_v26  ;;  %5280 = vmatmul.mubr.msk.bf16.vlgmr.msra.gmra.mxu1 %vm390_vm0, %v7088_v26  ;;  %v5992_v20 = vld [vmem:[#allocation8 + $0x264] ss:$16 sps:$4 sm:$0xff]   ;;  %v5987_v21 = vld [vmem:[#allocation8 + $0x60] ss:$16 sps:$4 sm:$0xff]  }
  0x61   :  { %571 = vmatpush1.bf16.msra.mxu0 %v5269_v45  ;;  %612 = vmatpush1.bf16.msra.mxu1 %v5271_v46  ;;  %v5990_v22 = vld [vmem:[#allocation8 + $0x260] ss:$16 sps:$4 sm:$0xff]   ;;  %v5995_v23 = vld [vmem:[#allocation8 + $0x44] ss:$16 sps:$4 sm:$0xff]  }
  0x62   :  { %572 = vmatprep.subr.bf16.mxu0 %v5254_v47  ;;  %613 = vmatprep.subr.bf16.mxu1 %v5256_v49  ;;  %v5998_v24 = vld [vmem:[#allocation8 + $0x244] ss:$16 sps:$4 sm:$0xff]   ;;  %v5993_v25 = vld [vmem:[#allocation8 + $0x40] ss:$16 sps:$4 sm:$0xff]  }
  0x63   :  { %590 = vmatprep.mubr.bf16.mxu0 %v7007_v0  ;;  %631 = vmatprep.mubr.bf16.mxu1 %v7007_v0  ;;  %v6001_v27 = vld [vmem:[#allocation8 + $0x24] ss:$16 sps:$4 sm:$0xff]   ;;  %v5999_v29 = vld [vmem:[#allocation8 + $0x20] ss:$16 sps:$4 sm:$0xff]  }
  0x64   :  { %v6004_v28 = vld [vmem:[#allocation8 + $0x224] ss:$16 sps:$4 sm:$0xff]   ;;  %v6002_v30 = vld [vmem:[#allocation8 + $0x220] ss:$16 sps:$4 sm:$0xff]  }
  0x65   :  { %573 = vmatpush1.bf16.msra.mxu0 %v5253_v53  ;;  %614 = vmatpush1.bf16.msra.mxu1 %v5255_v54  ;;  %v6007_v31 = vld [vmem:[#allocation8 + $0x4] ss:$16 sps:$4 sm:$0xff]   ;;  %v6005_v33 = vld [vmem:[#allocation8] ss:$16 sps:$4 sm:$0xff]  }
  0x66   :  { %652 = vmatprep.subr.bf16.mxu0 %v5274_v55  ;;  %693 = vmatprep.subr.bf16.mxu1 %v5276_v57  ;;  %v6010_v32 = vld [vmem:[#allocation8 + $0x204] ss:$16 sps:$4 sm:$0xff]   ;;  %v6008_v34 = vld [vmem:[#allocation8 + $0x200] ss:$16 sps:$4 sm:$0xff]  }
  0x67   :  { %v6013_v35 = vld [vmem:[#allocation8 + $0x1e4] ss:$16 sps:$4 sm:$0xff]   ;;  %v6011_v37 = vld [vmem:[#allocation8 + $0x1e0] ss:$16 sps:$4 sm:$0xff]  }
  0x68   :  { %5281 = vmatmul.mubr.msk.bf16.vlgmr.msra.gmra.mxu0 %vm390_vm0, %v7088_v26  ;;  %5282 = vmatmul.mubr.msk.bf16.vlgmr.msra.gmra.mxu1 %vm390_vm0, %v7088_v26  ;;  %v6016_v36 = vld [vmem:[#allocation8 + $0x3e4] ss:$16 sps:$4 sm:$0xff]   ;;  %v6014_v38 = vld [vmem:[#allocation8 + $0x3e0] ss:$16 sps:$4 sm:$0xff]  }
  0x69   :  { %653 = vmatpush1.bf16.msra.mxu0 %v5273_v61  ;;  %694 = vmatpush1.bf16.msra.mxu1 %v5275_v62  ;;  %v6019_v39 = vld [vmem:[#allocation8 + $0x1c4] ss:$16 sps:$4 sm:$0xff]   ;;  %v6017_v41 = vld [vmem:[#allocation8 + $0x1c0] ss:$16 sps:$4 sm:$0xff]  }
  0x6a   :  { %654 = vmatprep.subr.bf16.mxu0 %v5258_v63  ;;  %695 = vmatprep.subr.bf16.mxu1 %v5260_v1  ;;  %v6022_v40 = vld [vmem:[#allocation8 + $0x3c4] ss:$16 sps:$4 sm:$0xff]   ;;  %v6020_v42 = vld [vmem:[#allocation8 + $0x3c0] ss:$16 sps:$4 sm:$0xff]  }
  0x6b   :  { %672 = vmatprep.mubr.bf16.mxu0 %v7007_v0  ;;  %713 = vmatprep.mubr.bf16.mxu1 %v7007_v0  ;;  %v5977_v0 = vld [vmem:[#allocation8 + $0xa4] ss:$16 sps:$4 sm:$0xff]   ;;  %v6023_v45 = vld [vmem:[#allocation8 + $0x1a0] ss:$16 sps:$4 sm:$0xff]  }
  0x6c   :  { %v6025_v43 = vld [vmem:[#allocation8 + $0x1a4] ss:$16 sps:$4 sm:$0xff]   ;;  %v6026_v46 = vld [vmem:[#allocation8 + $0x3a0] ss:$16 sps:$4 sm:$0xff]  }
  0x6d   :  { %655 = vmatpush1.bf16.msra.mxu0 %v5257_v2  ;;  %696 = vmatpush1.bf16.msra.mxu1 %v5259_v3  ;;  %v6028_v44 = vld [vmem:[#allocation8 + $0x3a4] ss:$16 sps:$4 sm:$0xff]   ;;  %v6029_v49 = vld [vmem:[#allocation8 + $0x180] ss:$16 sps:$4 sm:$0xff]  }
  0x6e   :  { %2312 = vmatprep.subr.bf16.mxu0 %v5965_v4  ;;  %2353 = vmatprep.subr.bf16.mxu1 %v5968_v5  ;;  %v6031_v47 = vld [vmem:[#allocation8 + $0x184] ss:$16 sps:$4 sm:$0xff]   ;;  %v6032_v50 = vld [vmem:[#allocation8 + $0x380] ss:$16 sps:$4 sm:$0xff]  }
  0x6f   :  { %v6034_v48 = vld [vmem:[#allocation8 + $0x384] ss:$16 sps:$4 sm:$0xff]   ;;  %v6035_v53 = vld [vmem:[#allocation8 + $0x160] ss:$16 sps:$4 sm:$0xff]  }
  0x70   :  { %5283 = vmatmul.mubr.msk.bf16.vlgmr.msra.gmra.mxu0 %vm390_vm0, %v7088_v26  ;;  %5284 = vmatmul.mubr.msk.bf16.vlgmr.msra.gmra.mxu1 %vm390_vm0, %v7088_v26  ;;  %v5996_v26 = vld [vmem:[#allocation8 + $0x240] ss:$16 sps:$4 sm:$0xff]   ;;  %v6037_v51 = vld [vmem:[#allocation8 + $0x164] ss:$16 sps:$4 sm:$0xff]  }
  0x71   :  { %2313 = vmatpush1.bf16.msra.mxu0 %v5963_v6  ;;  %2354 = vmatpush1.bf16.msra.mxu1 %v5966_v7  ;;  %v6040_v52 = vld [vmem:[#allocation8 + $0x364] ss:$16 sps:$4 sm:$0xff]   ;;  %v6038_v54 = vld [vmem:[#allocation8 + $0x360] ss:$16 sps:$4 sm:$0xff]   ;;  %v150_v6 = vlaneseq }
  0x72   :  { %2314 = vmatprep.subr.bf16.mxu0 %v5971_v8  ;;  %2355 = vmatprep.subr.bf16.mxu1 %v5974_v9  ;;  %v6043_v55 = vld [vmem:[#allocation8 + $0x144] ss:$16 sps:$4 sm:$0xff]   ;;  %v6041_v57 = vld [vmem:[#allocation8 + $0x140] ss:$16 sps:$4 sm:$0xff]  }
  0x73   :  { %v6046_v56 = vld [vmem:[#allocation8 + $0x344] ss:$16 sps:$4 sm:$0xff]   ;;  %v6044_v58 = vld [vmem:[#allocation8 + $0x340] ss:$16 sps:$4 sm:$0xff]   ;;  %v7113_v7 = vshrl.u32 %v150_v6, 7 }
  0x74   :  { %v6049_v59 = vld [vmem:[#allocation8 + $0x124] ss:$16 sps:$4 sm:$0xff]   ;;  %v6047_v61 = vld [vmem:[#allocation8 + $0x120] ss:$16 sps:$4 sm:$0xff]  }
  0x75   :  { %2315 = vmatpush1.bf16.msra.mxu0 %v5969_v10  ;;  %2356 = vmatpush1.bf16.msra.mxu1 %v5972_v11  ;;  %v6052_v60 = vld [vmem:[#allocation8 + $0x324] ss:$16 sps:$4 sm:$0xff]   ;;  %v6050_v62 = vld [vmem:[#allocation8 + $0x320] ss:$16 sps:$4 sm:$0xff]   ;;  %v7118_v9 = vsub.s32 0, %v7113_v7  ;;  %v7121_v10 = vsub.s32 2, %v7113_v7 }
  0x76   :  { %2316 = vmatprep.subr.bf16.mxu0 %v5977_v0  ;;  %2357 = vmatprep.subr.bf16.mxu1 %v5980_v13  ;;  %v6055_v63 = vld [vmem:[#allocation8 + $0x104] ss:$16 sps:$4 sm:$0xff]   ;;  %v6053_v2 = vld [vmem:[#allocation8 + $0x100] ss:$16 sps:$4 sm:$0xff]   ;;  %v7124_v11 = vsub.s32 1, %v7113_v7  ;;  %v7127_v0 = vsub.s32 3, %v7113_v7 }
  0x77   :  { %v6058_v1 = vld [vmem:[#allocation8 + $0x304] ss:$16 sps:$4 sm:$0xff]   ;;  %v6056_v3 = vld [vmem:[#allocation8 + $0x300] ss:$16 sps:$4 sm:$0xff]  }
  0x78   :  { %v6061_v4 = vld [vmem:[#allocation8 + $0x4e4] ss:$16 sps:$4 sm:$0xff]  }
  0x79   :  { %2317 = vmatpush1.bf16.msra.mxu0 %v5975_v12  ;;  %2358 = vmatpush1.bf16.msra.mxu1 %v5978_v14  ;;  %v6064_v5 = vld [vmem:[#allocation8 + $0x6e4] ss:$16 sps:$4 sm:$0xff]  }
  0x7a   :  { %2318 = vmatprep.subr.bf16.mxu0 %v5983_v15  ;;  %2359 = vmatprep.subr.bf16.mxu1 %v5986_v16  ;;  %v7115_v8 = vld [vmem:[#allocation7] sm:$0xff] }
  0x7b   :  { %v153_v12 = vrot.slane %v7115_v8, %v7118_v9  ;;  %v161_v13 = vrot.slane %v7115_v8, %v7121_v10  ;;  %v157_v14 = vrot.slane %v7115_v8, %v7124_v11  ;;  %v165_v16 = vrot.slane %v7115_v8, %v7127_v0 }
  0x7d   :  { %2319 = vmatpush1.bf16.msra.mxu0 %v5981_v17  ;;  %2360 = vmatpush1.bf16.msra.mxu1 %v5984_v18 }
  0x7e   :  { %2320 = vmatprep.subr.bf16.mxu0 %v5989_v19  ;;  %2361 = vmatprep.subr.bf16.mxu1 %v5992_v20 }
  0x81   :  { %2321 = vmatpush1.bf16.msra.mxu0 %v5987_v21  ;;  %2362 = vmatpush1.bf16.msra.mxu1 %v5990_v22 }
  0x82   :  { %2322 = vmatprep.subr.bf16.mxu0 %v5995_v23  ;;  %2363 = vmatprep.subr.bf16.mxu1 %v5998_v24  ;;  %v172_v23 = vsub.s32 5, %v7113_v7 }
  0x85   :  { %2323 = vmatpush1.bf16.msra.mxu0 %v5993_v25  ;;  %2364 = vmatpush1.bf16.msra.mxu1 %v5996_v26  ;;  %v180_v26 = vsub.s32 7, %v7113_v7 }
  0x86   :  { %2324 = vmatprep.subr.bf16.mxu0 %v6001_v27  ;;  %2365 = vmatprep.subr.bf16.mxu1 %v6004_v28 }
  0x89   :  { %2325 = vmatpush1.bf16.msra.mxu0 %v5999_v29  ;;  %2366 = vmatpush1.bf16.msra.mxu1 %v6002_v30  ;;  %v173_v30 = vrot.slane %v7115_v8, %v172_v23 }
  0x8a   :  { %2326 = vmatprep.subr.bf16.mxu0 %v6007_v31  ;;  %2367 = vmatprep.subr.bf16.mxu1 %v6010_v32  ;;  %v181_v32 = vrot.slane %v7115_v8, %v180_v26 }
  0x8d   :  { %2327 = vmatpush1.bf16.msra.mxu0 %v6005_v33  ;;  %2368 = vmatpush1.bf16.msra.mxu1 %v6008_v34 }
  0x8e   :  { %2328 = vmatprep.subr.bf16.mxu0 %v6013_v35  ;;  %2369 = vmatprep.subr.bf16.mxu1 %v6016_v36 }
  0x91   :  { %2329 = vmatpush2.bf16.msra.mxu0 %v6011_v37  ;;  %2370 = vmatpush2.bf16.msra.mxu1 %v6014_v38 }
  0x92   :  { %2330 = vmatprep.subr.bf16.mxu0 %v6019_v39  ;;  %2371 = vmatprep.subr.bf16.mxu1 %v6022_v40 }
  0x95   :  { %2331 = vmatpush2.bf16.msra.mxu0 %v6017_v41  ;;  %2372 = vmatpush2.bf16.msra.mxu1 %v6020_v42 }
  0x96   :  { %2332 = vmatprep.subr.bf16.mxu0 %v6025_v43  ;;  %2373 = vmatprep.subr.bf16.mxu1 %v6028_v44 }
  0x99   :  { %2333 = vmatpush2.bf16.msra.mxu0 %v6023_v45  ;;  %2374 = vmatpush2.bf16.msra.mxu1 %v6026_v46  ;;  %v6059_v45 = vld [vmem:[#allocation8 + $0x4e0] ss:$16 sps:$4 sm:$0xff]  }
  0x9a   :  { %2334 = vmatprep.subr.bf16.mxu0 %v6031_v47  ;;  %2375 = vmatprep.subr.bf16.mxu1 %v6034_v48  ;;  %v6062_v48 = vld [vmem:[#allocation8 + $0x6e0] ss:$16 sps:$4 sm:$0xff]  }
  0x9d   :  { %2335 = vmatpush2.bf16.msra.mxu0 %v6029_v49  ;;  %2376 = vmatpush2.bf16.msra.mxu1 %v6032_v50  ;;  %v6067_v49 = vld [vmem:[#allocation8 + $0x4c4] ss:$16 sps:$4 sm:$0xff]   ;;  %v147_v50 = vld [vmem:[#allocation7 + $0x8] sm:$0xff] }
  0x9e   :  { %2336 = vmatprep.subr.bf16.mxu0 %v6037_v51  ;;  %2377 = vmatprep.subr.bf16.mxu1 %v6040_v52 }
  0xa1   :  { %2337 = vmatpush2.bf16.msra.mxu0 %v6035_v53  ;;  %2378 = vmatpush2.bf16.msra.mxu1 %v6038_v54 }
  0xa2   :  { %2338 = vmatprep.subr.bf16.mxu0 %v6043_v55  ;;  %2379 = vmatprep.subr.bf16.mxu1 %v6046_v56  ;;  %v6070_v55 = vld [vmem:[#allocation8 + $0x6c4] ss:$16 sps:$4 sm:$0xff]   ;;  %v168_v56 = vsub.s32 4, %v7113_v7 }
  0xa5   :  { %2339 = vmatpush2.bf16.msra.mxu0 %v6041_v57  ;;  %2380 = vmatpush2.bf16.msra.mxu1 %v6044_v58 }
  0xa6   :  { %2340 = vmatprep.subr.bf16.mxu0 %v6049_v59  ;;  %2381 = vmatprep.subr.bf16.mxu1 %v6052_v60  ;;  %v176_v60 = vsub.s32 6, %v7113_v7  ;;  %v6131_v7 = vld [vmem:[#allocation8 + $0x560] ss:$16 sps:$4 sm:$0xff]  }
  0xa9   :  { %2341 = vmatpush2.bf16.msra.mxu0 %v6047_v61  ;;  %2382 = vmatpush2.bf16.msra.mxu1 %v6050_v62 }
  0xaa   :  { %2342 = vmatprep.subr.bf16.mxu0 %v6055_v63  ;;  %2383 = vmatprep.subr.bf16.mxu1 %v6058_v1  ;;  %v201_v63 = vrot.slane %v147_v50, %v168_v56  ;;  %v6065_v1 = vld [vmem:[#allocation8 + $0x4c0] ss:$16 sps:$4 sm:$0xff]  }
  0xad   :  { %2343 = vmatpush2.bf16.msra.mxu0 %v6053_v2  ;;  %2384 = vmatpush2.bf16.msra.mxu1 %v6056_v3  ;;  %v209_v3 = vrot.slane %v147_v50, %v176_v60 }
  0xae   :  { %2394 = vmatprep.subr.bf16.mxu0 %v6061_v4  ;;  %2435 = vmatprep.subr.bf16.mxu1 %v6064_v5  ;;  %v6068_v4 = vld [vmem:[#allocation8 + $0x6c0] ss:$16 sps:$4 sm:$0xff]   ;;  %v6073_v5 = vld [vmem:[#allocation8 + $0x4a4] ss:$16 sps:$4 sm:$0xff]  }
 0x118   :  { %v428_v15 = vpop.f32.mrf.mxu0  ;;  %v469_v18 = vpop.f32.mrf.mxu1 }
 0x119   :  { %v429_v17 = vadd.f32 %v428_v15, %v153_v12  ;;  %v470_v19 = vadd.f32 %v469_v18, %v161_v13  ;;  %v205_v13 = vrot.slane %v147_v50, %v172_v23  ;;  %v213_v15 = vrot.slane %v147_v50, %v180_v26  ;;  %v6074_v26 = vld [vmem:[#allocation8 + $0x6a0] ss:$16 sps:$4 sm:$0xff]   ;;  %v6097_v50 = vld [vmem:[#allocation8 + $0x424] ss:$16 sps:$4 sm:$0xff]  }
 0x11a   :  { %v430_v20 = vpop.f32.mrf.mxu0  ;;  %v471_v22 = vpop.f32.mrf.mxu1 }
 0x11b   :  { %6795 = vtanh.f32 %v429_v17  ;;  %v431_v21 = vadd.f32 %v430_v20, %v157_v14  ;;  %v472_v24 = vadd.f32 %v471_v22, %v165_v16  ;;  %v6076_v16 = vld [vmem:[#allocation8 + $0x6a4] ss:$16 sps:$4 sm:$0xff]   ;;  %v6071_v20 = vld [vmem:[#allocation8 + $0x4a0] ss:$16 sps:$4 sm:$0xff]  }
 0x11c   :  { %6797 = vtanh.f32 %v470_v19  ;;  %v432_v25 = vpop.f32.mrf.mxu0  ;;  %v473_v27 = vpop.f32.mrf.mxu1 }
 0x11d   :  { %6799 = vtanh.f32 %v431_v21 }
 0x11e   :  { %6801 = vtanh.f32 %v472_v24  ;;  %v433_v28 = vpop.f32.mrf.mxu0  ;;  %v474_v29 = vpop.f32.mrf.mxu1 }
 0x11f   :  { %v6079_v28 = vld [vmem:[#allocation8 + $0x484] ss:$16 sps:$4 sm:$0xff]  }
 0x120   :  { %v7140_v31 = vpop.f32.mrf.mxu0  ;;  %v7143_v33 = vpop.f32.mrf.mxu1 }
 0x122   :  { %v512_v34 = vpop.f32.mrf.mxu0  ;;  %v553_v36 = vpop.f32.mrf.mxu1 }
 0x123   :  { %v513_v35 = vadd.f32 %v512_v34, %v173_v30  ;;  %v554_v38 = vadd.f32 %v553_v36, %v181_v32  ;;  %v6077_v34 = vld [vmem:[#allocation8 + $0x480] ss:$16 sps:$4 sm:$0xff]  }
 0x124   :  { %v514_v37 = vpop.f32.mrf.mxu0  ;;  %v555_v39 = vpop.f32.mrf.mxu1 }
 0x125   :  { %6803 = vtanh.f32 %v513_v35  ;;  %v6082_v35 = vld [vmem:[#allocation8 + $0x684] ss:$16 sps:$4 sm:$0xff]   ;;  %v6080_v39 = vld [vmem:[#allocation8 + $0x680] ss:$16 sps:$4 sm:$0xff]  }
 0x126   :  { %6805 = vtanh.f32 %v554_v38  ;;  %v515_v40 = vpop.f32.mrf.mxu0  ;;  %v556_v41 = vpop.f32.mrf.mxu1 }
 0x127   :  { %v6085_v40 = vld [vmem:[#allocation8 + $0x464] ss:$16 sps:$4 sm:$0xff]   ;;  %v6083_v41 = vld [vmem:[#allocation8 + $0x460] ss:$16 sps:$4 sm:$0xff]  }
 0x128   :  { %v6796_v42 = vpop.eup %6795  ;;  %v7145_v43 = vpop.f32.mrf.mxu0 }
 0x129   :  { %v6798_v44 = vpop.eup %6797  ;;  %v7147_v46 = vpop.f32.mrf.mxu1  ;;  %v7158_v58 = vpack.c.bf16 %v6796_v42, %v6796_v42  ;;  %v6088_v42 = vld [vmem:[#allocation8 + $0x664] ss:$16 sps:$4 sm:$0xff]  }
 0x12a   :  { %v6800_v47 = vpop.eup %6799  ;;  %v7149_v51 = vpop.f32.mrf.mxu0  ;;  %v7151_v53 = vpack.c.bf16 %v6798_v44, %v6798_v44  ;;  %v6086_v44 = vld [vmem:[#allocation8 + $0x660] ss:$16 sps:$4 sm:$0xff]  }
 0x12b   :  { %v6802_v52 = vpop.eup %6801  ;;  %v7153_v54 = vpack.c.bf16 %v6800_v47, %v6800_v47  ;;  %v7156_v57 = vpop.f32.mrf.mxu1  ;;  %v6089_v47 = vld [vmem:[#allocation8 + $0x440] ss:$16 sps:$4 sm:$0xff]  }
 0x12c   :  { %v7160_v59 = vpack.c.bf16 %v6802_v52, %v6802_v52  ;;  %v596_v61 = vpop.f32.mrf.mxu0  ;;  %v6095_v52 = vld [vmem:[#allocation8 + $0x420] ss:$16 sps:$4 sm:$0xff]  }
 0x12d   :  { %2344 = vmatprep.mubr.bf16.mxu0 %v7153_v54  ;;  %v637_v62 = vpop.f32.mrf.mxu1  ;;  %v6098_v61 = vld [vmem:[#allocation8 + $0x620] ss:$16 sps:$4 sm:$0xff]  }
 0x12e   :  { %2385 = vmatprep.mubr.bf16.mxu1 %v7160_v59  ;;  %2345 = vmatmul.mubr.bf16.vlgmr.msra.gmra.mxu0 %v7158_v58  ;;  %v597_v2 = vpop.f32.mrf.mxu0  ;;  %v6103_v62 = vld [vmem:[#allocation8 + $0x404] ss:$16 sps:$4 sm:$0xff]  }
 0x12f   :  { %2386 = vmatmul.mubr.bf16.vlgmr.msra.gmra.mxu1 %v7151_v53  ;;  %2395 = vmatpush1.bf16.msra.mxu0 %v6059_v45  ;;  %v638_v12 = vpop.f32.mrf.mxu1  ;;  %v6091_v45 = vld [vmem:[#allocation8 + $0x444] ss:$16 sps:$4 sm:$0xff]   ;;  %v6104_v2 = vld [vmem:[#allocation8 + $0x600] ss:$16 sps:$4 sm:$0xff]  }
 0x130   :  { %2436 = vmatpush1.bf16.msra.mxu1 %v6062_v48  ;;  %2396 = vmatprep.subr.bf16.mxu0 %v6067_v49  ;;  %v674_v14 = vpop.f32.mrf.mxu0  ;;  %v6094_v48 = vld [vmem:[#allocation8 + $0x644] ss:$16 sps:$4 sm:$0xff]   ;;  %v6092_v49 = vld [vmem:[#allocation8 + $0x640] ss:$16 sps:$4 sm:$0xff]  }
 0x131   :  { %2437 = vmatprep.subr.bf16.mxu1 %v6070_v55  ;;  %v7171_v17 = vadd.f32 %v674_v14, %v201_v63  ;;  %v715_v18 = vpop.f32.mrf.mxu1  ;;  %v6100_v55 = vld [vmem:[#allocation8 + $0x624] ss:$16 sps:$4 sm:$0xff]   ;;  %v6101_v63 = vld [vmem:[#allocation8 + $0x400] ss:$16 sps:$4 sm:$0xff]  }
 0x132   :  { %v6804_v19 = vpop.eup %6803  ;;  %v676_v21 = vpop.f32.mrf.mxu0  ;;  %v7173_v22 = vadd.f32 %v715_v18, %v209_v3  ;;  %v6109_v3 = vld [vmem:[#allocation8 + $0x5e4] ss:$16 sps:$4 sm:$0xff]   ;;  %v6110_v12 = vld [vmem:[#allocation8 + $0x7e0] ss:$16 sps:$4 sm:$0xff]  }
 0x133   :  { %v6806_v24 = vpop.eup %6805  ;;  %2397 = vmatpush1.bf16.msra.mxu0 %v6065_v1  ;;  %v7175_v25 = vpack.c.bf16 %v6804_v19, %v6804_v19  ;;  %v7177_v27 = vadd.f32 %v676_v21, %v205_v13  ;;  %v717_v23 = vpop.f32.mrf.mxu1  ;;  %v6106_v1 = vld [vmem:[#allocation8 + $0x604] ss:$16 sps:$4 sm:$0xff]   ;;  %v6113_v14 = vld [vmem:[#allocation8 + $0x5c0] ss:$16 sps:$4 sm:$0xff]   ;;  %v177_v21 = vrot.slane %v7115_v8, %v176_v60 }
 0x134   :  { %2438 = vmatpush1.bf16.msra.mxu1 %v6068_v4  ;;  %2398 = vmatprep.subr.bf16.mxu0 %v6073_v5  ;;  %v7179_v29 = vpack.c.bf16 %v6806_v24, %v6806_v24  ;;  %v678_v30 = vpop.f32.mrf.mxu0  ;;  %v7181_v32 = vadd.f32 %v717_v23, %v213_v15  ;;  %v6107_v4 = vld [vmem:[#allocation8 + $0x5e0] ss:$16 sps:$4 sm:$0xff]   ;;  %v6112_v5 = vld [vmem:[#allocation8 + $0x7e4] ss:$16 sps:$4 sm:$0xff]   ;;  %v169_v24 = vrot.slane %v7115_v8, %v168_v56 }
 0x135   :  { %2439 = vmatprep.subr.bf16.mxu1 %v6076_v16  ;;  %2426 = vmatprep.mubr.bf16.mxu0 %v7175_v25  ;;  %v719_v36 = vpop.f32.mrf.mxu1  ;;  %v6115_v13 = vld [vmem:[#allocation8 + $0x5c4] ss:$16 sps:$4 sm:$0xff]   ;;  %v6116_v16 = vld [vmem:[#allocation8 + $0x7c0] ss:$16 sps:$4 sm:$0xff]  }
 0x136   :  { %2467 = vmatprep.mubr.bf16.mxu1 %v7179_v29  ;;  %v679_v37 = vpop.f32.mrf.mxu0  ;;  %v6118_v15 = vld [vmem:[#allocation8 + $0x7c4] ss:$16 sps:$4 sm:$0xff]   ;;  %v6119_v19 = vld [vmem:[#allocation8 + $0x5a0] ss:$16 sps:$4 sm:$0xff]  }
 0x137   :  { %2399 = vmatpush1.bf16.msra.mxu0 %v6071_v20  ;;  %v720_v38 = vpop.f32.mrf.mxu1  ;;  %v6121_v18 = vld [vmem:[#allocation8 + $0x5a4] ss:$16 sps:$4 sm:$0xff]   ;;  %v6122_v23 = vld [vmem:[#allocation8 + $0x7a0] ss:$16 sps:$4 sm:$0xff]  }
 0x138   :  { %2440 = vmatpush1.bf16.msra.mxu1 %v6074_v26  ;;  %2400 = vmatprep.subr.bf16.mxu0 %v6079_v28  ;;  %v6124_v20 = vld [vmem:[#allocation8 + $0x7a4] ss:$16 sps:$4 sm:$0xff]   ;;  %v6125_v28 = vld [vmem:[#allocation8 + $0x580] ss:$16 sps:$4 sm:$0xff]  }
 0x139   :  { %2441 = vmatprep.subr.bf16.mxu1 %v6082_v35  ;;  %v6127_v26 = vld [vmem:[#allocation8 + $0x584] ss:$16 sps:$4 sm:$0xff]   ;;  %v511_v35 = vadd.f32 %v7140_v31, %v169_v24  ;;  %v6128_v36 = vld [vmem:[#allocation8 + $0x780] ss:$16 sps:$4 sm:$0xff]   ;;  %v6184_v24 = vld [vmem:[#allocation8 + $0x26c] ss:$16 sps:$4 sm:$0xff]  }
 0x13a   :  { %v6130_v30 = vld [vmem:[#allocation8 + $0x784] ss:$16 sps:$4 sm:$0xff]   ;;  %v6134_v8 = vld [vmem:[#allocation8 + $0x760] ss:$16 sps:$4 sm:$0xff]  }
 0x13b   :  { %2401 = vmatpush1.bf16.msra.mxu0 %v6077_v34  ;;  %v552_v34 = vadd.f32 %v7143_v33, %v177_v21  ;;  %v6133_v60 = vld [vmem:[#allocation8 + $0x564] ss:$16 sps:$4 sm:$0xff]   ;;  %v6137_v38 = vld [vmem:[#allocation8 + $0x540] ss:$16 sps:$4 sm:$0xff]   ;;  %v6181_v21 = vld [vmem:[#allocation8 + $0x6c] ss:$16 sps:$4 sm:$0xff]  }
 0x13c   :  { %2442 = vmatpush1.bf16.msra.mxu1 %v6080_v39  ;;  %2402 = vmatprep.subr.bf16.mxu0 %v6085_v40  ;;  %v6136_v37 = vld [vmem:[#allocation8 + $0x764] ss:$16 sps:$4 sm:$0xff]   ;;  %v6140_v31 = vld [vmem:[#allocation8 + $0x740] ss:$16 sps:$4 sm:$0xff]  }
 0x13d   :  { %2443 = vmatprep.subr.bf16.mxu1 %v6088_v42  ;;  %6807 = vtanh.f32 %v552_v34  ;;  %v6139_v56 = vld [vmem:[#allocation8 + $0x544] ss:$16 sps:$4 sm:$0xff]   ;;  %v6143_v40 = vld [vmem:[#allocation8 + $0x520] ss:$16 sps:$4 sm:$0xff]   ;;  %v6193_v34 = vld [vmem:[#allocation8 + $0x2c] ss:$16 sps:$4 sm:$0xff]  }
 0x13e   :  { %6809 = vtanh.f32 %v511_v35  ;;  %v6142_v33 = vld [vmem:[#allocation8 + $0x744] ss:$16 sps:$4 sm:$0xff]   ;;  %v6146_v42 = vld [vmem:[#allocation8 + $0x720] ss:$16 sps:$4 sm:$0xff]   ;;  %v6191_v35 = vld [vmem:[#allocation8 + $0x28] ss:$16 sps:$4 sm:$0xff]  }
 0x13f   :  { %2403 = vmatpush1.bf16.msra.mxu0 %v6083_v41  ;;  %v6145_v39 = vld [vmem:[#allocation8 + $0x524] ss:$16 sps:$4 sm:$0xff]  }
 0x140   :  { %2444 = vmatpush1.bf16.msra.mxu1 %v6086_v44  ;;  %2404 = vmatprep.subr.bf16.mxu0 %v6091_v45  ;;  %v6148_v41 = vld [vmem:[#allocation8 + $0x724] ss:$16 sps:$4 sm:$0xff]   ;;  %v6149_v45 = vld [vmem:[#allocation8 + $0x500] ss:$16 sps:$4 sm:$0xff]  }
 0x141   :  { %2445 = vmatprep.subr.bf16.mxu1 %v6094_v48  ;;  %v6151_v44 = vld [vmem:[#allocation8 + $0x504] ss:$16 sps:$4 sm:$0xff]  }
 0x143   :  { %2405 = vmatpush1.bf16.msra.mxu0 %v6089_v47  ;;  %v6154_v47 = vld [vmem:[#allocation8 + $0x704] ss:$16 sps:$4 sm:$0xff]  }
 0x144   :  { %2446 = vmatpush1.bf16.msra.mxu1 %v6092_v49  ;;  %2406 = vmatprep.subr.bf16.mxu0 %v6097_v50  ;;  %v6152_v49 = vld [vmem:[#allocation8 + $0x700] ss:$16 sps:$4 sm:$0xff]   ;;  %v6157_v50 = vld [vmem:[#allocation8 + $0xec] ss:$16 sps:$4 sm:$0xff]  }
 0x145   :  { %2447 = vmatprep.subr.bf16.mxu1 %v6100_v55 }
 0x147   :  { %2407 = vmatpush1.bf16.msra.mxu0 %v6095_v52  ;;  %v6160_v52 = vld [vmem:[#allocation8 + $0x2ec] ss:$16 sps:$4 sm:$0xff]  }
 0x148   :  { %2448 = vmatpush1.bf16.msra.mxu1 %v6098_v61  ;;  %2408 = vmatprep.subr.bf16.mxu0 %v6103_v62  ;;  %v6155_v61 = vld [vmem:[#allocation8 + $0xe8] ss:$16 sps:$4 sm:$0xff]  }
 0x149   :  { %2449 = vmatprep.subr.bf16.mxu1 %v6106_v1  ;;  %v6158_v62 = vld [vmem:[#allocation8 + $0x2e8] ss:$16 sps:$4 sm:$0xff]   ;;  %v6163_v1 = vld [vmem:[#allocation8 + $0xcc] ss:$16 sps:$4 sm:$0xff]  }
 0x14a   :  { %v6808_v48 = vpop.eup %6807 }
 0x14b   :  { %2409 = vmatpush1.bf16.msra.mxu0 %v6101_v63  ;;  %v6810_v55 = vpop.eup %6809  ;;  %v7193_v63 = vpack.c.bf16 %v6808_v48, %v6808_v48  ;;  %v6215_v48 = vld [vmem:[#allocation8 + $0x1a8] ss:$16 sps:$4 sm:$0xff]  }
 0x14c   :  { %2450 = vmatpush1.bf16.msra.mxu1 %v6104_v2  ;;  %2410 = vmatprep.subr.bf16.mxu0 %v6109_v3  ;;  %v7195_v2 = vpack.c.bf16 %v6810_v55, %v6810_v55  ;;  %v6161_v3 = vld [vmem:[#allocation8 + $0xc8] ss:$16 sps:$4 sm:$0xff]  }
 0x14d   :  { %2451 = vmatprep.subr.bf16.mxu1 %v6112_v5  ;;  %v6164_v5 = vld [vmem:[#allocation8 + $0x2c8] ss:$16 sps:$4 sm:$0xff]  }
 0x14e   :  { %v6221_v55 = vld [vmem:[#allocation8 + $0x188] ss:$16 sps:$4 sm:$0xff]  }
 0x14f   :  { %2411 = vmatpush2.bf16.msra.mxu0 %v6107_v4  ;;  %v6166_v4 = vld [vmem:[#allocation8 + $0x2cc] ss:$16 sps:$4 sm:$0xff]  }
 0x150   :  { %2452 = vmatpush2.bf16.msra.mxu1 %v6110_v12  ;;  %2412 = vmatprep.subr.bf16.mxu0 %v6115_v13  ;;  %v6169_v12 = vld [vmem:[#allocation8 + $0xac] ss:$16 sps:$4 sm:$0xff]  }
 0x151   :  { %2453 = vmatprep.subr.bf16.mxu1 %v6118_v15  ;;  %v6172_v13 = vld [vmem:[#allocation8 + $0x2ac] ss:$16 sps:$4 sm:$0xff]   ;;  %v6170_v15 = vld [vmem:[#allocation8 + $0x2a8] ss:$16 sps:$4 sm:$0xff]  }
 0x153   :  { %2413 = vmatpush2.bf16.msra.mxu0 %v6113_v14  ;;  %v6167_v14 = vld [vmem:[#allocation8 + $0xa8] ss:$16 sps:$4 sm:$0xff]  }
 0x154   :  { %2454 = vmatpush2.bf16.msra.mxu1 %v6116_v16  ;;  %2414 = vmatprep.subr.bf16.mxu0 %v6121_v18  ;;  %v6175_v16 = vld [vmem:[#allocation8 + $0x8c] ss:$16 sps:$4 sm:$0xff]  }
 0x155   :  { %2455 = vmatprep.subr.bf16.mxu1 %v6124_v20  ;;  %v6178_v18 = vld [vmem:[#allocation8 + $0x28c] ss:$16 sps:$4 sm:$0xff]   ;;  %v6176_v20 = vld [vmem:[#allocation8 + $0x288] ss:$16 sps:$4 sm:$0xff]  }
 0x157   :  { %2415 = vmatpush2.bf16.msra.mxu0 %v6119_v19  ;;  %v6173_v19 = vld [vmem:[#allocation8 + $0x88] ss:$16 sps:$4 sm:$0xff]  }
 0x158   :  { %2456 = vmatpush2.bf16.msra.mxu1 %v6122_v23  ;;  %2416 = vmatprep.subr.bf16.mxu0 %v6127_v26  ;;  %v6187_v23 = vld [vmem:[#allocation8 + $0x4c] ss:$16 sps:$4 sm:$0xff]   ;;  %v6185_v26 = vld [vmem:[#allocation8 + $0x48] ss:$16 sps:$4 sm:$0xff]  }
 0x159   :  { %2457 = vmatprep.subr.bf16.mxu1 %v6130_v30  ;;  %v6188_v30 = vld [vmem:[#allocation8 + $0x248] ss:$16 sps:$4 sm:$0xff]  }
 0x15b   :  { %2417 = vmatpush2.bf16.msra.mxu0 %v6125_v28  ;;  %v6190_v28 = vld [vmem:[#allocation8 + $0x24c] ss:$16 sps:$4 sm:$0xff]  }
 0x15c   :  { %2458 = vmatpush2.bf16.msra.mxu1 %v6128_v36  ;;  %2418 = vmatprep.subr.bf16.mxu0 %v6133_v60  ;;  %v6196_v36 = vld [vmem:[#allocation8 + $0x22c] ss:$16 sps:$4 sm:$0xff]   ;;  %v6194_v60 = vld [vmem:[#allocation8 + $0x228] ss:$16 sps:$4 sm:$0xff]  }
 0x15d   :  { %2459 = vmatprep.subr.bf16.mxu1 %v6136_v37  ;;  %v6197_v37 = vld [vmem:[#allocation8 + $0x8] ss:$16 sps:$4 sm:$0xff]  }
 0x15f   :  { %2419 = vmatpush2.bf16.msra.mxu0 %v6131_v7  ;;  %v6199_v7 = vld [vmem:[#allocation8 + $0xc] ss:$16 sps:$4 sm:$0xff]  }
 0x160   :  { %2460 = vmatpush2.bf16.msra.mxu1 %v6134_v8  ;;  %2420 = vmatprep.subr.bf16.mxu0 %v6139_v56  ;;  %v6202_v8 = vld [vmem:[#allocation8 + $0x20c] ss:$16 sps:$4 sm:$0xff]   ;;  %v6200_v56 = vld [vmem:[#allocation8 + $0x208] ss:$16 sps:$4 sm:$0xff]  }
 0x161   :  { %2461 = vmatprep.subr.bf16.mxu1 %v6142_v33  ;;  %v6203_v33 = vld [vmem:[#allocation8 + $0x1e8] ss:$16 sps:$4 sm:$0xff]  }
 0x163   :  { %2421 = vmatpush2.bf16.msra.mxu0 %v6137_v38  ;;  %v6205_v38 = vld [vmem:[#allocation8 + $0x1ec] ss:$16 sps:$4 sm:$0xff]  }
 0x164   :  { %2462 = vmatpush2.bf16.msra.mxu1 %v6140_v31  ;;  %2422 = vmatprep.subr.bf16.mxu0 %v6145_v39  ;;  %v6208_v31 = vld [vmem:[#allocation8 + $0x3ec] ss:$16 sps:$4 sm:$0xff]   ;;  %v6206_v39 = vld [vmem:[#allocation8 + $0x3e8] ss:$16 sps:$4 sm:$0xff]  }
 0x165   :  { %2463 = vmatprep.subr.bf16.mxu1 %v6148_v41  ;;  %v6209_v41 = vld [vmem:[#allocation8 + $0x1c8] ss:$16 sps:$4 sm:$0xff]  }
 0x167   :  { %2423 = vmatpush2.bf16.msra.mxu0 %v6143_v40  ;;  %v6211_v40 = vld [vmem:[#allocation8 + $0x1cc] ss:$16 sps:$4 sm:$0xff]  }
 0x168   :  { %2464 = vmatpush2.bf16.msra.mxu1 %v6146_v42  ;;  %2424 = vmatprep.subr.bf16.mxu0 %v6151_v44  ;;  %v6214_v42 = vld [vmem:[#allocation8 + $0x3cc] ss:$16 sps:$4 sm:$0xff]   ;;  %v6212_v44 = vld [vmem:[#allocation8 + $0x3c8] ss:$16 sps:$4 sm:$0xff]  }
 0x169   :  { %2465 = vmatprep.subr.bf16.mxu1 %v6154_v47  ;;  %v6220_v47 = vld [vmem:[#allocation8 + $0x3ac] ss:$16 sps:$4 sm:$0xff]  }
 0x16b   :  { %2425 = vmatpush2.bf16.msra.mxu0 %v6149_v45  ;;  %v6217_v45 = vld [vmem:[#allocation8 + $0x1ac] ss:$16 sps:$4 sm:$0xff]  }
 0x16c   :  { %2466 = vmatpush2.bf16.msra.mxu1 %v6152_v49  ;;  %2476 = vmatprep.subr.bf16.mxu0 %v6157_v50  ;;  %v6218_v49 = vld [vmem:[#allocation8 + $0x3a8] ss:$16 sps:$4 sm:$0xff]   ;;  %v6223_v50 = vld [vmem:[#allocation8 + $0x18c] ss:$16 sps:$4 sm:$0xff]  }
 0x16d   :  { %2517 = vmatprep.subr.bf16.mxu1 %v6160_v52  ;;  %v6226_v52 = vld [vmem:[#allocation8 + $0x38c] ss:$16 sps:$4 sm:$0xff]  }
 0x16e   :  { %2427 = vmatmul.mubr.bf16.vlgmr.msra.gmra.mxu0 %v7195_v2 }
 0x16f   :  { %2468 = vmatmul.mubr.bf16.vlgmr.msra.gmra.mxu1 %v7193_v63  ;;  %2477 = vmatpush1.bf16.msra.mxu0 %v6155_v61  ;;  %v6224_v61 = vld [vmem:[#allocation8 + $0x388] ss:$16 sps:$4 sm:$0xff]  }
 0x170   :  { %2508 = vmatprep.mubr.bf16.mxu0 %v7153_v54  ;;  %2518 = vmatpush1.bf16.msra.mxu1 %v6158_v62  ;;  %v6179_v54 = vld [vmem:[#allocation8 + $0x68] ss:$16 sps:$4 sm:$0xff]   ;;  %v6229_v62 = vld [vmem:[#allocation8 + $0x16c] ss:$16 sps:$4 sm:$0xff]  }
 0x171   :  { %2549 = vmatprep.mubr.bf16.mxu1 %v7160_v59  ;;  %2478 = vmatprep.subr.bf16.mxu0 %v6163_v1  ;;  %v6182_v59 = vld [vmem:[#allocation8 + $0x268] ss:$16 sps:$4 sm:$0xff]   ;;  %v6232_v1 = vld [vmem:[#allocation8 + $0x36c] ss:$16 sps:$4 sm:$0xff]  }
 0x172   :  { %2519 = vmatprep.subr.bf16.mxu1 %v6166_v4  ;;  %v6230_v4 = vld [vmem:[#allocation8 + $0x368] ss:$16 sps:$4 sm:$0xff]  }
 0x173   :  { %2479 = vmatpush1.bf16.msra.mxu0 %v6161_v3  ;;  %v6227_v3 = vld [vmem:[#allocation8 + $0x168] ss:$16 sps:$4 sm:$0xff]  }
 0x174   :  { %2520 = vmatpush1.bf16.msra.mxu1 %v6164_v5  ;;  %2480 = vmatprep.subr.bf16.mxu0 %v6169_v12  ;;  %v6235_v5 = vld [vmem:[#allocation8 + $0x14c] ss:$16 sps:$4 sm:$0xff]  }
 0x175   :  { %2521 = vmatprep.subr.bf16.mxu1 %v6172_v13  ;;  %v6238_v12 = vld [vmem:[#allocation8 + $0x34c] ss:$16 sps:$4 sm:$0xff]   ;;  %v6233_v13 = vld [vmem:[#allocation8 + $0x148] ss:$16 sps:$4 sm:$0xff]  }
 0x177   :  { %2481 = vmatpush1.bf16.msra.mxu0 %v6167_v14  ;;  %v6236_v14 = vld [vmem:[#allocation8 + $0x348] ss:$16 sps:$4 sm:$0xff]  }
 0x178   :  { %2522 = vmatpush1.bf16.msra.mxu1 %v6170_v15  ;;  %2482 = vmatprep.subr.bf16.mxu0 %v6175_v16  ;;  %v6241_v15 = vld [vmem:[#allocation8 + $0x12c] ss:$16 sps:$4 sm:$0xff]  }
 0x179   :  { %2523 = vmatprep.subr.bf16.mxu1 %v6178_v18  ;;  %v6244_v16 = vld [vmem:[#allocation8 + $0x32c] ss:$16 sps:$4 sm:$0xff]   ;;  %v6239_v18 = vld [vmem:[#allocation8 + $0x128] ss:$16 sps:$4 sm:$0xff]  }
 0x17b   :  { %2483 = vmatpush1.bf16.msra.mxu0 %v6173_v19  ;;  %v6242_v19 = vld [vmem:[#allocation8 + $0x328] ss:$16 sps:$4 sm:$0xff]  }
 0x17c   :  { %2524 = vmatpush1.bf16.msra.mxu1 %v6176_v20  ;;  %2484 = vmatprep.subr.bf16.mxu0 %v6181_v21  ;;  %v6247_v20 = vld [vmem:[#allocation8 + $0x10c] ss:$16 sps:$4 sm:$0xff]  }
 0x17d   :  { %2525 = vmatprep.subr.bf16.mxu1 %v6184_v24  ;;  %v6250_v21 = vld [vmem:[#allocation8 + $0x30c] ss:$16 sps:$4 sm:$0xff]   ;;  %v6248_v24 = vld [vmem:[#allocation8 + $0x308] ss:$16 sps:$4 sm:$0xff]  }
 0x17f   :  { %2485 = vmatpush1.bf16.msra.mxu0 %v6179_v54  ;;  %v6245_v54 = vld [vmem:[#allocation8 + $0x108] ss:$16 sps:$4 sm:$0xff]  }
 0x180   :  { %2526 = vmatpush1.bf16.msra.mxu1 %v6182_v59  ;;  %2486 = vmatprep.subr.bf16.mxu0 %v6187_v23  ;;  %v6253_v59 = vld [vmem:[#allocation8 + $0x4ec] ss:$16 sps:$4 sm:$0xff]  }
 0x181   :  { %2527 = vmatprep.subr.bf16.mxu1 %v6190_v28  ;;  %v6256_v23 = vld [vmem:[#allocation8 + $0x6ec] ss:$16 sps:$4 sm:$0xff]   ;;  %v6254_v28 = vld [vmem:[#allocation8 + $0x6e8] ss:$16 sps:$4 sm:$0xff]  }
 0x183   :  { %2487 = vmatpush1.bf16.msra.mxu0 %v6185_v26  ;;  %v6251_v26 = vld [vmem:[#allocation8 + $0x4e8] ss:$16 sps:$4 sm:$0xff]  }
 0x184   :  { %2528 = vmatpush1.bf16.msra.mxu1 %v6188_v30  ;;  %2488 = vmatprep.subr.bf16.mxu0 %v6193_v34  ;;  %v6259_v30 = vld [vmem:[#allocation8 + $0x4cc] ss:$16 sps:$4 sm:$0xff]  }
 0x185   :  { %2529 = vmatprep.subr.bf16.mxu1 %v6196_v36  ;;  %v6262_v34 = vld [vmem:[#allocation8 + $0x6cc] ss:$16 sps:$4 sm:$0xff]   ;;  %v6260_v36 = vld [vmem:[#allocation8 + $0x6c8] ss:$16 sps:$4 sm:$0xff]  }
 0x187   :  { %2489 = vmatpush1.bf16.msra.mxu0 %v6191_v35  ;;  %v6257_v35 = vld [vmem:[#allocation8 + $0x4c8] ss:$16 sps:$4 sm:$0xff]  }
 0x188   :  { %2530 = vmatpush1.bf16.msra.mxu1 %v6194_v60  ;;  %2490 = vmatprep.subr.bf16.mxu0 %v6199_v7  ;;  %v6265_v60 = vld [vmem:[#allocation8 + $0x4ac] ss:$16 sps:$4 sm:$0xff]  }
 0x189   :  { %2531 = vmatprep.subr.bf16.mxu1 %v6202_v8  ;;  %v6268_v7 = vld [vmem:[#allocation8 + $0x6ac] ss:$16 sps:$4 sm:$0xff]  }
 0x18a   :  { %v6271_v8 = vld [vmem:[#allocation8 + $0x48c] ss:$16 sps:$4 sm:$0xff]  }
 0x18b   :  { %2491 = vmatpush1.bf16.msra.mxu0 %v6197_v37  ;;  %v6263_v37 = vld [vmem:[#allocation8 + $0x4a8] ss:$16 sps:$4 sm:$0xff]  }
 0x18c   :  { %2532 = vmatpush1.bf16.msra.mxu1 %v6200_v56  ;;  %2492 = vmatprep.subr.bf16.mxu0 %v6205_v38  ;;  %v6269_v56 = vld [vmem:[#allocation8 + $0x488] ss:$16 sps:$4 sm:$0xff]   ;;  %v6277_v38 = vld [vmem:[#allocation8 + $0x46c] ss:$16 sps:$4 sm:$0xff]  }
 0x18d   :  { %2533 = vmatprep.subr.bf16.mxu1 %v6208_v31  ;;  %v6278_v31 = vld [vmem:[#allocation8 + $0x668] ss:$16 sps:$4 sm:$0xff]  }
 0x18f   :  { %2493 = vmatpush2.bf16.msra.mxu0 %v6203_v33  ;;  %v6280_v33 = vld [vmem:[#allocation8 + $0x66c] ss:$16 sps:$4 sm:$0xff]  }
 0x190   :  { %2534 = vmatpush2.bf16.msra.mxu1 %v6206_v39  ;;  %2494 = vmatprep.subr.bf16.mxu0 %v6211_v40  ;;  %v6283_v39 = vld [vmem:[#allocation8 + $0x44c] ss:$16 sps:$4 sm:$0xff]  }
 0x191   :  { %2535 = vmatprep.subr.bf16.mxu1 %v6214_v42  ;;  %v6286_v40 = vld [vmem:[#allocation8 + $0x64c] ss:$16 sps:$4 sm:$0xff]   ;;  %v6284_v42 = vld [vmem:[#allocation8 + $0x648] ss:$16 sps:$4 sm:$0xff]  }
 0x193   :  { %2495 = vmatpush2.bf16.msra.mxu0 %v6209_v41  ;;  %v6281_v41 = vld [vmem:[#allocation8 + $0x448] ss:$16 sps:$4 sm:$0xff]  }
 0x194   :  { %2536 = vmatpush2.bf16.msra.mxu1 %v6212_v44  ;;  %2496 = vmatprep.subr.bf16.mxu0 %v6217_v45  ;;  %v6289_v44 = vld [vmem:[#allocation8 + $0x42c] ss:$16 sps:$4 sm:$0xff]  }
 0x195   :  { %2537 = vmatprep.subr.bf16.mxu1 %v6220_v47  ;;  %v6292_v45 = vld [vmem:[#allocation8 + $0x62c] ss:$16 sps:$4 sm:$0xff]   ;;  %v6287_v47 = vld [vmem:[#allocation8 + $0x428] ss:$16 sps:$4 sm:$0xff]  }
 0x197   :  { %2497 = vmatpush2.bf16.msra.mxu0 %v6215_v48  ;;  %v6290_v48 = vld [vmem:[#allocation8 + $0x628] ss:$16 sps:$4 sm:$0xff]  }
 0x198   :  { %2538 = vmatpush2.bf16.msra.mxu1 %v6218_v49  ;;  %2498 = vmatprep.subr.bf16.mxu0 %v6223_v50  ;;  %v6295_v49 = vld [vmem:[#allocation8 + $0x40c] ss:$16 sps:$4 sm:$0xff]  }
 0x199   :  { %2539 = vmatprep.subr.bf16.mxu1 %v6226_v52  ;;  %v6298_v50 = vld [vmem:[#allocation8 + $0x60c] ss:$16 sps:$4 sm:$0xff]   ;;  %v6293_v52 = vld [vmem:[#allocation8 + $0x408] ss:$16 sps:$4 sm:$0xff]  }
 0x19b   :  { %2499 = vmatpush2.bf16.msra.mxu0 %v6221_v55  ;;  %v6296_v55 = vld [vmem:[#allocation8 + $0x608] ss:$16 sps:$4 sm:$0xff]  }
 0x19c   :  { %2540 = vmatpush2.bf16.msra.mxu1 %v6224_v61  ;;  %2500 = vmatprep.subr.bf16.mxu0 %v6229_v62  ;;  %v6301_v61 = vld [vmem:[#allocation8 + $0x5ec] ss:$16 sps:$4 sm:$0xff]  }
 0x19d   :  { %2541 = vmatprep.subr.bf16.mxu1 %v6232_v1  ;;  %v6304_v62 = vld [vmem:[#allocation8 + $0x7ec] ss:$16 sps:$4 sm:$0xff]   ;;  %v6299_v1 = vld [vmem:[#allocation8 + $0x5e8] ss:$16 sps:$4 sm:$0xff]  }
 0x19f   :  { %2501 = vmatpush2.bf16.msra.mxu0 %v6227_v3  ;;  %v6302_v3 = vld [vmem:[#allocation8 + $0x7e8] ss:$16 sps:$4 sm:$0xff]  }
 0x1a0   :  { %2542 = vmatpush2.bf16.msra.mxu1 %v6230_v4  ;;  %2502 = vmatprep.subr.bf16.mxu0 %v6235_v5  ;;  %v6307_v4 = vld [vmem:[#allocation8 + $0x5cc] ss:$16 sps:$4 sm:$0xff]  }
 0x1a1   :  { %2543 = vmatprep.subr.bf16.mxu1 %v6238_v12  ;;  %v6310_v5 = vld [vmem:[#allocation8 + $0x7cc] ss:$16 sps:$4 sm:$0xff]   ;;  %v6305_v12 = vld [vmem:[#allocation8 + $0x5c8] ss:$16 sps:$4 sm:$0xff]  }
 0x1a3   :  { %2503 = vmatpush2.bf16.msra.mxu0 %v6233_v13  ;;  %v6308_v13 = vld [vmem:[#allocation8 + $0x7c8] ss:$16 sps:$4 sm:$0xff]  }
 0x1a4   :  { %2544 = vmatpush2.bf16.msra.mxu1 %v6236_v14  ;;  %2504 = vmatprep.subr.bf16.mxu0 %v6241_v15  ;;  %v6313_v14 = vld [vmem:[#allocation8 + $0x5ac] ss:$16 sps:$4 sm:$0xff]  }
 0x1a5   :  { %2545 = vmatprep.subr.bf16.mxu1 %v6244_v16  ;;  %v6316_v15 = vld [vmem:[#allocation8 + $0x7ac] ss:$16 sps:$4 sm:$0xff]   ;;  %v6311_v16 = vld [vmem:[#allocation8 + $0x5a8] ss:$16 sps:$4 sm:$0xff]  }
 0x1a7   :  { %2505 = vmatpush2.bf16.msra.mxu0 %v6239_v18  ;;  %v6314_v18 = vld [vmem:[#allocation8 + $0x7a8] ss:$16 sps:$4 sm:$0xff]  }
 0x1a8   :  { %2546 = vmatpush2.bf16.msra.mxu1 %v6242_v19  ;;  %2506 = vmatprep.subr.bf16.mxu0 %v6247_v20  ;;  %v6319_v19 = vld [vmem:[#allocation8 + $0x58c] ss:$16 sps:$4 sm:$0xff]  }
 0x1a9   :  { %2547 = vmatprep.subr.bf16.mxu1 %v6250_v21  ;;  %v6322_v20 = vld [vmem:[#allocation8 + $0x78c] ss:$16 sps:$4 sm:$0xff]  }
 0x1aa   :  { %v7205_v21 = vld [vmem:[#allocation7 + $0x8] sm:$0xff] }
 0x1ab   :  { %2507 = vmatpush2.bf16.msra.mxu0 %v6245_v54  ;;  %v189_v54 = vrot.slane %v7205_v21, %v7124_v11 }
 0x1ac   :  { %2548 = vmatpush2.bf16.msra.mxu1 %v6248_v24  ;;  %2558 = vmatprep.subr.bf16.mxu0 %v6253_v59  ;;  %v197_v24 = vrot.slane %v7205_v21, %v7127_v0  ;;  %v6317_v59 = vld [vmem:[#allocation8 + $0x588] ss:$16 sps:$4 sm:$0xff]  }
 0x1ad   :  { %2599 = vmatprep.subr.bf16.mxu1 %v6256_v23  ;;  %v6320_v23 = vld [vmem:[#allocation8 + $0x788] ss:$16 sps:$4 sm:$0xff]  }
 0x1ae   :  { %2509 = vmatmul.mubr.bf16.vlgmr.msra.gmra.mxu0 %v7158_v58  ;;  %v6266_v58 = vld [vmem:[#allocation8 + $0x6a8] ss:$16 sps:$4 sm:$0xff]  }
 0x1af   :  { %2550 = vmatmul.mubr.bf16.vlgmr.msra.gmra.mxu1 %v7151_v53  ;;  %2559 = vmatpush1.bf16.msra.mxu0 %v6251_v26  ;;  %v6274_v53 = vld [vmem:[#allocation8 + $0x68c] ss:$16 sps:$4 sm:$0xff]  }
 0x1b0   :  { %2590 = vmatprep.mubr.bf16.mxu0 %v7175_v25  ;;  %2600 = vmatpush1.bf16.msra.mxu1 %v6254_v28  ;;  %v6272_v25 = vld [vmem:[#allocation8 + $0x688] ss:$16 sps:$4 sm:$0xff]   ;;  %v6325_v26 = vld [vmem:[#allocation8 + $0x56c] ss:$16 sps:$4 sm:$0xff]  }
 0x1b1   :  { %2631 = vmatprep.mubr.bf16.mxu1 %v7179_v29  ;;  %2560 = vmatprep.subr.bf16.mxu0 %v6259_v30  ;;  %v6275_v29 = vld [vmem:[#allocation8 + $0x468] ss:$16 sps:$4 sm:$0xff]   ;;  %v6328_v28 = vld [vmem:[#allocation8 + $0x76c] ss:$16 sps:$4 sm:$0xff]   ;;  %v595_v30 = vadd.f32 %v7149_v51, %v189_v54  ;;  %v6367_v54 = vld [vmem:[#allocation10 + $0x84] ss:$16 sps:$4 sm:$0xff]  }
 0x1b2   :  { %2601 = vmatprep.subr.bf16.mxu1 %v6262_v34  ;;  %v636_v34 = vadd.f32 %v7156_v57, %v197_v24  ;;  %v6340_v51 = vld [vmem:[#allocation8 + $0x72c] ss:$16 sps:$4 sm:$0xff]   ;;  %v6335_v57 = vld [vmem:[#allocation8 + $0x528] ss:$16 sps:$4 sm:$0xff]  }
 0x1b3   :  { %2561 = vmatpush1.bf16.msra.mxu0 %v6257_v35  ;;  %v6323_v35 = vld [vmem:[#allocation8 + $0x568] ss:$16 sps:$4 sm:$0xff]   ;;  %6811 = vtanh.f32 %v595_v30  ;;  %v6376_v30 = vld [vmem:[#allocation10 + $0x264] ss:$16 sps:$4 sm:$0xff]  }
 0x1b4   :  { %2602 = vmatpush1.bf16.msra.mxu1 %v6260_v36  ;;  %2562 = vmatprep.subr.bf16.mxu0 %v6265_v60  ;;  %v6326_v36 = vld [vmem:[#allocation8 + $0x768] ss:$16 sps:$4 sm:$0xff]   ;;  %v6331_v60 = vld [vmem:[#allocation8 + $0x54c] ss:$16 sps:$4 sm:$0xff]   ;;  %6813 = vtanh.f32 %v636_v34  ;;  %v6371_v34 = vld [vmem:[#allocation10 + $0x60] ss:$16 sps:$4 sm:$0xff]  }
 0x1b5   :  { %2603 = vmatprep.subr.bf16.mxu1 %v6268_v7  ;;  %v6334_v7 = vld [vmem:[#allocation8 + $0x74c] ss:$16 sps:$4 sm:$0xff]  }
 0x1b7   :  { %2563 = vmatpush1.bf16.msra.mxu0 %v6263_v37  ;;  %v6329_v37 = vld [vmem:[#allocation8 + $0x548] ss:$16 sps:$4 sm:$0xff]  }
 0x1b8   :  { %2604 = vmatpush1.bf16.msra.mxu1 %v6266_v58  ;;  %2564 = vmatprep.subr.bf16.mxu0 %v6271_v8  ;;  %v6332_v58 = vld [vmem:[#allocation8 + $0x748] ss:$16 sps:$4 sm:$0xff]   ;;  %v6337_v8 = vld [vmem:[#allocation8 + $0x52c] ss:$16 sps:$4 sm:$0xff]  }
 0x1b9   :  { %2605 = vmatprep.subr.bf16.mxu1 %v6274_v53  ;;  %v6338_v53 = vld [vmem:[#allocation8 + $0x728] ss:$16 sps:$4 sm:$0xff]  }
 0x1bb   :  { %2565 = vmatpush1.bf16.msra.mxu0 %v6269_v56  ;;  %v6343_v56 = vld [vmem:[#allocation8 + $0x50c] ss:$16 sps:$4 sm:$0xff]  }
 0x1bc   :  { %2606 = vmatpush1.bf16.msra.mxu1 %v6272_v25  ;;  %2566 = vmatprep.subr.bf16.mxu0 %v6277_v38  ;;  %v6346_v25 = vld [vmem:[#allocation8 + $0x70c] ss:$16 sps:$4 sm:$0xff]   ;;  %v6341_v38 = vld [vmem:[#allocation8 + $0x508] ss:$16 sps:$4 sm:$0xff]  }
 0x1bd   :  { %2607 = vmatprep.subr.bf16.mxu1 %v6280_v33  ;;  %v6344_v33 = vld [vmem:[#allocation8 + $0x708] ss:$16 sps:$4 sm:$0xff]  }
 0x1bf   :  { %2567 = vmatpush1.bf16.msra.mxu0 %v6275_v29  ;;  %v6349_v29 = vld [vmem:[#allocation10 + $0xe4] ss:$16 sps:$4 sm:$0xff]  }
 0x1c0   :  { %2608 = vmatpush1.bf16.msra.mxu1 %v6278_v31  ;;  %2568 = vmatprep.subr.bf16.mxu0 %v6283_v39  ;;  %v7216_v31 = vld [vmem:[%s7333_s4] sm:$0xf]  ;;  %v6352_v39 = vld [vmem:[#allocation10 + $0x2e4] ss:$16 sps:$4 sm:$0xff]  }
 0x1c1   :  { %2609 = vmatprep.subr.bf16.mxu1 %v6286_v40  ;;  %v6812_v40 = vpop.eup %6811 }
 0x1c3   :  { %2569 = vmatpush1.bf16.msra.mxu0 %v6281_v41  ;;  %v6347_v41 = vld [vmem:[#allocation10 + $0xe0] ss:$16 sps:$4 sm:$0xff]  }
 0x1c4   :  { %2610 = vmatpush1.bf16.msra.mxu1 %v6284_v42  ;;  %2570 = vmatprep.subr.bf16.mxu0 %v6289_v44  ;;  %v1015_v42 = vrot.slane %v7216_v31, %v7118_v9  ;;  %v6814_v44 = vpop.eup %6813 }
 0x1c5   :  { %2611 = vmatprep.subr.bf16.mxu1 %v6292_v45  ;;  %v6350_v45 = vld [vmem:[#allocation10 + $0x2e0] ss:$16 sps:$4 sm:$0xff]  }
 0x1c7   :  { %2571 = vmatpush1.bf16.msra.mxu0 %v6287_v47  ;;  %v1019_v47 = vrot.slane %v7216_v31, %v7124_v11 }
 0x1c8   :  { %2612 = vmatpush1.bf16.msra.mxu1 %v6290_v48  ;;  %2572 = vmatprep.subr.bf16.mxu0 %v6295_v49  ;;  %v6355_v48 = vld [vmem:[#allocation10 + $0xc4] ss:$16 sps:$4 sm:$0xff]  }
 0x1c9   :  { %2613 = vmatprep.subr.bf16.mxu1 %v6298_v50  ;;  %v7223_v50 = vpack.c.bf16 %v6812_v40, %v6812_v40  ;;  %v6398_v40 = vld [vmem:[#allocation10 + $0x3e0] ss:$16 sps:$4 sm:$0xff]  }
 0x1cb   :  { %2573 = vmatpush1.bf16.msra.mxu0 %v6293_v52  ;;  %v6358_v52 = vld [vmem:[#allocation10 + $0x2c4] ss:$16 sps:$4 sm:$0xff]  }
 0x1cc   :  { %2614 = vmatpush1.bf16.msra.mxu1 %v6296_v55  ;;  %2574 = vmatprep.subr.bf16.mxu0 %v6301_v61 }
 0x1cd   :  { %2615 = vmatprep.subr.bf16.mxu1 %v6304_v62  ;;  %v7226_v62 = vpack.c.bf16 %v6814_v44, %v6814_v44  ;;  %v6401_v44 = vld [vmem:[#allocation10 + $0x1c0] ss:$16 sps:$4 sm:$0xff]  }
 0x1cf   :  { %2575 = vmatpush2.bf16.msra.mxu0 %v6299_v1  ;;  %v6353_v1 = vld [vmem:[#allocation10 + $0xc0] ss:$16 sps:$4 sm:$0xff]  }
 0x1d0   :  { %2616 = vmatpush2.bf16.msra.mxu1 %v6302_v3  ;;  %2576 = vmatprep.subr.bf16.mxu0 %v6307_v4  ;;  %v6356_v4 = vld [vmem:[#allocation10 + $0x2c0] ss:$16 sps:$4 sm:$0xff]  }
 0x1d1   :  { %2617 = vmatprep.subr.bf16.mxu1 %v6310_v5  ;;  %v6361_v5 = vld [vmem:[#allocation10 + $0xa4] ss:$16 sps:$4 sm:$0xff]  }
 0x1d3   :  { %2577 = vmatpush2.bf16.msra.mxu0 %v6305_v12 }
 0x1d4   :  { %2618 = vmatpush2.bf16.msra.mxu1 %v6308_v13  ;;  %2578 = vmatprep.subr.bf16.mxu0 %v6313_v14 }
 0x1d5   :  { %2619 = vmatprep.subr.bf16.mxu1 %v6316_v15 }
 0x1d7   :  { %2579 = vmatpush2.bf16.msra.mxu0 %v6311_v16 }
 0x1d8   :  { %2620 = vmatpush2.bf16.msra.mxu1 %v6314_v18  ;;  %2580 = vmatprep.subr.bf16.mxu0 %v6319_v19  ;;  %v6359_v18 = vld [vmem:[#allocation10 + $0xa0] ss:$16 sps:$4 sm:$0xff]  }
 0x1d9   :  { %2621 = vmatprep.subr.bf16.mxu1 %v6322_v20  ;;  %v6362_v20 = vld [vmem:[#allocation10 + $0x2a0] ss:$16 sps:$4 sm:$0xff]  }
 0x1db   :  { %2581 = vmatpush2.bf16.msra.mxu0 %v6317_v59  ;;  %v6370_v59 = vld [vmem:[#allocation10 + $0x284] ss:$16 sps:$4 sm:$0xff]  }
 0x1dc   :  { %2622 = vmatpush2.bf16.msra.mxu1 %v6320_v23  ;;  %2582 = vmatprep.subr.bf16.mxu0 %v6325_v26  ;;  %v6365_v23 = vld [vmem:[#allocation10 + $0x80] ss:$16 sps:$4 sm:$0xff]  }
 0x1dd   :  { %2623 = vmatprep.subr.bf16.mxu1 %v6328_v28  ;;  %v6368_v26 = vld [vmem:[#allocation10 + $0x280] ss:$16 sps:$4 sm:$0xff]   ;;  %v6373_v28 = vld [vmem:[#allocation10 + $0x64] ss:$16 sps:$4 sm:$0xff]  }
 0x1df   :  { %2583 = vmatpush2.bf16.msra.mxu0 %v6323_v35  ;;  %v6374_v35 = vld [vmem:[#allocation10 + $0x260] ss:$16 sps:$4 sm:$0xff]  }
 0x1e0   :  { %2624 = vmatpush2.bf16.msra.mxu1 %v6326_v36  ;;  %2584 = vmatprep.subr.bf16.mxu0 %v6331_v60  ;;  %v6379_v36 = vld [vmem:[#allocation10 + $0x44] ss:$16 sps:$4 sm:$0xff]  }
 0x1e1   :  { %2625 = vmatprep.subr.bf16.mxu1 %v6334_v7  ;;  %v6382_v60 = vld [vmem:[#allocation10 + $0x244] ss:$16 sps:$4 sm:$0xff]   ;;  %v6377_v7 = vld [vmem:[#allocation10 + $0x40] ss:$16 sps:$4 sm:$0xff]  }
 0x1e3   :  { %2585 = vmatpush2.bf16.msra.mxu0 %v6329_v37  ;;  %v6380_v37 = vld [vmem:[#allocation10 + $0x240] ss:$16 sps:$4 sm:$0xff]  }
 0x1e4   :  { %2626 = vmatpush2.bf16.msra.mxu1 %v6332_v58  ;;  %2586 = vmatprep.subr.bf16.mxu0 %v6337_v8  ;;  %v6385_v58 = vld [vmem:[#allocation10 + $0x24] ss:$16 sps:$4 sm:$0xff]  }
 0x1e5   :  { %2627 = vmatprep.subr.bf16.mxu1 %v6340_v51  ;;  %v6388_v8 = vld [vmem:[#allocation10 + $0x224] ss:$16 sps:$4 sm:$0xff]   ;;  %v6383_v51 = vld [vmem:[#allocation10 + $0x20] ss:$16 sps:$4 sm:$0xff]  }
 0x1e7   :  { %2587 = vmatpush2.bf16.msra.mxu0 %v6335_v57  ;;  %v6386_v57 = vld [vmem:[#allocation10 + $0x220] ss:$16 sps:$4 sm:$0xff]  }
 0x1e8   :  { %2628 = vmatpush2.bf16.msra.mxu1 %v6338_v53  ;;  %2588 = vmatprep.subr.bf16.mxu0 %v6343_v56  ;;  %v6391_v53 = vld [vmem:[#allocation10 + $0x4] ss:$16 sps:$4 sm:$0xff]  }
 0x1e9   :  { %2629 = vmatprep.subr.bf16.mxu1 %v6346_v25  ;;  %v6394_v56 = vld [vmem:[#allocation10 + $0x204] ss:$16 sps:$4 sm:$0xff]   ;;  %v6389_v25 = vld [vmem:[#allocation10] ss:$16 sps:$4 sm:$0xff]  }
 0x1eb   :  { %2589 = vmatpush2.bf16.msra.mxu0 %v6341_v38  ;;  %v6392_v38 = vld [vmem:[#allocation10 + $0x200] ss:$16 sps:$4 sm:$0xff]  }
 0x1ec   :  { %2630 = vmatpush2.bf16.msra.mxu1 %v6344_v33  ;;  %4206 = vmatprep.subr.bf16.mxu0 %v6349_v29  ;;  %v6397_v33 = vld [vmem:[#allocation10 + $0x1e4] ss:$16 sps:$4 sm:$0xff]  }
 0x1ed   :  { %4247 = vmatprep.subr.bf16.mxu1 %v6352_v39  ;;  %v6400_v29 = vld [vmem:[#allocation10 + $0x3e4] ss:$16 sps:$4 sm:$0xff]   ;;  %v6395_v39 = vld [vmem:[#allocation10 + $0x1e0] ss:$16 sps:$4 sm:$0xff]  }
 0x1ee   :  { %2591 = vmatmul.mubr.bf16.vlgmr.msra.gmra.mxu0 %v7195_v2  ;;  %v2346_v49 = vpop.f32.mrf.mxu0 }
 0x1ef   :  { %2632 = vmatmul.mubr.bf16.vlgmr.msra.gmra.mxu1 %v7193_v63  ;;  %v2347_v55 = vadd.f32 %v2346_v49, %v1015_v42  ;;  %v2387_v61 = vpop.f32.mrf.mxu1  ;;  %4207 = vmatpush1.bf16.msra.mxu0 %v6347_v41  ;;  %v6364_v63 = vld [vmem:[#allocation10 + $0x2a4] ss:$16 sps:$4 sm:$0xff]   ;;  %v6407_v49 = vld [vmem:[#allocation10 + $0x1a0] ss:$16 sps:$4 sm:$0xff]  }
 0x1f0   :  { %4238 = vmatprep.mubr.bf16.mxu0 %v7223_v50  ;;  %4248 = vmatpush1.bf16.msra.mxu1 %v6350_v45  ;;  %v2348_v3 = vpop.f32.mrf.mxu0  ;;  %v6403_v41 = vld [vmem:[#allocation10 + $0x1c4] ss:$16 sps:$4 sm:$0xff]   ;;  %v6404_v45 = vld [vmem:[#allocation10 + $0x3c0] ss:$16 sps:$4 sm:$0xff]  }
 0x1f1   :  { %v7229_v12 = vadd.f32 %v2387_v61, %v2347_v55  ;;  %4279 = vmatprep.mubr.bf16.mxu1 %v7226_v62  ;;  %v2349_v2 = vadd.f32 %v2348_v3, %v1019_v47  ;;  %v2389_v13 = vpop.f32.mrf.mxu1  ;;  %4208 = vmatprep.subr.bf16.mxu0 %v6355_v48  ;;  %v6406_v42 = vld [vmem:[#allocation10 + $0x3c4] ss:$16 sps:$4 sm:$0xff]   ;;  %v6410_v55 = vld [vmem:[#allocation10 + $0x3a0] ss:$16 sps:$4 sm:$0xff]  }
 0x1f2   :  { %4249 = vmatprep.subr.bf16.mxu1 %v6358_v52  ;;  %v2350_v14 = vpop.f32.mrf.mxu0  ;;  %v6409_v47 = vld [vmem:[#allocation10 + $0x1a4] ss:$16 sps:$4 sm:$0xff]   ;;  %v185_v52 = vrot.slane %v7205_v21, %v7118_v9 }
 0x1f3   :  { %v7232_v15 = vadd.f32 %v2389_v13, %v2349_v2  ;;  %v2391_v16 = vpop.f32.mrf.mxu1  ;;  %4209 = vmatpush1.bf16.msra.mxu0 %v6353_v1  ;;  %v6412_v48 = vld [vmem:[#allocation10 + $0x3a4] ss:$16 sps:$4 sm:$0xff]   ;;  %v193_v1 = vrot.slane %v7205_v21, %v7121_v10  ;;  %v6416_v2 = vld [vmem:[#allocation10 + $0x380] ss:$16 sps:$4 sm:$0xff]  }
 0x1f4   :  { %4250 = vmatpush1.bf16.msra.mxu1 %v6356_v4  ;;  %v2351_v19 = vpop.f32.mrf.mxu0  ;;  %4210 = vmatprep.subr.bf16.mxu0 %v6361_v5  ;;  %v6415_v61 = vld [vmem:[#allocation10 + $0x184] ss:$16 sps:$4 sm:$0xff]   ;;  %v6413_v4 = vld [vmem:[#allocation10 + $0x180] ss:$16 sps:$4 sm:$0xff]   ;;  %v593_v5 = vadd.f32 %v7145_v43, %v185_v52 }
 0x1f5   :  { %v2392_v24 = vpop.f32.mrf.mxu1  ;;  %4251 = vmatprep.subr.bf16.mxu1 %v6364_v63  ;;  %v6418_v3 = vld [vmem:[#allocation10 + $0x384] ss:$16 sps:$4 sm:$0xff]   ;;  %v634_v63 = vadd.f32 %v7147_v46, %v193_v1  ;;  %v6419_v16 = vld [vmem:[#allocation10 + $0x160] ss:$16 sps:$4 sm:$0xff]  }
 0x1f6   :  { %v6421_v13 = vld [vmem:[#allocation10 + $0x164] ss:$16 sps:$4 sm:$0xff]   ;;  %6815 = vtanh.f32 %v593_v5  ;;  %v6422_v21 = vld [vmem:[#allocation10 + $0x360] ss:$16 sps:$4 sm:$0xff]  }
 0x1f7   :  { %4211 = vmatpush1.bf16.msra.mxu0 %v6359_v18  ;;  %v6424_v14 = vld [vmem:[#allocation10 + $0x364] ss:$16 sps:$4 sm:$0xff]   ;;  %6817 = vtanh.f32 %v634_v63  ;;  %v6425_v43 = vld [vmem:[#allocation10 + $0x140] ss:$16 sps:$4 sm:$0xff]  }
 0x1f8   :  { %4252 = vmatpush1.bf16.msra.mxu1 %v6362_v20  ;;  %4212 = vmatprep.subr.bf16.mxu0 %v6367_v54  ;;  %v6427_v18 = vld [vmem:[#allocation10 + $0x144] ss:$16 sps:$4 sm:$0xff]   ;;  %6819 = vtanh.f32 %v7177_v27  ;;  %v6428_v46 = vld [vmem:[#allocation10 + $0x340] ss:$16 sps:$4 sm:$0xff]  }
 0x1f9   :  { %4253 = vmatprep.subr.bf16.mxu1 %v6370_v59  ;;  %v6430_v19 = vld [vmem:[#allocation10 + $0x344] ss:$16 sps:$4 sm:$0xff]   ;;  %6821 = vtanh.f32 %v7181_v32  ;;  %v6431_v24 = vld [vmem:[#allocation10 + $0x120] ss:$16 sps:$4 sm:$0xff]  }
 0x1fa   :  { %v6433_v20 = vld [vmem:[#allocation10 + $0x124] ss:$16 sps:$4 sm:$0xff]   ;;  %v6434_v59 = vld [vmem:[#allocation10 + $0x320] ss:$16 sps:$4 sm:$0xff]   ;;  %6823 = vtanh.f32 %v7171_v17 }
 0x1fb   :  { %4213 = vmatpush1.bf16.msra.mxu0 %v6365_v23  ;;  %v6436_v54 = vld [vmem:[#allocation10 + $0x324] ss:$16 sps:$4 sm:$0xff]   ;;  %v6437_v27 = vld [vmem:[#allocation10 + $0x100] ss:$16 sps:$4 sm:$0xff]   ;;  %6825 = vtanh.f32 %v7173_v22 }
 0x1fc   :  { %4254 = vmatpush1.bf16.msra.mxu1 %v6368_v26  ;;  %4214 = vmatprep.subr.bf16.mxu0 %v6373_v28  ;;  %v6439_v23 = vld [vmem:[#allocation10 + $0x104] ss:$16 sps:$4 sm:$0xff]   ;;  %v6440_v32 = vld [vmem:[#allocation10 + $0x300] ss:$16 sps:$4 sm:$0xff]  }
 0x1fd   :  { %4255 = vmatprep.subr.bf16.mxu1 %v6376_v30  ;;  %v6442_v26 = vld [vmem:[#allocation10 + $0x304] ss:$16 sps:$4 sm:$0xff]   ;;  %v6455_v52 = vld [vmem:[#allocation10 + $0x4a0] ss:$16 sps:$4 sm:$0xff]  }
 0x1fe   :  { %v6445_v28 = vld [vmem:[#allocation10 + $0x4e4] ss:$16 sps:$4 sm:$0xff]   ;;  %v6464_v5 = vld [vmem:[#allocation10 + $0x680] ss:$16 sps:$4 sm:$0xff]  }
 0x1ff   :  { %4215 = vmatpush1.bf16.msra.mxu0 %v6371_v34  ;;  %v6448_v34 = vld [vmem:[#allocation10 + $0x6e4] ss:$16 sps:$4 sm:$0xff]   ;;  %v6467_v63 = vld [vmem:[#allocation10 + $0x460] ss:$16 sps:$4 sm:$0xff]  }
 0x200   :  { %4256 = vmatpush1.bf16.msra.mxu1 %v6374_v35  ;;  %4216 = vmatprep.subr.bf16.mxu0 %v6379_v36  ;;  %v6463_v1 = vld [vmem:[#allocation10 + $0x484] ss:$16 sps:$4 sm:$0xff]   ;;  %v6530_v17 = vld [vmem:[#allocation10 + $0x720] ss:$16 sps:$4 sm:$0xff]  }
 0x201   :  { %4257 = vmatprep.subr.bf16.mxu1 %v6382_v60  ;;  %v6443_v60 = vld [vmem:[#allocation10 + $0x4e0] ss:$16 sps:$4 sm:$0xff]  }
 0x202   :  { %v6533_v22 = vld [vmem:[#allocation10 + $0x500] ss:$16 sps:$4 sm:$0xff]  }
 0x203   :  { %4217 = vmatpush1.bf16.msra.mxu0 %v6377_v7  ;;  %v6816_v30 = vpop.eup %6815 }
 0x204   :  { %4258 = vmatpush1.bf16.msra.mxu1 %v6380_v37  ;;  %4218 = vmatprep.subr.bf16.mxu0 %v6385_v58  ;;  %v6818_v35 = vpop.eup %6817  ;;  %v7242_v37 = vpack.c.bf16 %v6816_v30, %v6816_v30  ;;  %v6446_v58 = vld [vmem:[#allocation10 + $0x6e0] ss:$16 sps:$4 sm:$0xff]  }
 0x205   :  { %4259 = vmatprep.subr.bf16.mxu1 %v6388_v8  ;;  %v6820_v36 = vpop.eup %6819  ;;  %v7244_v8 = vpack.c.bf16 %v6818_v35, %v6818_v35  ;;  %v6494_v30 = vld [vmem:[#allocation10 + $0x7e0] ss:$16 sps:$4 sm:$0xff]   ;;  %v6502_v35 = vld [vmem:[#allocation10 + $0x7c4] ss:$16 sps:$4 sm:$0xff]  }
 0x206   :  { %v6822_v7 = vpop.eup %6821 }
 0x207   :  { %4219 = vmatpush1.bf16.msra.mxu0 %v6383_v51  ;;  %v6451_v51 = vld [vmem:[#allocation10 + $0x4c4] ss:$16 sps:$4 sm:$0xff]  }
 0x208   :  { %4260 = vmatpush1.bf16.msra.mxu1 %v6386_v57  ;;  %4220 = vmatprep.subr.bf16.mxu0 %v6391_v53  ;;  %v7247_v53 = vpack.c.bf16 %v6820_v36, %v6820_v36  ;;  %v6497_v36 = vld [vmem:[#allocation10 + $0x5c0] ss:$16 sps:$4 sm:$0xff]  }
 0x209   :  { %4261 = vmatprep.subr.bf16.mxu1 %v6394_v56  ;;  %v6454_v56 = vld [vmem:[#allocation10 + $0x6c4] ss:$16 sps:$4 sm:$0xff]  }
 0x20b   :  { %4221 = vmatpush1.bf16.msra.mxu0 %v6389_v25 }
 0x20c   :  { %4262 = vmatpush1.bf16.msra.mxu1 %v6392_v38  ;;  %4222 = vmatprep.subr.bf16.mxu0 %v6397_v33  ;;  %v7251_v33 = vpack.c.bf16 %v6822_v7, %v6822_v7  ;;  %v6505_v7 = vld [vmem:[#allocation10 + $0x5a4] ss:$16 sps:$4 sm:$0xff]  }
 0x20d   :  { %4263 = vmatprep.subr.bf16.mxu1 %v6400_v29  ;;  %v6449_v29 = vld [vmem:[#allocation10 + $0x4c0] ss:$16 sps:$4 sm:$0xff]  }
 0x20f   :  { %4223 = vmatpush2.bf16.msra.mxu0 %v6395_v39 }
 0x210   :  { %4264 = vmatpush2.bf16.msra.mxu1 %v6398_v40  ;;  %4224 = vmatprep.subr.bf16.mxu0 %v6403_v41  ;;  %v6452_v40 = vld [vmem:[#allocation10 + $0x6c0] ss:$16 sps:$4 sm:$0xff]   ;;  %v6457_v41 = vld [vmem:[#allocation10 + $0x4a4] ss:$16 sps:$4 sm:$0xff]  }
 0x211   :  { %4265 = vmatprep.subr.bf16.mxu1 %v6406_v42 }
 0x213   :  { %4225 = vmatpush2.bf16.msra.mxu0 %v6401_v44 }
 0x214   :  { %4266 = vmatpush2.bf16.msra.mxu1 %v6404_v45  ;;  %4226 = vmatprep.subr.bf16.mxu0 %v6409_v47  ;;  %v6460_v45 = vld [vmem:[#allocation10 + $0x6a4] ss:$16 sps:$4 sm:$0xff]  }
 0x215   :  { %4267 = vmatprep.subr.bf16.mxu1 %v6412_v48 }
 0x217   :  { %4227 = vmatpush2.bf16.msra.mxu0 %v6407_v49 }
 0x218   :  { %4268 = vmatpush2.bf16.msra.mxu1 %v6410_v55  ;;  %4228 = vmatprep.subr.bf16.mxu0 %v6415_v61  ;;  %v6458_v61 = vld [vmem:[#allocation10 + $0x6a0] ss:$16 sps:$4 sm:$0xff]  }
 0x219   :  { %4269 = vmatprep.subr.bf16.mxu1 %v6418_v3 }
 0x21b   :  { %4229 = vmatpush2.bf16.msra.mxu0 %v6413_v4  ;;  %v6466_v4 = vld [vmem:[#allocation10 + $0x684] ss:$16 sps:$4 sm:$0xff]  }
 0x21c   :  { %4270 = vmatpush2.bf16.msra.mxu1 %v6416_v2  ;;  %4230 = vmatprep.subr.bf16.mxu0 %v6421_v13  ;;  %v6469_v2 = vld [vmem:[#allocation10 + $0x464] ss:$16 sps:$4 sm:$0xff]  }
 0x21d   :  { %4271 = vmatprep.subr.bf16.mxu1 %v6424_v14  ;;  %v6472_v13 = vld [vmem:[#allocation10 + $0x664] ss:$16 sps:$4 sm:$0xff]   ;;  %v6470_v14 = vld [vmem:[#allocation10 + $0x660] ss:$16 sps:$4 sm:$0xff]  }
 0x21f   :  { %4231 = vmatpush2.bf16.msra.mxu0 %v6419_v16  ;;  %v6475_v16 = vld [vmem:[#allocation10 + $0x444] ss:$16 sps:$4 sm:$0xff]  }
 0x220   :  { %4272 = vmatpush2.bf16.msra.mxu1 %v6422_v21  ;;  %4232 = vmatprep.subr.bf16.mxu0 %v6427_v18  ;;  %v6478_v21 = vld [vmem:[#allocation10 + $0x644] ss:$16 sps:$4 sm:$0xff]   ;;  %v6473_v18 = vld [vmem:[#allocation10 + $0x440] ss:$16 sps:$4 sm:$0xff]  }
 0x221   :  { %4273 = vmatprep.subr.bf16.mxu1 %v6430_v19  ;;  %v6476_v19 = vld [vmem:[#allocation10 + $0x640] ss:$16 sps:$4 sm:$0xff]  }
 0x223   :  { %4233 = vmatpush2.bf16.msra.mxu0 %v6425_v43  ;;  %v6481_v43 = vld [vmem:[#allocation10 + $0x424] ss:$16 sps:$4 sm:$0xff]  }
 0x224   :  { %4274 = vmatpush2.bf16.msra.mxu1 %v6428_v46  ;;  %4234 = vmatprep.subr.bf16.mxu0 %v6433_v20  ;;  %v6484_v46 = vld [vmem:[#allocation10 + $0x624] ss:$16 sps:$4 sm:$0xff]   ;;  %v6479_v20 = vld [vmem:[#allocation10 + $0x420] ss:$16 sps:$4 sm:$0xff]  }
 0x225   :  { %4275 = vmatprep.subr.bf16.mxu1 %v6436_v54  ;;  %v6482_v54 = vld [vmem:[#allocation10 + $0x620] ss:$16 sps:$4 sm:$0xff]  }
 0x227   :  { %4235 = vmatpush2.bf16.msra.mxu0 %v6431_v24  ;;  %v6487_v24 = vld [vmem:[#allocation10 + $0x404] ss:$16 sps:$4 sm:$0xff]  }
 0x228   :  { %4276 = vmatpush2.bf16.msra.mxu1 %v6434_v59  ;;  %4236 = vmatprep.subr.bf16.mxu0 %v6439_v23  ;;  %v6490_v59 = vld [vmem:[#allocation10 + $0x604] ss:$16 sps:$4 sm:$0xff]   ;;  %v6485_v23 = vld [vmem:[#allocation10 + $0x400] ss:$16 sps:$4 sm:$0xff]  }
 0x229   :  { %4277 = vmatprep.subr.bf16.mxu1 %v6442_v26  ;;  %v6488_v26 = vld [vmem:[#allocation10 + $0x600] ss:$16 sps:$4 sm:$0xff]  }
 0x22b   :  { %4237 = vmatpush2.bf16.msra.mxu0 %v6437_v27  ;;  %v6493_v27 = vld [vmem:[#allocation10 + $0x5e4] ss:$16 sps:$4 sm:$0xff]  }
 0x22c   :  { %4278 = vmatpush2.bf16.msra.mxu1 %v6440_v32  ;;  %4288 = vmatprep.subr.bf16.mxu0 %v6445_v28  ;;  %v6496_v32 = vld [vmem:[#allocation10 + $0x7e4] ss:$16 sps:$4 sm:$0xff]   ;;  %v6491_v28 = vld [vmem:[#allocation10 + $0x5e0] ss:$16 sps:$4 sm:$0xff]  }
 0x22d   :  { %4329 = vmatprep.subr.bf16.mxu1 %v6448_v34  ;;  %v6499_v34 = vld [vmem:[#allocation10 + $0x5c4] ss:$16 sps:$4 sm:$0xff]  }
 0x22e   :  { %v2428_v57 = vpop.f32.mrf.mxu0  ;;  %4239 = vmatmul.mubr.bf16.vlgmr.msra.gmra.mxu0 %v7242_v37 }
 0x22f   :  { %v2429_v25 = vadd.f32 %v2428_v57, %v7229_v12  ;;  %v2469_v38 = vpop.f32.mrf.mxu1  ;;  %4280 = vmatmul.mubr.bf16.vlgmr.msra.gmra.mxu1 %v7244_v8  ;;  %4289 = vmatpush1.bf16.msra.mxu0 %v6443_v60  ;;  %v6500_v60 = vld [vmem:[#allocation10 + $0x7c0] ss:$16 sps:$4 sm:$0xff]  }
 0x230   :  { %4320 = vmatprep.mubr.bf16.mxu0 %v7247_v53  ;;  %4330 = vmatpush1.bf16.msra.mxu1 %v6446_v58  ;;  %v2430_v39 = vpop.f32.mrf.mxu0  ;;  %v6508_v58 = vld [vmem:[#allocation10 + $0x7a4] ss:$16 sps:$4 sm:$0xff]   ;;  %v6506_v57 = vld [vmem:[#allocation10 + $0x7a0] ss:$16 sps:$4 sm:$0xff]  }
 0x231   :  { %v7254_v42 = vadd.f32 %v2469_v38, %v2429_v25  ;;  %4361 = vmatprep.mubr.bf16.mxu1 %v7251_v33  ;;  %v2431_v44 = vadd.f32 %v2430_v39, %v7232_v15  ;;  %v2471_v12 = vpop.f32.mrf.mxu1  ;;  %4290 = vmatprep.subr.bf16.mxu0 %v6451_v51  ;;  %v6461_v15 = vld [vmem:[#allocation10 + $0x480] ss:$16 sps:$4 sm:$0xff]   ;;  %v6514_v25 = vld [vmem:[#allocation10 + $0x784] ss:$16 sps:$4 sm:$0xff]  }
 0x232   :  { %v2432_v47 = vpop.f32.mrf.mxu0  ;;  %4331 = vmatprep.subr.bf16.mxu1 %v6454_v56  ;;  %v6503_v51 = vld [vmem:[#allocation10 + $0x5a0] ss:$16 sps:$4 sm:$0xff]   ;;  %v6511_v56 = vld [vmem:[#allocation10 + $0x584] ss:$16 sps:$4 sm:$0xff]  }
 0x233   :  { %v7258_v48 = vadd.f32 %v2471_v12, %v2431_v44  ;;  %v2473_v49 = vpop.f32.mrf.mxu1  ;;  %4291 = vmatpush1.bf16.msra.mxu0 %v6449_v29  ;;  %v6509_v38 = vld [vmem:[#allocation10 + $0x580] ss:$16 sps:$4 sm:$0xff]   ;;  %v6517_v39 = vld [vmem:[#allocation10 + $0x564] ss:$16 sps:$4 sm:$0xff]  }
 0x234   :  { %4332 = vmatpush1.bf16.msra.mxu1 %v6452_v40  ;;  %v2433_v55 = vpop.f32.mrf.mxu0  ;;  %4292 = vmatprep.subr.bf16.mxu0 %v6457_v41  ;;  %v6512_v29 = vld [vmem:[#allocation10 + $0x780] ss:$16 sps:$4 sm:$0xff]   ;;  %v6520_v40 = vld [vmem:[#allocation10 + $0x764] ss:$16 sps:$4 sm:$0xff]  }
 0x235   :  { %v2474_v3 = vpop.f32.mrf.mxu1  ;;  %4333 = vmatprep.subr.bf16.mxu1 %v6460_v45  ;;  %v6515_v41 = vld [vmem:[#allocation10 + $0x560] ss:$16 sps:$4 sm:$0xff]   ;;  %v6523_v12 = vld [vmem:[#allocation10 + $0x544] ss:$16 sps:$4 sm:$0xff]   ;;  %6827 = vtanh.f32 %v7258_v48  ;;  %v6728_v48 = vld [vmem:[#allocation10 + $0x708] ss:$16 sps:$4 sm:$0xff]  }
 0x236   :  { %v6518_v44 = vld [vmem:[#allocation10 + $0x760] ss:$16 sps:$4 sm:$0xff]   ;;  %v6526_v45 = vld [vmem:[#allocation10 + $0x744] ss:$16 sps:$4 sm:$0xff]  }
 0x237   :  { %4293 = vmatpush1.bf16.msra.mxu0 %v6455_v52  ;;  %v6521_v47 = vld [vmem:[#allocation10 + $0x540] ss:$16 sps:$4 sm:$0xff]   ;;  %v6529_v52 = vld [vmem:[#allocation10 + $0x524] ss:$16 sps:$4 sm:$0xff]  }
 0x238   :  { %4334 = vmatpush1.bf16.msra.mxu1 %v6458_v61  ;;  %4294 = vmatprep.subr.bf16.mxu0 %v6463_v1  ;;  %v6524_v49 = vld [vmem:[#allocation10 + $0x740] ss:$16 sps:$4 sm:$0xff]   ;;  %v6532_v55 = vld [vmem:[#allocation10 + $0x724] ss:$16 sps:$4 sm:$0xff]  }
 0x239   :  { %4335 = vmatprep.subr.bf16.mxu1 %v6466_v4  ;;  %v6527_v61 = vld [vmem:[#allocation10 + $0x520] ss:$16 sps:$4 sm:$0xff]   ;;  %v6535_v1 = vld [vmem:[#allocation10 + $0x504] ss:$16 sps:$4 sm:$0xff]  }
 0x23a   :  { %v6538_v3 = vld [vmem:[#allocation10 + $0x704] ss:$16 sps:$4 sm:$0xff]   ;;  %v6536_v4 = vld [vmem:[#allocation10 + $0x700] ss:$16 sps:$4 sm:$0xff]  }
 0x23b   :  { %4295 = vmatpush1.bf16.msra.mxu0 %v6461_v15  ;;  %v6541_v15 = vld [vmem:[#allocation10 + $0xec] ss:$16 sps:$4 sm:$0xff]  }
 0x23c   :  { %4336 = vmatpush1.bf16.msra.mxu1 %v6464_v5  ;;  %4296 = vmatprep.subr.bf16.mxu0 %v6469_v2  ;;  %v6824_v5 = vpop.eup %6823  ;;  %v6544_v2 = vld [vmem:[#allocation10 + $0x2ec] ss:$16 sps:$4 sm:$0xff]  }
 0x23d   :  { %4337 = vmatprep.subr.bf16.mxu1 %v6472_v13  ;;  %v6826_v13 = vpop.eup %6825 }
 0x23f   :  { %4297 = vmatpush1.bf16.msra.mxu0 %v6467_v63  ;;  %v1023_v63 = vrot.slane %v7216_v31, %v7121_v10 }
 0x240   :  { %4338 = vmatpush1.bf16.msra.mxu1 %v6470_v14  ;;  %4298 = vmatprep.subr.bf16.mxu0 %v6475_v16  ;;  %v6539_v14 = vld [vmem:[#allocation10 + $0xe8] ss:$16 sps:$4 sm:$0xff]   ;;  %v7264_v16 = vpack.c.bf16 %v6824_v5, %v6824_v5  ;;  %v6595_v5 = vld [vmem:[#allocation10 + $0x1cc] ss:$16 sps:$4 sm:$0xff]  }
 0x241   :  { %4339 = vmatprep.subr.bf16.mxu1 %v6478_v21  ;;  %v6542_v21 = vld [vmem:[#allocation10 + $0x2e8] ss:$16 sps:$4 sm:$0xff]  }
 0x243   :  { %4299 = vmatpush1.bf16.msra.mxu0 %v6473_v18  ;;  %v7266_v18 = vpack.c.bf16 %v6826_v13, %v6826_v13  ;;  %v6593_v13 = vld [vmem:[#allocation10 + $0x1c8] ss:$16 sps:$4 sm:$0xff]  }
 0x244   :  { %4340 = vmatpush1.bf16.msra.mxu1 %v6476_v19  ;;  %4300 = vmatprep.subr.bf16.mxu0 %v6481_v43  ;;  %v1027_v19 = vrot.slane %v7216_v31, %v7127_v0  ;;  %v6547_v43 = vld [vmem:[#allocation10 + $0xcc] ss:$16 sps:$4 sm:$0xff]  }
 0x245   :  { %4341 = vmatprep.subr.bf16.mxu1 %v6484_v46 }
 0x247   :  { %4301 = vmatpush1.bf16.msra.mxu0 %v6479_v20  ;;  %v6550_v20 = vld [vmem:[#allocation10 + $0x2cc] ss:$16 sps:$4 sm:$0xff]  }
 0x248   :  { %4342 = vmatpush1.bf16.msra.mxu1 %v6482_v54  ;;  %4302 = vmatprep.subr.bf16.mxu0 %v6487_v24 }
 0x249   :  { %4343 = vmatprep.subr.bf16.mxu1 %v6490_v59  ;;  %v6545_v59 = vld [vmem:[#allocation10 + $0xc8] ss:$16 sps:$4 sm:$0xff]  }
 0x24b   :  { %4303 = vmatpush1.bf16.msra.mxu0 %v6485_v23 }
 0x24c   :  { %4344 = vmatpush1.bf16.msra.mxu1 %v6488_v26  ;;  %4304 = vmatprep.subr.bf16.mxu0 %v6493_v27  ;;  %v6548_v26 = vld [vmem:[#allocation10 + $0x2c8] ss:$16 sps:$4 sm:$0xff]   ;;  %v6553_v27 = vld [vmem:[#allocation10 + $0xac] ss:$16 sps:$4 sm:$0xff]  }
 0x24d   :  { %4345 = vmatprep.subr.bf16.mxu1 %v6496_v32 }
 0x24f   :  { %4305 = vmatpush2.bf16.msra.mxu0 %v6491_v28 }
 0x250   :  { %4346 = vmatpush2.bf16.msra.mxu1 %v6494_v30  ;;  %4306 = vmatprep.subr.bf16.mxu0 %v6499_v34  ;;  %v6556_v30 = vld [vmem:[#allocation10 + $0x2ac] ss:$16 sps:$4 sm:$0xff]  }
 0x251   :  { %4347 = vmatprep.subr.bf16.mxu1 %v6502_v35 }
 0x253   :  { %4307 = vmatpush2.bf16.msra.mxu0 %v6497_v36 }
 0x254   :  { %4348 = vmatpush2.bf16.msra.mxu1 %v6500_v60  ;;  %4308 = vmatprep.subr.bf16.mxu0 %v6505_v7  ;;  %v6551_v60 = vld [vmem:[#allocation10 + $0xa8] ss:$16 sps:$4 sm:$0xff]  }
 0x255   :  { %4349 = vmatprep.subr.bf16.mxu1 %v6508_v58  ;;  %v6554_v7 = vld [vmem:[#allocation10 + $0x2a8] ss:$16 sps:$4 sm:$0xff]   ;;  %v6559_v58 = vld [vmem:[#allocation10 + $0x8c] ss:$16 sps:$4 sm:$0xff]  }
 0x257   :  { %4309 = vmatpush2.bf16.msra.mxu0 %v6503_v51 }
 0x258   :  { %4350 = vmatpush2.bf16.msra.mxu1 %v6506_v57  ;;  %4310 = vmatprep.subr.bf16.mxu0 %v6511_v56  ;;  %v6562_v57 = vld [vmem:[#allocation10 + $0x28c] ss:$16 sps:$4 sm:$0xff]   ;;  %v6560_v56 = vld [vmem:[#allocation10 + $0x288] ss:$16 sps:$4 sm:$0xff]  }
 0x259   :  { %4351 = vmatprep.subr.bf16.mxu1 %v6514_v25  ;;  %v6565_v25 = vld [vmem:[#allocation10 + $0x6c] ss:$16 sps:$4 sm:$0xff]  }
 0x25b   :  { %4311 = vmatpush2.bf16.msra.mxu0 %v6509_v38  ;;  %v6568_v38 = vld [vmem:[#allocation10 + $0x26c] ss:$16 sps:$4 sm:$0xff]  }
 0x25c   :  { %4352 = vmatpush2.bf16.msra.mxu1 %v6512_v29  ;;  %4312 = vmatprep.subr.bf16.mxu0 %v6517_v39  ;;  %v6563_v29 = vld [vmem:[#allocation10 + $0x68] ss:$16 sps:$4 sm:$0xff]  }
 0x25d   :  { %4353 = vmatprep.subr.bf16.mxu1 %v6520_v40  ;;  %v6566_v39 = vld [vmem:[#allocation10 + $0x268] ss:$16 sps:$4 sm:$0xff]   ;;  %v6571_v40 = vld [vmem:[#allocation10 + $0x4c] ss:$16 sps:$4 sm:$0xff]  }
 0x25f   :  { %4313 = vmatpush2.bf16.msra.mxu0 %v6515_v41  ;;  %v6574_v41 = vld [vmem:[#allocation10 + $0x24c] ss:$16 sps:$4 sm:$0xff]  }
 0x260   :  { %4354 = vmatpush2.bf16.msra.mxu1 %v6518_v44  ;;  %4314 = vmatprep.subr.bf16.mxu0 %v6523_v12  ;;  %v6569_v44 = vld [vmem:[#allocation10 + $0x48] ss:$16 sps:$4 sm:$0xff]  }
 0x261   :  { %4355 = vmatprep.subr.bf16.mxu1 %v6526_v45  ;;  %v6572_v12 = vld [vmem:[#allocation10 + $0x248] ss:$16 sps:$4 sm:$0xff]   ;;  %v6577_v45 = vld [vmem:[#allocation10 + $0x2c] ss:$16 sps:$4 sm:$0xff]  }
 0x263   :  { %4315 = vmatpush2.bf16.msra.mxu0 %v6521_v47  ;;  %v6580_v47 = vld [vmem:[#allocation10 + $0x22c] ss:$16 sps:$4 sm:$0xff]  }
 0x264   :  { %4356 = vmatpush2.bf16.msra.mxu1 %v6524_v49  ;;  %4316 = vmatprep.subr.bf16.mxu0 %v6529_v52  ;;  %v6575_v49 = vld [vmem:[#allocation10 + $0x28] ss:$16 sps:$4 sm:$0xff]  }
 0x265   :  { %4357 = vmatprep.subr.bf16.mxu1 %v6532_v55  ;;  %v6578_v52 = vld [vmem:[#allocation10 + $0x228] ss:$16 sps:$4 sm:$0xff]   ;;  %v6583_v55 = vld [vmem:[#allocation10 + $0xc] ss:$16 sps:$4 sm:$0xff]  }
 0x267   :  { %4317 = vmatpush2.bf16.msra.mxu0 %v6527_v61  ;;  %v6586_v61 = vld [vmem:[#allocation10 + $0x20c] ss:$16 sps:$4 sm:$0xff]  }
 0x268   :  { %4358 = vmatpush2.bf16.msra.mxu1 %v6530_v17  ;;  %4318 = vmatprep.subr.bf16.mxu0 %v6535_v1  ;;  %v6581_v17 = vld [vmem:[#allocation10 + $0x8] ss:$16 sps:$4 sm:$0xff]  }
 0x269   :  { %4359 = vmatprep.subr.bf16.mxu1 %v6538_v3  ;;  %v6584_v1 = vld [vmem:[#allocation10 + $0x208] ss:$16 sps:$4 sm:$0xff]   ;;  %v6589_v3 = vld [vmem:[#allocation10 + $0x1ec] ss:$16 sps:$4 sm:$0xff]  }
 0x26b   :  { %4319 = vmatpush2.bf16.msra.mxu0 %v6533_v22  ;;  %v6592_v22 = vld [vmem:[#allocation10 + $0x3ec] ss:$16 sps:$4 sm:$0xff]  }
 0x26c   :  { %4360 = vmatpush2.bf16.msra.mxu1 %v6536_v4  ;;  %4370 = vmatprep.subr.bf16.mxu0 %v6541_v15  ;;  %v6587_v4 = vld [vmem:[#allocation10 + $0x1e8] ss:$16 sps:$4 sm:$0xff]  }
 0x26d   :  { %4411 = vmatprep.subr.bf16.mxu1 %v6544_v2  ;;  %v6590_v15 = vld [vmem:[#allocation10 + $0x3e8] ss:$16 sps:$4 sm:$0xff]   ;;  %v6598_v2 = vld [vmem:[#allocation10 + $0x3cc] ss:$16 sps:$4 sm:$0xff]  }
 0x26e   :  { %v2510_v46 = vpop.f32.mrf.mxu0  ;;  %4321 = vmatmul.mubr.bf16.vlgmr.msra.gmra.mxu0 %v7264_v16 }
 0x26f   :  { %v2511_v54 = vadd.f32 %v2510_v46, %v1023_v63  ;;  %v2551_v24 = vpop.f32.mrf.mxu1  ;;  %4362 = vmatmul.mubr.bf16.vlgmr.msra.gmra.mxu1 %v7266_v18  ;;  %4371 = vmatpush1.bf16.msra.mxu0 %v6539_v14  ;;  %v6596_v63 = vld [vmem:[#allocation10 + $0x3c8] ss:$16 sps:$4 sm:$0xff]   ;;  %v6601_v14 = vld [vmem:[#allocation10 + $0x1ac] ss:$16 sps:$4 sm:$0xff]  }
 0x270   :  { %4402 = vmatprep.mubr.bf16.mxu0 %v7223_v50  ;;  %4412 = vmatpush1.bf16.msra.mxu1 %v6542_v21  ;;  %v2512_v23 = vpop.f32.mrf.mxu0  ;;  %v6604_v21 = vld [vmem:[#allocation10 + $0x3ac] ss:$16 sps:$4 sm:$0xff]  }
 0x271   :  { %v7273_v32 = vadd.f32 %v2551_v24, %v2511_v54  ;;  %4443 = vmatprep.mubr.bf16.mxu1 %v7226_v62  ;;  %v2513_v31 = vadd.f32 %v2512_v23, %v1027_v19  ;;  %v2553_v28 = vpop.f32.mrf.mxu1  ;;  %4372 = vmatprep.subr.bf16.mxu0 %v6547_v43  ;;  %v6557_v62 = vld [vmem:[#allocation10 + $0x88] ss:$16 sps:$4 sm:$0xff]   ;;  %v6607_v46 = vld [vmem:[#allocation10 + $0x18c] ss:$16 sps:$4 sm:$0xff]  }
 0x272   :  { %v2514_v34 = vpop.f32.mrf.mxu0  ;;  %4413 = vmatprep.subr.bf16.mxu1 %v6550_v20  ;;  %v6599_v19 = vld [vmem:[#allocation10 + $0x1a8] ss:$16 sps:$4 sm:$0xff]   ;;  %v6610_v20 = vld [vmem:[#allocation10 + $0x38c] ss:$16 sps:$4 sm:$0xff]  }
 0x273   :  { %v7276_v35 = vadd.f32 %v2553_v28, %v2513_v31  ;;  %v2555_v36 = vpop.f32.mrf.mxu1  ;;  %4373 = vmatpush1.bf16.msra.mxu0 %v6545_v59  ;;  %v6602_v43 = vld [vmem:[#allocation10 + $0x3a8] ss:$16 sps:$4 sm:$0xff]   ;;  %v6613_v59 = vld [vmem:[#allocation10 + $0x16c] ss:$16 sps:$4 sm:$0xff]  }
 0x274   :  { %4414 = vmatpush1.bf16.msra.mxu1 %v6548_v26  ;;  %v2515_v50 = vpop.f32.mrf.mxu0  ;;  %4374 = vmatprep.subr.bf16.mxu0 %v6553_v27  ;;  %v6605_v54 = vld [vmem:[#allocation10 + $0x188] ss:$16 sps:$4 sm:$0xff]   ;;  %v6616_v23 = vld [vmem:[#allocation10 + $0x36c] ss:$16 sps:$4 sm:$0xff]  }
 0x275   :  { %v2556_v51 = vpop.f32.mrf.mxu1  ;;  %4415 = vmatprep.subr.bf16.mxu1 %v6556_v30  ;;  %v6608_v24 = vld [vmem:[#allocation10 + $0x388] ss:$16 sps:$4 sm:$0xff]   ;;  %v6619_v31 = vld [vmem:[#allocation10 + $0x14c] ss:$16 sps:$4 sm:$0xff]  }
 0x276   :  { %v6611_v26 = vld [vmem:[#allocation10 + $0x168] ss:$16 sps:$4 sm:$0xff]   ;;  %v6622_v28 = vld [vmem:[#allocation10 + $0x34c] ss:$16 sps:$4 sm:$0xff]  }
 0x277   :  { %4375 = vmatpush1.bf16.msra.mxu0 %v6551_v60  ;;  %v6614_v27 = vld [vmem:[#allocation10 + $0x368] ss:$16 sps:$4 sm:$0xff]   ;;  %v6625_v36 = vld [vmem:[#allocation10 + $0x12c] ss:$16 sps:$4 sm:$0xff]  }
 0x278   :  { %4416 = vmatpush1.bf16.msra.mxu1 %v6554_v7  ;;  %4376 = vmatprep.subr.bf16.mxu0 %v6559_v58  ;;  %v6617_v30 = vld [vmem:[#allocation10 + $0x148] ss:$16 sps:$4 sm:$0xff]   ;;  %v6628_v60 = vld [vmem:[#allocation10 + $0x32c] ss:$16 sps:$4 sm:$0xff]  }
 0x279   :  { %4417 = vmatprep.subr.bf16.mxu1 %v6562_v57  ;;  %v6620_v34 = vld [vmem:[#allocation10 + $0x348] ss:$16 sps:$4 sm:$0xff]   ;;  %v6631_v58 = vld [vmem:[#allocation10 + $0x10c] ss:$16 sps:$4 sm:$0xff]  }
 0x27a   :  { %v6623_v50 = vld [vmem:[#allocation10 + $0x128] ss:$16 sps:$4 sm:$0xff]   ;;  %v6634_v51 = vld [vmem:[#allocation10 + $0x30c] ss:$16 sps:$4 sm:$0xff]  }
 0x27b   :  { %4377 = vmatpush1.bf16.msra.mxu0 %v6557_v62  ;;  %v6626_v7 = vld [vmem:[#allocation10 + $0x328] ss:$16 sps:$4 sm:$0xff]  }
 0x27c   :  { %4418 = vmatpush1.bf16.msra.mxu1 %v6560_v56  ;;  %4378 = vmatprep.subr.bf16.mxu0 %v6565_v25  ;;  %v6629_v57 = vld [vmem:[#allocation10 + $0x108] ss:$16 sps:$4 sm:$0xff]   ;;  %v6637_v56 = vld [vmem:[#allocation10 + $0x4ec] ss:$16 sps:$4 sm:$0xff]  }
 0x27d   :  { %4419 = vmatprep.subr.bf16.mxu1 %v6568_v38  ;;  %v6632_v62 = vld [vmem:[#allocation10 + $0x308] ss:$16 sps:$4 sm:$0xff]   ;;  %v6640_v25 = vld [vmem:[#allocation10 + $0x6ec] ss:$16 sps:$4 sm:$0xff]  }
 0x27e   :  { %v6635_v38 = vld [vmem:[#allocation10 + $0x4e8] ss:$16 sps:$4 sm:$0xff]  }
 0x27f   :  { %4379 = vmatpush1.bf16.msra.mxu0 %v6563_v29  ;;  %v6638_v29 = vld [vmem:[#allocation10 + $0x6e8] ss:$16 sps:$4 sm:$0xff]  }
 0x280   :  { %4420 = vmatpush1.bf16.msra.mxu1 %v6566_v39  ;;  %4380 = vmatprep.subr.bf16.mxu0 %v6571_v40  ;;  %v6643_v39 = vld [vmem:[#allocation10 + $0x4cc] ss:$16 sps:$4 sm:$0xff]  }
 0x281   :  { %4421 = vmatprep.subr.bf16.mxu1 %v6574_v41  ;;  %v6646_v41 = vld [vmem:[#allocation10 + $0x6cc] ss:$16 sps:$4 sm:$0xff]  }
 0x283   :  { %4381 = vmatpush1.bf16.msra.mxu0 %v6569_v44 }
 0x284   :  { %4422 = vmatpush1.bf16.msra.mxu1 %v6572_v12  ;;  %4382 = vmatprep.subr.bf16.mxu0 %v6577_v45  ;;  %v6641_v45 = vld [vmem:[#allocation10 + $0x4c8] ss:$16 sps:$4 sm:$0xff]  }
 0x285   :  { %4423 = vmatprep.subr.bf16.mxu1 %v6580_v47 }
 0x287   :  { %4383 = vmatpush1.bf16.msra.mxu0 %v6575_v49  ;;  %v6644_v49 = vld [vmem:[#allocation10 + $0x6c8] ss:$16 sps:$4 sm:$0xff]  }
 0x288   :  { %4424 = vmatpush1.bf16.msra.mxu1 %v6578_v52  ;;  %4384 = vmatprep.subr.bf16.mxu0 %v6583_v55  ;;  %v6649_v52 = vld [vmem:[#allocation10 + $0x4ac] ss:$16 sps:$4 sm:$0xff]  }
 0x289   :  { %4425 = vmatprep.subr.bf16.mxu1 %v6586_v61 }
 0x28b   :  { %4385 = vmatpush1.bf16.msra.mxu0 %v6581_v17  ;;  %v6647_v17 = vld [vmem:[#allocation10 + $0x4a8] ss:$16 sps:$4 sm:$0xff]  }
 0x28c   :  { %4426 = vmatpush1.bf16.msra.mxu1 %v6584_v1  ;;  %4386 = vmatprep.subr.bf16.mxu0 %v6589_v3  ;;  %v6650_v1 = vld [vmem:[#allocation10 + $0x6a8] ss:$16 sps:$4 sm:$0xff]   ;;  %v6655_v3 = vld [vmem:[#allocation10 + $0x48c] ss:$16 sps:$4 sm:$0xff]  }
 0x28d   :  { %4427 = vmatprep.subr.bf16.mxu1 %v6592_v22 }
 0x28f   :  { %4387 = vmatpush2.bf16.msra.mxu0 %v6587_v4  ;;  %v6658_v4 = vld [vmem:[#allocation10 + $0x68c] ss:$16 sps:$4 sm:$0xff]  }
 0x290   :  { %4428 = vmatpush2.bf16.msra.mxu1 %v6590_v15  ;;  %4388 = vmatprep.subr.bf16.mxu0 %v6595_v5  ;;  %v6653_v15 = vld [vmem:[#allocation10 + $0x488] ss:$16 sps:$4 sm:$0xff]   ;;  %v6661_v5 = vld [vmem:[#allocation10 + $0x46c] ss:$16 sps:$4 sm:$0xff]  }
 0x291   :  { %4429 = vmatprep.subr.bf16.mxu1 %v6598_v2  ;;  %v6664_v2 = vld [vmem:[#allocation10 + $0x66c] ss:$16 sps:$4 sm:$0xff]  }
 0x293   :  { %4389 = vmatpush2.bf16.msra.mxu0 %v6593_v13  ;;  %v6659_v13 = vld [vmem:[#allocation10 + $0x468] ss:$16 sps:$4 sm:$0xff]  }
 0x294   :  { %4430 = vmatpush2.bf16.msra.mxu1 %v6596_v63  ;;  %4390 = vmatprep.subr.bf16.mxu0 %v6601_v14  ;;  %v6662_v63 = vld [vmem:[#allocation10 + $0x668] ss:$16 sps:$4 sm:$0xff]   ;;  %v6667_v14 = vld [vmem:[#allocation10 + $0x44c] ss:$16 sps:$4 sm:$0xff]  }
 0x295   :  { %4431 = vmatprep.subr.bf16.mxu1 %v6604_v21  ;;  %v6670_v21 = vld [vmem:[#allocation10 + $0x64c] ss:$16 sps:$4 sm:$0xff]  }
 0x297   :  { %4391 = vmatpush2.bf16.msra.mxu0 %v6599_v19  ;;  %v6665_v19 = vld [vmem:[#allocation10 + $0x448] ss:$16 sps:$4 sm:$0xff]  }
 0x298   :  { %4432 = vmatpush2.bf16.msra.mxu1 %v6602_v43  ;;  %4392 = vmatprep.subr.bf16.mxu0 %v6607_v46  ;;  %v6668_v43 = vld [vmem:[#allocation10 + $0x648] ss:$16 sps:$4 sm:$0xff]   ;;  %v6673_v46 = vld [vmem:[#allocation10 + $0x42c] ss:$16 sps:$4 sm:$0xff]  }
 0x299   :  { %4433 = vmatprep.subr.bf16.mxu1 %v6610_v20  ;;  %v6676_v20 = vld [vmem:[#allocation10 + $0x62c] ss:$16 sps:$4 sm:$0xff]  }
 0x29b   :  { %4393 = vmatpush2.bf16.msra.mxu0 %v6605_v54  ;;  %v6671_v54 = vld [vmem:[#allocation10 + $0x428] ss:$16 sps:$4 sm:$0xff]  }
 0x29c   :  { %4434 = vmatpush2.bf16.msra.mxu1 %v6608_v24  ;;  %4394 = vmatprep.subr.bf16.mxu0 %v6613_v59  ;;  %v6674_v24 = vld [vmem:[#allocation10 + $0x628] ss:$16 sps:$4 sm:$0xff]   ;;  %v6679_v59 = vld [vmem:[#allocation10 + $0x40c] ss:$16 sps:$4 sm:$0xff]  }
 0x29d   :  { %4435 = vmatprep.subr.bf16.mxu1 %v6616_v23  ;;  %v6682_v23 = vld [vmem:[#allocation10 + $0x60c] ss:$16 sps:$4 sm:$0xff]  }
 0x29f   :  { %4395 = vmatpush2.bf16.msra.mxu0 %v6611_v26  ;;  %v6677_v26 = vld [vmem:[#allocation10 + $0x408] ss:$16 sps:$4 sm:$0xff]  }
 0x2a0   :  { %4436 = vmatpush2.bf16.msra.mxu1 %v6614_v27  ;;  %4396 = vmatprep.subr.bf16.mxu0 %v6619_v31  ;;  %v6680_v27 = vld [vmem:[#allocation10 + $0x608] ss:$16 sps:$4 sm:$0xff]   ;;  %v6685_v31 = vld [vmem:[#allocation10 + $0x5ec] ss:$16 sps:$4 sm:$0xff]  }
 0x2a1   :  { %4437 = vmatprep.subr.bf16.mxu1 %v6622_v28  ;;  %v6688_v28 = vld [vmem:[#allocation10 + $0x7ec] ss:$16 sps:$4 sm:$0xff]  }
 0x2a3   :  { %4397 = vmatpush2.bf16.msra.mxu0 %v6617_v30  ;;  %v6683_v30 = vld [vmem:[#allocation10 + $0x5e8] ss:$16 sps:$4 sm:$0xff]  }
 0x2a4   :  { %4438 = vmatpush2.bf16.msra.mxu1 %v6620_v34  ;;  %4398 = vmatprep.subr.bf16.mxu0 %v6625_v36  ;;  %v6686_v34 = vld [vmem:[#allocation10 + $0x7e8] ss:$16 sps:$4 sm:$0xff]   ;;  %v6691_v36 = vld [vmem:[#allocation10 + $0x5cc] ss:$16 sps:$4 sm:$0xff]  }
 0x2a5   :  { %4439 = vmatprep.subr.bf16.mxu1 %v6628_v60  ;;  %v6694_v60 = vld [vmem:[#allocation10 + $0x7cc] ss:$16 sps:$4 sm:$0xff]  }
 0x2a7   :  { %4399 = vmatpush2.bf16.msra.mxu0 %v6623_v50  ;;  %v6689_v50 = vld [vmem:[#allocation10 + $0x5c8] ss:$16 sps:$4 sm:$0xff]  }
 0x2a8   :  { %4440 = vmatpush2.bf16.msra.mxu1 %v6626_v7  ;;  %4400 = vmatprep.subr.bf16.mxu0 %v6631_v58  ;;  %v6692_v7 = vld [vmem:[#allocation10 + $0x7c8] ss:$16 sps:$4 sm:$0xff]   ;;  %v6697_v58 = vld [vmem:[#allocation10 + $0x5ac] ss:$16 sps:$4 sm:$0xff]  }
 0x2a9   :  { %4441 = vmatprep.subr.bf16.mxu1 %v6634_v51  ;;  %v6700_v51 = vld [vmem:[#allocation10 + $0x7ac] ss:$16 sps:$4 sm:$0xff]  }
 0x2ab   :  { %4401 = vmatpush2.bf16.msra.mxu0 %v6629_v57  ;;  %v6695_v57 = vld [vmem:[#allocation10 + $0x5a8] ss:$16 sps:$4 sm:$0xff]  }
 0x2ac   :  { %4442 = vmatpush2.bf16.msra.mxu1 %v6632_v62  ;;  %4452 = vmatprep.subr.bf16.mxu0 %v6637_v56  ;;  %v6698_v62 = vld [vmem:[#allocation10 + $0x7a8] ss:$16 sps:$4 sm:$0xff]   ;;  %v6703_v56 = vld [vmem:[#allocation10 + $0x58c] ss:$16 sps:$4 sm:$0xff]  }
 0x2ad   :  { %4493 = vmatprep.subr.bf16.mxu1 %v6640_v25  ;;  %v6706_v25 = vld [vmem:[#allocation10 + $0x78c] ss:$16 sps:$4 sm:$0xff]  }
 0x2ae   :  { %v2592_v40 = vpop.f32.mrf.mxu0  ;;  %4403 = vmatmul.mubr.bf16.vlgmr.msra.gmra.mxu0 %v7242_v37 }
 0x2af   :  { %v2593_v44 = vadd.f32 %v2592_v40, %v7273_v32  ;;  %v2633_v12 = vpop.f32.mrf.mxu1  ;;  %4444 = vmatmul.mubr.bf16.vlgmr.msra.gmra.mxu1 %v7244_v8  ;;  %4453 = vmatpush1.bf16.msra.mxu0 %v6635_v38  ;;  %v6652_v32 = vld [vmem:[#allocation10 + $0x6ac] ss:$16 sps:$4 sm:$0xff]  }
 0x2b0   :  { %4484 = vmatprep.mubr.bf16.mxu0 %v7247_v53  ;;  %4494 = vmatpush1.bf16.msra.mxu1 %v6638_v29  ;;  %v7282_v47 = vpop.f32.mrf.mxu0  ;;  %v6701_v29 = vld [vmem:[#allocation10 + $0x588] ss:$16 sps:$4 sm:$0xff]   ;;  %v6709_v40 = vld [vmem:[#allocation10 + $0x56c] ss:$16 sps:$4 sm:$0xff]  }
 0x2b1   :  { %v7284_v55 = vadd.f32 %v2633_v12, %v2593_v44  ;;  %4525 = vmatprep.mubr.bf16.mxu1 %v7251_v33  ;;  %v7287_v37 = vpop.f32.mrf.mxu1  ;;  %4454 = vmatprep.subr.bf16.mxu0 %v6643_v39  ;;  %v6656_v33 = vld [vmem:[#allocation10 + $0x688] ss:$16 sps:$4 sm:$0xff]   ;;  %v2595_v38 = vadd.f32 %v7282_v47, %v7276_v35 }
 0x2b2   :  { %v2596_v61 = vpop.f32.mrf.mxu0  ;;  %4495 = vmatprep.subr.bf16.mxu1 %v6646_v41  ;;  %v6704_v39 = vld [vmem:[#allocation10 + $0x788] ss:$16 sps:$4 sm:$0xff]   ;;  %v6712_v41 = vld [vmem:[#allocation10 + $0x76c] ss:$16 sps:$4 sm:$0xff]  }
 0x2b3   :  { %v2637_v8 = vpop.f32.mrf.mxu1  ;;  %4455 = vmatpush1.bf16.msra.mxu0 %v6641_v45  ;;  %v2636_v44 = vadd.f32 %v7287_v37, %v2595_v38  ;;  %v6707_v12 = vld [vmem:[#allocation10 + $0x568] ss:$16 sps:$4 sm:$0xff]   ;;  %v6724_v61 = vld [vmem:[#allocation10 + $0x72c] ss:$16 sps:$4 sm:$0xff]  }
 0x2b4   :  { %4496 = vmatpush1.bf16.msra.mxu1 %v6644_v49  ;;  %v2597_v53 = vpop.f32.mrf.mxu0  ;;  %4456 = vmatprep.subr.bf16.mxu0 %v6649_v52  ;;  %v6710_v45 = vld [vmem:[#allocation10 + $0x768] ss:$16 sps:$4 sm:$0xff]   ;;  %v6715_v49 = vld [vmem:[#allocation10 + $0x54c] ss:$16 sps:$4 sm:$0xff]  }
 0x2b5   :  { %v2638_v22 = vpop.f32.mrf.mxu1  ;;  %4497 = vmatprep.subr.bf16.mxu1 %v6652_v32  ;;  %v6718_v52 = vld [vmem:[#allocation10 + $0x74c] ss:$16 sps:$4 sm:$0xff]   ;;  %6829 = vtanh.f32 %v2636_v44  ;;  %v6713_v35 = vld [vmem:[#allocation10 + $0x548] ss:$16 sps:$4 sm:$0xff]  }
 0x2b6   :  { %v6716_v47 = vld [vmem:[#allocation10 + $0x748] ss:$16 sps:$4 sm:$0xff]   ;;  %v6721_v32 = vld [vmem:[#allocation10 + $0x52c] ss:$16 sps:$4 sm:$0xff]   ;;  %6831 = vtanh.f32 %v7254_v42 }
 0x2b7   :  { %4457 = vmatpush1.bf16.msra.mxu0 %v6647_v17  ;;  %v6719_v37 = vld [vmem:[#allocation10 + $0x528] ss:$16 sps:$4 sm:$0xff]   ;;  %v6727_v17 = vld [vmem:[#allocation10 + $0x50c] ss:$16 sps:$4 sm:$0xff]   ;;  %6833 = vtanh.f32 %v7284_v55  ;;  %v6761_v55 = vld [vmem:[#allocation11] sm:$0xff]  }
 0x2b8   :  { %4498 = vmatpush1.bf16.msra.mxu1 %v6650_v1  ;;  %4458 = vmatprep.subr.bf16.mxu0 %v6655_v3  ;;  %v6722_v8 = vld [vmem:[#allocation10 + $0x728] ss:$16 sps:$4 sm:$0xff]   ;;  %v6730_v53 = vld [vmem:[#allocation10 + $0x70c] ss:$16 sps:$4 sm:$0xff]  }
 0x2b9   :  { %4499 = vmatprep.subr.bf16.mxu1 %v6658_v4  ;;  %v6725_v1 = vld [vmem:[#allocation10 + $0x508] ss:$16 sps:$4 sm:$0xff]   ;;  %v6828_v4 = vpop.eup %6827 }
 0x2ba   :  { %v6731_v3 = vld [vmem:[#allocation11 + $0x78] sm:$0xff]   ;;  %v6756_v38 = vld [vmem:[#allocation11 + $0xc8] sm:$0xff]  }
 0x2bb   :  { %4459 = vmatpush1.bf16.msra.mxu0 %v6653_v15  ;;  %v6732_v22 = vld [vmem:[#allocation11 + $0xf8] sm:$0xff]   ;;  %v6758_v42 = vld [vmem:[#allocation11 + $0x88] sm:$0xff]  }
 0x2bc   :  { %4500 = vmatpush1.bf16.msra.mxu1 %v6656_v33  ;;  %4460 = vmatprep.subr.bf16.mxu0 %v6661_v5  ;;  %v6733_v15 = vld [vmem:[#allocation11 + $0x38] sm:$0xff]  }
 0x2bd   :  { %4501 = vmatprep.subr.bf16.mxu1 %v6664_v2  ;;  %v6734_v5 = vld [vmem:[#allocation11 + $0xb8] sm:$0xff]   ;;  %v6735_v2 = vld [vmem:[#allocation11 + $0x70] sm:$0xff]  }
 0x2be   :  { %v6763_v44 = vld [vmem:[#allocation11 + $0x178] sm:$0xff]  }
 0x2bf   :  { %4461 = vmatpush1.bf16.msra.mxu0 %v6659_v13 }
 0x2c0   :  { %4502 = vmatpush1.bf16.msra.mxu1 %v6662_v63  ;;  %4462 = vmatprep.subr.bf16.mxu0 %v6667_v14  ;;  %v2645_v63 = vpack.c.bf16 %v6828_v4, %v6828_v4  ;;  %v6736_v14 = vld [vmem:[#allocation11 + $0xf0] sm:$0xff]   ;;  %v6772_v4 = vld [vmem:[#allocation11 + $0x118] sm:$0xff]  }
 0x2c1   :  { %4503 = vmatprep.subr.bf16.mxu1 %v6670_v21 }
 0x2c2   :  { %v6830_v33 = vpop.eup %6829 }
 0x2c3   :  { %4463 = vmatpush1.bf16.msra.mxu0 %v6665_v19  ;;  %v2647_v19 = vpack.c.bf16 %v6830_v33, %v6830_v33  ;;  %v6774_v33 = vld [vmem:[#allocation11 + $0x110] sm:$0xff]  }
 0x2c4   :  { %4504 = vmatpush1.bf16.msra.mxu1 %v6668_v43  ;;  %4464 = vmatprep.subr.bf16.mxu0 %v6673_v46  ;;  %v6737_v43 = vld [vmem:[#allocation11 + $0x30] sm:$0xff]  }
 0x2c5   :  { %4505 = vmatprep.subr.bf16.mxu1 %v6676_v20  ;;  %v6738_v20 = vld [vmem:[#allocation11 + $0xb0] sm:$0xff]  }
 0x2c7   :  { %4465 = vmatpush1.bf16.msra.mxu0 %v6671_v54  ;;  %v6739_v54 = vld [vmem:[#allocation11 + $0x68] sm:$0xff]  }
 0x2c8   :  { %4506 = vmatpush1.bf16.msra.mxu1 %v6674_v24  ;;  %4466 = vmatprep.subr.bf16.mxu0 %v6679_v59 }
 0x2c9   :  { %4507 = vmatprep.subr.bf16.mxu1 %v6682_v23 }
 0x2cb   :  { %4467 = vmatpush1.bf16.msra.mxu0 %v6677_v26  ;;  %v6741_v26 = vld [vmem:[#allocation11 + $0x28] sm:$0xff]  }
 0x2cc   :  { %4508 = vmatpush1.bf16.msra.mxu1 %v6680_v27  ;;  %4468 = vmatprep.subr.bf16.mxu0 %v6685_v31  ;;  %v6742_v27 = vld [vmem:[#allocation11 + $0xa8] sm:$0xff]   ;;  %v6743_v31 = vld [vmem:[#allocation11 + $0x60] sm:$0xff]  }
 0x2cd   :  { %4509 = vmatprep.subr.bf16.mxu1 %v6688_v28 }
 0x2cf   :  { %4469 = vmatpush2.bf16.msra.mxu0 %v6683_v30  ;;  %v6744_v30 = vld [vmem:[#allocation11 + $0xe0] sm:$0xff]  }
 0x2d0   :  { %4510 = vmatpush2.bf16.msra.mxu1 %v6686_v34  ;;  %4470 = vmatprep.subr.bf16.mxu0 %v6691_v36  ;;  %v6745_v34 = vld [vmem:[#allocation11 + $0x20] sm:$0xff]  }
 0x2d1   :  { %4511 = vmatprep.subr.bf16.mxu1 %v6694_v60  ;;  %v6746_v36 = vld [vmem:[#allocation11 + $0xa0] sm:$0xff]   ;;  %v6747_v60 = vld [vmem:[#allocation11 + $0x58] sm:$0xff]  }
 0x2d3   :  { %4471 = vmatpush2.bf16.msra.mxu0 %v6689_v50  ;;  %v6748_v50 = vld [vmem:[#allocation11 + $0xd8] sm:$0xff]  }
 0x2d4   :  { %4512 = vmatpush2.bf16.msra.mxu1 %v6692_v7  ;;  %4472 = vmatprep.subr.bf16.mxu0 %v6697_v58  ;;  %v6749_v7 = vld [vmem:[#allocation11 + $0x18] sm:$0xff]  }
 0x2d5   :  { %4513 = vmatprep.subr.bf16.mxu1 %v6700_v51  ;;  %v6750_v58 = vld [vmem:[#allocation11 + $0x98] sm:$0xff]   ;;  %v6751_v51 = vld [vmem:[#allocation11 + $0x50] sm:$0xff]  }
 0x2d7   :  { %4473 = vmatpush2.bf16.msra.mxu0 %v6695_v57  ;;  %v6752_v57 = vld [vmem:[#allocation11 + $0xd0] sm:$0xff]  }
 0x2d8   :  { %4514 = vmatpush2.bf16.msra.mxu1 %v6698_v62  ;;  %4474 = vmatprep.subr.bf16.mxu0 %v6703_v56  ;;  %v6753_v62 = vld [vmem:[#allocation11 + $0x10] sm:$0xff]  }
 0x2d9   :  { %4515 = vmatprep.subr.bf16.mxu1 %v6706_v25  ;;  %v6754_v56 = vld [vmem:[#allocation11 + $0x90] sm:$0xff]   ;;  %v6755_v25 = vld [vmem:[#allocation11 + $0x48] sm:$0xff]  }
 0x2db   :  { %4475 = vmatpush2.bf16.msra.mxu0 %v6701_v29  ;;  %v6757_v29 = vld [vmem:[#allocation11 + $0x8] sm:$0xff]  }
 0x2dc   :  { %4516 = vmatpush2.bf16.msra.mxu1 %v6704_v39  ;;  %4476 = vmatprep.subr.bf16.mxu0 %v6709_v40  ;;  %v6759_v39 = vld [vmem:[#allocation11 + $0x40] sm:$0xff]  }
 0x2dd   :  { %4517 = vmatprep.subr.bf16.mxu1 %v6712_v41  ;;  %v6760_v40 = vld [vmem:[#allocation11 + $0xc0] sm:$0xff]  }
 0x2de   :  { %v6762_v41 = vld [vmem:[#allocation11 + $0x80] sm:$0xff]  }
 0x2df   :  { %4477 = vmatpush2.bf16.msra.mxu0 %v6707_v12  ;;  %v6832_v12 = vpop.eup %6831 }
 0x2e0   :  { %4518 = vmatpush2.bf16.msra.mxu1 %v6710_v45  ;;  %4478 = vmatprep.subr.bf16.mxu0 %v6715_v49  ;;  %v6779_v45 = vld [vmem:[#allocation11 + $0x1f8] sm:$0xff]   ;;  %v6834_v49 = vpop.eup %6833 }
 0x2e1   :  { %4519 = vmatprep.subr.bf16.mxu1 %v6718_v52  ;;  %v6764_v52 = vld [vmem:[#allocation11 + $0x138] sm:$0xff]  }
 0x2e3   :  { %4479 = vmatpush2.bf16.msra.mxu0 %v6713_v35  ;;  %v2644_v35 = vpack.c.bf16 %v6832_v12, %v6832_v12 }
 0x2e4   :  { %4520 = vmatpush2.bf16.msra.mxu1 %v6716_v47  ;;  %4480 = vmatprep.subr.bf16.mxu0 %v6721_v32  ;;  %v6765_v47 = vld [vmem:[#allocation11 + $0x170] sm:$0xff]   ;;  %v6780_v32 = vld [vmem:[#allocation11 + $0x1b8] sm:$0xff]  }
 0x2e5   :  { %4521 = vmatprep.subr.bf16.mxu1 %v6724_v61  ;;  %v2646_v61 = vpack.c.bf16 %v6834_v49, %v6834_v49 }
 0x2e7   :  { %4481 = vmatpush2.bf16.msra.mxu0 %v6719_v37  ;;  %v6781_v37 = vld [vmem:[#allocation11 + $0x1f0] sm:$0xff]  }
 0x2e8   :  { %4522 = vmatpush2.bf16.msra.mxu1 %v6722_v8  ;;  %4482 = vmatprep.subr.bf16.mxu0 %v6727_v17  ;;  %v6766_v8 = vld [vmem:[#allocation11 + $0x130] sm:$0xff]   ;;  %v6767_v17 = vld [vmem:[#allocation11 + $0x168] sm:$0xff]  }
 0x2e9   :  { %4523 = vmatprep.subr.bf16.mxu1 %v6730_v53  ;;  %v6782_v53 = vld [vmem:[#allocation11 + $0x1b0] sm:$0xff]  }
 0x2eb   :  { %4483 = vmatpush2.bf16.msra.mxu0 %v6725_v1  ;;  %v6768_v1 = vld [vmem:[#allocation11 + $0x128] sm:$0xff]  }
 0x2ec   :  { %4524 = vmatpush2.bf16.msra.mxu1 %v6728_v48  ;;  %5862 = vmatprep.subr.bf16.mxu0 %v6731_v3  ;;  %v6769_v48 = vld [vmem:[#allocation11 + $0x160] sm:$0xff]  }
 0x2ed   :  { %5884 = vmatprep.subr.bf16.mxu1 %v6732_v22  ;;  %v6770_v3 = vld [vmem:[#allocation11 + $0x120] sm:$0xff]   ;;  %v6771_v22 = vld [vmem:[#allocation11 + $0x158] sm:$0xff]  }
 0x2ee   :  { %v7293_v13 = vpop.f32.mrf.mxu0  ;;  %4485 = vmatmul.mubr.bf16.vlgmr.msra.gmra.mxu0 %v7264_v16  ;;  %v6740_v16 = vld [vmem:[#allocation11 + $0xe8] sm:$0xff]  }
 0x2ef   :  { %v7296_v21 = vpop.f32.mrf.mxu1  ;;  %4526 = vmatmul.mubr.bf16.vlgmr.msra.gmra.mxu1 %v7266_v18  ;;  %5863 = vmatpush3.bf16.msra.mxu0 %v6733_v15  ;;  %v6773_v15 = vld [vmem:[#allocation11 + $0x150] sm:$0xff]  }
 0x2f0   :  { %5093 = vmatprep.mubr.bf16.mxu0 %v2645_v63  ;;  %5885 = vmatpush3.bf16.msra.mxu1 %v6734_v5  ;;  %v7299_v46 = vpop.f32.mrf.mxu0  ;;  %v6775_v5 = vld [vmem:[#allocation11 + $0x148] sm:$0xff]  }
 0x2f1   :  { %5133 = vmatprep.mubr.bf16.mxu1 %v2647_v19  ;;  %v7301_v24 = vpop.f32.mrf.mxu1  ;;  %5864 = vmatprep.subr.bf16.mxu0 %v6735_v2  ;;  %v7308_v2 = vld [vmem:[%s7335_s6] sm:$0xf] }
 0x2f2   :  { %v4244_v59 = vpop.f32.mrf.mxu0  ;;  %5886 = vmatprep.subr.bf16.mxu1 %v6736_v14  ;;  %v6776_v63 = vld [vmem:[#allocation11 + $0x108] sm:$0xff]   ;;  %v6777_v14 = vld [vmem:[#allocation11 + $0x140] sm:$0xff]   ;;  %v2909_v19 = vrot.slane %v7308_v2, %v7118_v9 }
 0x2f3   :  { %v4285_v23 = vpop.f32.mrf.mxu1  ;;  %5865 = vmatpush3.bf16.msra.mxu0 %v6737_v43  ;;  %v2913_v43 = vrot.slane %v7308_v2, %v7124_v11  ;;  %v6784_v9 = vld [vmem:[#allocation11 + $0x1a8] sm:$0xff]  }
 0x2f4   :  { %5887 = vmatpush3.bf16.msra.mxu1 %v6738_v20  ;;  %v4245_v18 = vpop.f32.mrf.mxu0  ;;  %5866 = vmatprep.subr.bf16.mxu0 %v6739_v54  ;;  %v6778_v20 = vld [vmem:[#allocation11 + $0x100] sm:$0xff]   ;;  %v4241_v54 = vadd.f32 %v7293_v13, %v2909_v19 }
 0x2f5   :  { %v4286_v28 = vpop.f32.mrf.mxu1  ;;  %5888 = vmatprep.subr.bf16.mxu1 %v6740_v16  ;;  %v4243_v16 = vadd.f32 %v7299_v46, %v2913_v43  ;;  %v6785_v13 = vld [vmem:[#allocation11 + $0x1e0] sm:$0xff]  }
 0x2f6   :  { %v4282_v59 = vadd.f32 %v7296_v21, %v4241_v54 }
 0x2f7   :  { %5867 = vmatpush3.bf16.msra.mxu0 %v6741_v26  ;;  %v6783_v26 = vld [vmem:[#allocation11 + $0x1e8] sm:$0xff]   ;;  %v4284_v18 = vadd.f32 %v7301_v24, %v4243_v16  ;;  %v6787_v24 = vld [vmem:[#allocation11 + $0x1d8] sm:$0xff]  }
 0x2f8   :  { %5889 = vmatpush3.bf16.msra.mxu1 %v6742_v27  ;;  %5868 = vmatprep.subr.bf16.mxu0 %v6743_v31  ;;  %v5797_v16 = vld [vmem:[%s7337_s8] ss:$0 sm:$0xff]  ;;  %s7008_s8 = smov [#allocation13]  }
 0x2f9   :  { %5890 = vmatprep.subr.bf16.mxu1 %v6744_v30  ;;  %s5233_s20 = sshll.u32 %s7008_s8, 4  ;;  %s5234_s20 = int_to_ptr.vmem [resolvable:$true] %s5233_s20 }
 0x2fa   :  { %s6966_s22 = scalar_lea.vmem %s5234_s20, 128  ;;  %p6971_p3 = scmp.lt.s32.totalorder %s5234_s20, %s5234_s20 }
 0x2fb   :  { %5869 = vmatpush3.bf16.msra.mxu0 %v6745_v34  ;;  %p6967_p2 = scmp.ne.s32.totalorder %s5234_s20, %s6966_s22  ;;  %p6972_p4 = scmp.lt.s32.totalorder %s6966_s22, %s6966_s22 }
 0x2fc   :  { %5891 = vmatpush3.bf16.msra.mxu1 %v6746_v36  ;;  %5870 = vmatprep.subr.bf16.mxu0 %v6747_v60 }
 0x2fd   :  { %5892 = vmatprep.subr.bf16.mxu1 %v6748_v50  ;;  %v6786_v50 = vld [vmem:[#allocation11 + $0x1a0] sm:$0xff]   ;;  %p6973_p5 = por %p6972_p4, %p6971_p3 }
 0x2ff   :  { %5871 = vmatpush3.bf16.msra.mxu0 %v6749_v7  ;;  %p6974_p6 = pnand %p6973_p5, %p6967_p2 }
 0x300   :  { %5893 = vmatpush3.bf16.msra.mxu1 %v6750_v58  ;;  %5872 = vmatprep.subr.bf16.mxu0 %v6751_v51  ;;  %v6788_v58 = vld [vmem:[#allocation11 + $0x198] sm:$0xff]   ;;  %v6789_v51 = vld [vmem:[#allocation11 + $0x1d0] sm:$0xff]  }
 0x301   :  { %5894 = vmatprep.subr.bf16.mxu1 %v6752_v57  ;;  %v6790_v57 = vld [vmem:[#allocation11 + $0x190] sm:$0xff]  }
 0x303   :  { %5873 = vmatpush3.bf16.msra.mxu0 %v6753_v62  ;;  %v6791_v62 = vld [vmem:[#allocation11 + $0x1c8] sm:$0xff]  }
 0x304   :  { %5895 = vmatpush3.bf16.msra.mxu1 %v6754_v56  ;;  %5874 = vmatprep.subr.bf16.mxu0 %v6755_v25  ;;  %v6792_v56 = vld [vmem:[#allocation11 + $0x188] sm:$0xff]  }
 0x305   :  { %5896 = vmatprep.subr.bf16.mxu1 %v6756_v38  ;;  %v6793_v38 = vld [vmem:[#allocation11 + $0x1c0] sm:$0xff]  }
 0x307   :  { %5875 = vmatpush3.bf16.msra.mxu0 %v6757_v29  ;;  %v6794_v29 = vld [vmem:[#allocation11 + $0x180] sm:$0xff]  }
 0x308   :  { %5897 = vmatpush3.bf16.msra.mxu1 %v6758_v42  ;;  %5876 = vmatprep.subr.bf16.mxu0 %v6759_v39 }
 0x309   :  { %5898 = vmatprep.subr.bf16.mxu1 %v6760_v40 }
 0x30b   :  { %5877 = vmatpush3.bf16.msra.mxu0 %v6761_v55 }
 0x30c   :  { %5899 = vmatpush3.bf16.msra.mxu1 %v6762_v41  ;;  %5906 = vmatprep.subr.bf16.mxu0 %v6763_v44 }
 0x30d   :  { %5928 = vmatprep.subr.bf16.mxu1 %v6779_v45 }
 0x30e   :  { %5094 = vmatmul.mubr.bf16.vlgmr.msra.gmra.mxu0 %v2644_v35 }
 0x30f   :  { %5134 = vmatmul.mubr.bf16.vlgmr.msra.gmra.mxu1 %v2646_v61  ;;  %5907 = vmatpush3.bf16.msra.mxu0 %v6764_v52 }
 0x310   :  { %5908 = vmatprep.subr.bf16.mxu0 %v6765_v47  ;;  %5929 = vmatpush3.bf16.msra.mxu1 %v6780_v32  ;;  %v2917_v47 = vrot.slane %v7308_v2, %v7121_v10  ;;  %v2921_v32 = vrot.slane %v7308_v2, %v7127_v0 }
 0x311   :  { %5930 = vmatprep.subr.bf16.mxu1 %v6781_v37 }
 0x313   :  { %5909 = vmatpush3.bf16.msra.mxu0 %v6766_v8 }
 0x314   :  { %5910 = vmatprep.subr.bf16.mxu0 %v6767_v17  ;;  %5931 = vmatpush3.bf16.msra.mxu1 %v6782_v53 }
 0x315   :  { %5932 = vmatprep.subr.bf16.mxu1 %v6783_v26 }
 0x317   :  { %5911 = vmatpush3.bf16.msra.mxu0 %v6768_v1 }
 0x318   :  { %5912 = vmatprep.subr.bf16.mxu0 %v6769_v48  ;;  %5933 = vmatpush3.bf16.msra.mxu1 %v6784_v9 }
 0x319   :  { %5934 = vmatprep.subr.bf16.mxu1 %v6785_v13 }
 0x31b   :  { %5913 = vmatpush3.bf16.msra.mxu0 %v6770_v3 }
 0x31c   :  { %5914 = vmatprep.subr.bf16.mxu0 %v6771_v22  ;;  %5935 = vmatpush3.bf16.msra.mxu1 %v6786_v50 }
 0x31d   :  { %5936 = vmatprep.subr.bf16.mxu1 %v6787_v24 }
 0x31f   :  { %5915 = vmatpush3.bf16.msra.mxu0 %v6772_v4 }
 0x320   :  { %5916 = vmatprep.subr.bf16.mxu0 %v6773_v15  ;;  %5937 = vmatpush3.bf16.msra.mxu1 %v6788_v58 }
 0x321   :  { %5938 = vmatprep.subr.bf16.mxu1 %v6789_v51 }
 0x323   :  { %5917 = vmatpush3.bf16.msra.mxu0 %v6774_v33 }
 0x324   :  { %5918 = vmatprep.subr.bf16.mxu0 %v6775_v5  ;;  %5939 = vmatpush3.bf16.msra.mxu1 %v6790_v57 }
 0x325   :  { %5940 = vmatprep.subr.bf16.mxu1 %v6791_v62  ;;  %v5222_v62 = vand.u32 127, %v150_v6 }
 0x327   :  { %5919 = vmatpush3.bf16.msra.mxu0 %v6776_v63  ;;  %vm5223_vm1 = vcmp.lt.s32.totalorder %v5222_v62, 8 }
 0x328   :  { %5920 = vmatprep.subr.bf16.mxu0 %v6777_v14  ;;  %5941 = vmatpush3.bf16.msra.mxu1 %v6792_v56 }
 0x329   :  { %5942 = vmatprep.subr.bf16.mxu1 %v6793_v38 }
 0x32b   :  { %5921 = vmatpush3.bf16.msra.mxu0 %v6778_v20 }
 0x32c   :  { %5943 = vmatpush3.bf16.msra.mxu1 %v6794_v29 }
 0x32e   :  { %v4322_v23 = vpop.f32.mrf.mxu0 }
 0x32f   :  { %v4323_v27 = vadd.f32 %v4322_v23, %v4282_v59  ;;  %v4363_v31 = vpop.f32.mrf.mxu1 }
 0x330   :  { %v4324_v28 = vpop.f32.mrf.mxu0 }
 0x331   :  { %v4364_v11 = vadd.f32 %v4363_v31, %v4323_v27  ;;  %v4325_v30 = vadd.f32 %v4324_v28, %v4284_v18  ;;  %v4365_v34 = vpop.f32.mrf.mxu1 }
 0x332   :  { %v4326_v36 = vpop.f32.mrf.mxu0 }
 0x333   :  { %v4366_v60 = vadd.f32 %v4365_v34, %v4325_v30  ;;  %v4367_v46 = vpop.f32.mrf.mxu1  ;;  %6835 = vtanh.f32 %v4364_v11 }
 0x334   :  { %v4327_v21 = vpop.f32.mrf.mxu0 }
 0x335   :  { %6837 = vtanh.f32 %v4366_v60  ;;  %v4368_v7 = vpop.f32.mrf.mxu1 }
 0x340   :  { %v6836_v25 = vpop.eup %6835 }
 0x341   :  { %v4538_v40 = vpack.c.bf16 %v6836_v25, %v6836_v25 }
 0x342   :  { %v6838_v42 = vpop.eup %6837 }
 0x343   :  { %v4539_v39 = vpack.c.bf16 %v6838_v42, %v6838_v42 }
 0x345   :  { %5173 = vmatprep.mubr.bf16.mxu0 %v4539_v39 }
 0x346   :  { %5174 = vmatmul.mubr.bf16.vlgmr.msra.gmra.mxu0 %v4538_v40 }
 0x36e   :  { %v4404_v55 = vpop.f32.mrf.mxu0 }
 0x36f   :  { %v4445_v41 = vpop.f32.mrf.mxu1  ;;  %v4405_v61 = vadd.f32 %v4404_v55, %v2917_v47 }
 0x370   :  { %v4406_v44 = vpop.f32.mrf.mxu0 }
 0x371   :  { %v4447_v12 = vpop.f32.mrf.mxu1  ;;  %v4407_v37 = vadd.f32 %v4406_v44, %v2921_v32  ;;  %v4446_v8 = vadd.f32 %v4445_v41, %v4405_v61 }
 0x372   :  { %v4408_v45 = vpop.f32.mrf.mxu0 }
 0x373   :  { %v4449_v49 = vpop.f32.mrf.mxu1  ;;  %v4448_v53 = vadd.f32 %v4447_v12, %v4407_v37 }
 0x374   :  { %v4409_v52 = vpop.f32.mrf.mxu0 }
 0x375   :  { %v4450_v35 = vpop.f32.mrf.mxu1 }
 0x3ae   :  { %v4486_v17 = vpop.f32.mrf.mxu0 }
 0x3af   :  { %v4487_v1 = vadd.f32 %v4486_v17, %v4446_v8  ;;  %v4527_v48 = vpop.f32.mrf.mxu1 }
 0x3b0   :  { %v4488_v3 = vpop.f32.mrf.mxu0 }
 0x3b1   :  { %v4528_v22 = vadd.f32 %v4527_v48, %v4487_v1  ;;  %v4489_v4 = vadd.f32 %v4488_v3, %v4448_v53  ;;  %v4529_v15 = vpop.f32.mrf.mxu1 }
 0x3b2   :  { %v4490_v33 = vpop.f32.mrf.mxu0 }
 0x3b3   :  { %v4530_v5 = vadd.f32 %v4529_v15, %v4489_v4  ;;  %v4531_v63 = vpop.f32.mrf.mxu1  ;;  %6839 = vtanh.f32 %v4528_v22 }
 0x3b4   :  { %v4491_v14 = vpop.f32.mrf.mxu0 }
 0x3b5   :  { %6841 = vtanh.f32 %v4530_v5  ;;  %v4532_v10 = vpop.f32.mrf.mxu1 }
 0x3c0   :  { %v6840_v19 = vpop.eup %6839 }
 0x3c1   :  { %v4540_v43 = vpack.c.bf16 %v6840_v19, %v6840_v19 }
 0x3c2   :  { %v6842_v0 = vpop.eup %6841 }
 0x3c3   :  { %v4541_v2 = vpack.c.bf16 %v6842_v0, %v6842_v0 }
 0x3c5   :  { %5213 = vmatprep.mubr.bf16.mxu1 %v4541_v2 }
 0x3c6   :  { %5214 = vmatmul.mubr.bf16.vlgmr.msra.gmra.mxu1 %v4540_v43 }
 0x3ce   :  { %v5878_v20 = vpop.f32.mrf.mxu0 }
 0x3cf   :  { %v5900_v54 = vpop.f32.mrf.mxu1 }
 0x3d0   :  { %v5879_v59 = vpop.f32.mrf.mxu0 }
 0x3d1   :  { %v5880_v23 = vadd.f32 %v5879_v59, %v5878_v20  ;;  %v5901_v26 = vpop.f32.mrf.mxu1 }
 0x3d2   :  { %v5902_v18 = vadd.f32 %v5901_v26, %v5900_v54  ;;  %v5881_v27 = vpop.f32.mrf.mxu0 }
 0x3d3   :  { %v5096_v31 = vadd.f32 %v5880_v23, %v5797_v16  ;;  %v5903_v9 = vpop.f32.mrf.mxu1 }
 0x3d4   :  { %v5882_v28 = vpop.f32.mrf.mxu0 }
 0x3d5   :  { %v5136_v11 = vadd.f32 %v5902_v18, %v5096_v31  ;;  %v5904_v30 = vpop.f32.mrf.mxu1 }
 0x406   :  { %v5922_v34 = vpop.f32.mrf.mxu0 }
 0x408   :  { %v5923_v36 = vpop.f32.mrf.mxu0 }
 0x409   :  { %v5924_v13 = vadd.f32 %v5923_v36, %v5922_v34 }
 0x40a   :  { %v5925_v60 = vpop.f32.mrf.mxu0 }
 0x40b   :  { %v5176_v46 = vadd.f32 %v5924_v13, %v5136_v11 }
 0x40c   :  { %v5926_v50 = vpop.f32.mrf.mxu0 }
 0x486   :  { %v5944_v21 = vpop.f32.mrf.mxu1 }
 0x488   :  { %v5945_v7 = vpop.f32.mrf.mxu1 }
 0x489   :  { %v5946_v24 = vadd.f32 %v5945_v7, %v5944_v21 }
 0x48a   :  { %v5947_v58 = vpop.f32.mrf.mxu1 }
 0x48b   :  { %v5216_v51 = vadd.f32 %v5946_v24, %v5176_v46 }
 0x48c   :  { %v5948_v57 = vpop.f32.mrf.mxu1 }
 0x48d   :  { %6843 = vtanh.f32 %v5216_v51 }
 0x49a   :  { %v6844_v56 = vpop.eup %6843 }
 0x49b   :  { %v5225_v25 = vsel %vm5223_vm1, %v6844_v56, %v5216_v51 }
 0x49c   :  { %5226 = vst [vmem:[#allocation13] sm:$0xff] %v5225_v25 }
 0x49d   :  { %6977 = shalt.err (!%p6974_p6)
}
 0x49e   :  { %5236 = dma.vmem_to_hbm [thread:$0]  %s5234_s20, 128, %s7338_s9, [#allocation4]  }
 0x49f   :  { %6994 = dma.done.wait [#allocation4], 128  }
 0x4a0   :  { %6995 = vsyncadd [#allocation4], 4294967168 }
 0x4a1   :  { %5240 = vsyncpa [#allocation3], 1 }
 0x4a2   :  { %5241 = vsyncpa [#allocation6], 1 }
 0x4a3   :  { %5242 = vsyncpa [#allocation9], 1 }
 0x4a4   :  { %5243 = vsyncpa [#allocation12], 1 }
 0x4a5   :  { %5244 = vsyncpa [#allocation4], 1 }

</bundles_post_ra>
